<compile_context>
chip_gen: v5e
topology: v5e:2x2
jax: 0.10.0
libtpu: 0.0.40
codegen_flags: <defaults>
</compile_context>

<pallas_src>
import functools
import math

import jax
import jax.numpy as jnp
from jax import lax
from jax.experimental import pallas as pl
from jax.experimental.pallas import tpu as pltpu


# ----------------------------------------------------------------------------
# Small helpers
# ----------------------------------------------------------------------------
def _pick_row_tile(n):
    """Largest 'nice' row tile (multiple of 8, <=512) that splits n into >=2
    grid steps; falls back to the whole array (always a legal block)."""
    for t in (512, 256, 128, 64, 32, 16, 8):
        if t < n and n % t == 0:
            return t
    return n


def _layernorm_f32(v, g, b, eps):
    mu = jnp.mean(v, axis=-1, keepdims=True)
    var = jnp.mean((v - mu) * (v - mu), axis=-1, keepdims=True)
    return (v - mu) * lax.rsqrt(var + eps) * g + b


def _gelu_exact(y):
    # exact GELU (erf), matches torch.nn.GELU default
    return 0.5 * y * (1.0 + lax.erf(y * (1.0 / math.sqrt(2.0))))


# ----------------------------------------------------------------------------
# Pallas kernels
# ----------------------------------------------------------------------------
def _linear_bias_kernel(x_ref, w_ref, b_ref, o_ref):
    y = jnp.dot(x_ref[...].astype(jnp.bfloat16), w_ref[...],
                preferred_element_type=jnp.float32)
    o_ref[...] = y + b_ref[...]


def _proj_out_norm_kernel(x_ref, w_ref, b_ref, g_ref, beta_ref, o_ref, *, eps):
    y = jnp.dot(x_ref[...].astype(jnp.bfloat16), w_ref[...],
                preferred_element_type=jnp.float32)
    y = y + b_ref[...]
    o_ref[...] = _layernorm_f32(y, g_ref[...], beta_ref[...], eps)


def _layer_kernel(x_ref, lat_ref,
                  n1g_ref, n1b_ref, n2g_ref, n2b_ref,
                  wq_ref, wkv_ref, wout_ref,
                  lng_ref, lnb_ref, w1_ref, w2_ref,
                  o_ref, *, heads, dim_head, eps):
    """One full Perceiver layer (attention block + feed-forward block) for a
    single batch element.  All weights are VMEM-resident bf16; LayerNorm and
    accumulations are f32."""
    f32 = jnp.float32
    bf16 = jnp.bfloat16
    inner = heads * dim_head

    x = x_ref[0]        # (N1, D) f32   image tokens
    lat = lat_ref[0]    # (L,  D) f32   latents

    # --- PerceiverAttention -------------------------------------------------
    xn = _layernorm_f32(x, n1g_ref[...], n1b_ref[...], eps)       # (N1, D)
    latn = _layernorm_f32(lat, n2g_ref[...], n2b_ref[...], eps)   # (L,  D)

    # wq already carries the 1/sqrt(dim_head) attention scale.
    q = jnp.dot(latn.astype(bf16), wq_ref[...],
                preferred_element_type=f32)                        # (L, inner)

    # kv_input = cat((x, latents), dim=-2) done in-VMEM on the sublane axis,
    # then ONE fused kv projection for both sources.
    kv_in = jnp.concatenate([xn, latn], axis=0)                    # (Lk, D) f32
    kv = jnp.dot(kv_in.astype(bf16), wkv_ref[...],
                 preferred_element_type=f32)                       # (Lk, 2*inner)
    k = kv[:, :inner]                                              # (Lk, inner)
    v = kv[:, inner:]                                              # (Lk, inner)

    q_b = q.astype(bf16)
    k_b = k.astype(bf16)
    v_b = v.astype(bf16)

    # Per-head attention (static unrolled loop); heads stay on the lane axis,
    # result is re-assembled lane-dense as (L, inner).
    head_outs = []
    for h in range(heads):
        sl = slice(h * dim_head, (h + 1) * dim_head)
        s = jnp.dot(q_b[:, sl], k_b[:, sl].T,
                    preferred_element_type=f32)                    # (L, Lk)
        s = s - jnp.max(s, axis=-1, keepdims=True)
        p = jnp.exp(s)
        p = p * pl.reciprocal(jnp.sum(p, axis=-1, keepdims=True), approx=True)
        head_outs.append(jnp.dot(p.astype(bf16), v_b[:, sl],
                                 preferred_element_type=f32))      # (L, dh)
    attn = jnp.concatenate(head_outs, axis=-1)                     # (L, inner)

    attn_out = jnp.dot(attn.astype(bf16), wout_ref[...],
                       preferred_element_type=f32)                 # (L, D)
    lat1 = lat + attn_out                                          # residual

    # --- FeedForward ----------------------------------------------------------
    hdd = _layernorm_f32(lat1, lng_ref[...], lnb_ref[...], eps)
    h1 = jnp.dot(hdd.astype(bf16), w1_ref[...], preferred_element_type=f32)
    h1 = _gelu_exact(h1)
    ff = jnp.dot(h1.astype(bf16), w2_ref[...], preferred_element_type=f32)

    o_ref[0] = lat1 + ff                                           # residual


# ----------------------------------------------------------------------------
# Kernel wrappers
# ----------------------------------------------------------------------------
def linear_bias(x2d, w_bf16, b_1m):
    """(N, K) @ (K, M) + (1, M), row-tiled; bf16 MXU, f32 accumulate."""
    n, k = x2d.shape
    m = w_bf16.shape[1]
    tm = _pick_row_tile(n)
    return pl.pallas_call(
        _linear_bias_kernel,
        out_shape=jax.ShapeDtypeStruct((n, m), jnp.float32),
        grid=(n // tm,),
        in_specs=[
            pl.BlockSpec((tm, k), lambda i: (i, 0)),
            pl.BlockSpec((k, m), lambda i: (0, 0)),
            pl.BlockSpec((1, m), lambda i: (0, 0)),
        ],
        out_specs=pl.BlockSpec((tm, m), lambda i: (i, 0)),
        compiler_params=pltpu.CompilerParams(
            dimension_semantics=("parallel",)),
    )(x2d, w_bf16, b_1m)


def proj_out_norm(x2d, w_bf16, b_1m, g_1m, beta_1m, eps=1e-5):
    """Fused proj_out linear (+bias) and norm_out LayerNorm, row-tiled."""
    n, k = x2d.shape
    m = w_bf16.shape[1]
    tm = _pick_row_tile(n)
    kern = functools.partial(_proj_out_norm_kernel, eps=eps)
    return pl.pallas_call(
        kern,
        out_shape=jax.ShapeDtypeStruct((n, m), jnp.float32),
        grid=(n // tm,),
        in_specs=[
            pl.BlockSpec((tm, k), lambda i: (i, 0)),
            pl.BlockSpec((k, m), lambda i: (0, 0)),
            pl.BlockSpec((1, m), lambda i: (0, 0)),
            pl.BlockSpec((1, m), lambda i: (0, 0)),
            pl.BlockSpec((1, m), lambda i: (0, 0)),
        ],
        out_specs=pl.BlockSpec((tm, m), lambda i: (i, 0)),
        compiler_params=pltpu.CompilerParams(
            dimension_semantics=("parallel",)),
    )(x2d, w_bf16, b_1m, g_1m, beta_1m)


def perceiver_layer(x, latents, lp, *, heads, dim_head):
    """One fused Perceiver layer: returns latents after BOTH residual adds."""
    b, n1, d = x.shape
    l = latents.shape[1]
    inner = heads * dim_head
    ffi = lp["w1"].shape[1]
    kern = functools.partial(_layer_kernel, heads=heads, dim_head=dim_head,
                             eps=1e-5)
    return pl.pallas_call(
        kern,
        out_shape=jax.ShapeDtypeStruct((b, l, d), jnp.float32),
        grid=(b,),
        in_specs=[
            pl.BlockSpec((1, n1, d), lambda i: (i, 0, 0)),   # x
            pl.BlockSpec((1, l, d), lambda i: (i, 0, 0)),    # latents
            pl.BlockSpec((1, d), lambda i: (0, 0)),          # norm1_g
            pl.BlockSpec((1, d), lambda i: (0, 0)),          # norm1_b
            pl.BlockSpec((1, d), lambda i: (0, 0)),          # norm2_g
            pl.BlockSpec((1, d), lambda i: (0, 0)),          # norm2_b
            pl.BlockSpec((d, inner), lambda i: (0, 0)),      # wq (pre-scaled)
            pl.BlockSpec((d, 2 * inner), lambda i: (0, 0)),  # wkv
            pl.BlockSpec((inner, d), lambda i: (0, 0)),      # wout
            pl.BlockSpec((1, d), lambda i: (0, 0)),          # ff ln_g
            pl.BlockSpec((1, d), lambda i: (0, 0)),          # ff ln_b
            pl.BlockSpec((d, ffi), lambda i: (0, 0)),        # ff w1
            pl.BlockSpec((ffi, d), lambda i: (0, 0)),        # ff w2
        ],
        out_specs=pl.BlockSpec((1, l, d), lambda i: (i, 0, 0)),
        compiler_params=pltpu.CompilerParams(
            dimension_semantics=("parallel",)),
    )(x, latents,
      lp["norm1_g"], lp["norm1_b"], lp["norm2_g"], lp["norm2_b"],
      lp["wq"], lp["wkv"], lp["wout"],
      lp["ln_g"], lp["ln_b"], lp["w1"], lp["w2"])


# ----------------------------------------------------------------------------
# Module forward
# ----------------------------------------------------------------------------
def resampler_forward(x, params, *, heads, dim_head):
    b, n1, emb = x.shape
    dim = params["proj_in_w"].shape[1]
    nq = params["latents"].shape[1]
    out_dim = params["proj_out_w"].shape[1]

    latents = jnp.broadcast_to(params["latents"], (b, nq, dim))
    x = linear_bias(x.reshape(b * n1, emb),
                    params["proj_in_w"], params["proj_in_b"]).reshape(b, n1, dim)

    # TODO(synk): optionally fuse the whole depth loop into one pallas_call
    # (grid=(B, depth), latents resident via the accumulator pattern) with
    # layer-weight prefetch via make_async_copy when VMEM budget allows.
    for lp in params["layers"]:
        latents = perceiver_layer(x, latents, lp, heads=heads,
                                  dim_head=dim_head)

    out = proj_out_norm(latents.reshape(b * nq, dim),
                        params["proj_out_w"], params["proj_out_b"],
                        params["norm_out_g"], params["norm_out_b"])
    return out.reshape(b, nq, out_dim)


# ----------------------------------------------------------------------------
# Pure-JAX reference (mirrors the PyTorch module, f32 throughout)
# ----------------------------------------------------------------------------
def resampler_reference(x, raw, *, heads, dim_head, eps=1e-5):
    def ln(v, g, b):
        mu = v.mean(-1, keepdims=True)
        var = ((v - mu) ** 2).mean(-1, keepdims=True)
        return (v - mu) / jnp.sqrt(var + eps) * g + b

    b = x.shape[0]
    dim = raw["proj_in_w"].shape[1]
    nq = raw["latents"].shape[1]
    inner = heads * dim_head

    lat = jnp.broadcast_to(raw["latents"], (b, nq, dim))
    x = x @ raw["proj_in_w"] + raw["proj_in_b"]

    def split_heads(t):
        bs, length, _ = t.shape
        return t.reshape(bs, length, heads, dim_head).transpose(0, 2, 1, 3)

    for lay in raw["layers"]:
        a, f = lay["attn"], lay["ff"]
        xn = ln(x, a["norm1_g"], a["norm1_b"])
        latn = ln(lat, a["norm2_g"], a["norm2_b"])
        q = latn @ a["wq"]
        kv_in = jnp.concatenate([xn, latn], axis=1)
        kv = kv_in @ a["wkv"]
        k, v = kv[..., :inner], kv[..., inner:]
        qh, kh, vh = split_heads(q), split_heads(k), split_heads(v)
        scale = 1.0 / math.sqrt(math.sqrt(dim_head))
        w = (qh * scale) @ jnp.swapaxes(kh * scale, -2, -1)
        w = jax.nn.softmax(w, axis=-1)
        o = w @ vh
        o = o.transpose(0, 2, 1, 3).reshape(b, nq, inner)
        lat = lat + o @ a["wout"]
        h = ln(lat, f["ln_g"], f["ln_b"])
        h = jax.nn.gelu(h @ f["w1"], approximate=False)
        lat = lat + h @ f["w2"]

    out = lat @ raw["proj_out_w"] + raw["proj_out_b"]
    return ln(out, raw["norm_out_g"], raw["norm_out_b"])


# ----------------------------------------------------------------------------
# Deterministic parameter construction + kernel-layout preparation
# ----------------------------------------------------------------------------
def init_params(key, *, dim, depth, dim_head, heads, num_queries,
                embedding_dim, output_dim, ff_mult):
    """Torch-layout f32 parameters (synthetic, deterministic)."""
    inner = dim_head * heads
    ff_inner = int(dim * ff_mult)

    def nxt():
        nonlocal key
        key, sub = jax.random.split(key)
        return sub

    def w(shape, scale):
        return jax.random.normal(nxt(), shape, jnp.float32) * scale

    params = {
        "latents": w((1, num_queries, dim), 1.0 / math.sqrt(dim)),
        "proj_in_w": w((embedding_dim, dim), 1.0 / math.sqrt(embedding_dim)),
        "proj_in_b": w((dim,), 0.02),
        "proj_out_w": w((dim, output_dim), 1.0 / math.sqrt(dim)),
        "proj_out_b": w((output_dim,), 0.02),
        "norm_out_g": jnp.ones((output_dim,), jnp.float32),
        "norm_out_b": jnp.zeros((output_dim,), jnp.float32),
        "layers": [],
    }
    for _ in range(depth):
        attn = {
            "norm1_g": jnp.ones((dim,), jnp.float32),
            "norm1_b": jnp.zeros((dim,), jnp.float32),
            "norm2_g": jnp.ones((dim,), jnp.float32),
            "norm2_b": jnp.zeros((dim,), jnp.float32),
            "wq": w((dim, inner), 1.0 / math.sqrt(dim)),
            "wkv": w((dim, 2 * inner), 1.0 / math.sqrt(dim)),
            "wout": w((inner, dim), 1.0 / math.sqrt(inner)),
        }
        ff = {
            "ln_g": jnp.ones((dim,), jnp.float32),
            "ln_b": jnp.zeros((dim,), jnp.float32),
            "w1": w((dim, ff_inner), 1.0 / math.sqrt(dim)),
            "w2": w((ff_inner, dim), 1.0 / math.sqrt(ff_inner)),
        }
        params["layers"].append({"attn": attn, "ff": ff})
    return params


def prepare_params(raw, *, dim_head):
    """Kernel-ready layout: LN params as (1, D) f32, matmul weights bf16,
    attention scale folded into wq ((q*s) @ (k*s)^T == q @ k^T / sqrt(dh))."""
    q_scale = 1.0 / math.sqrt(dim_head)

    def bf(w):
        return w.astype(jnp.bfloat16)

    def row(v):
        return v.reshape(1, -1)

    p = {
        "latents": raw["latents"],
        "proj_in_w": bf(raw["proj_in_w"]),
        "proj_in_b": row(raw["proj_in_b"]),
        "proj_out_w": bf(raw["proj_out_w"]),
        "proj_out_b": row(raw["proj_out_b"]),
        "norm_out_g": row(raw["norm_out_g"]),
        "norm_out_b": row(raw["norm_out_b"]),
        "layers": [],
    }
    for lay in raw["layers"]:
        a, f = lay["attn"], lay["ff"]
        p["layers"].append({
            "norm1_g": row(a["norm1_g"]), "norm1_b": row(a["norm1_b"]),
            "norm2_g": row(a["norm2_g"]), "norm2_b": row(a["norm2_b"]),
            "wq": bf(a["wq"] * q_scale),
            "wkv": bf(a["wkv"]),
            "wout": bf(a["wout"]),
            "ln_g": row(f["ln_g"]), "ln_b": row(f["ln_b"]),
            "w1": bf(f["w1"]),
            "w2": bf(f["w2"]),
        })
    return p


# ----------------------------------------------------------------------------
if __name__ == "__main__":
    # Small, forward-consistent configuration.
    B, N1 = 2, 8                 # batch, number of image tokens
    EMB, DIM, OUT = 48, 64, 64   # embedding_dim, dim, output_dim
    HEADS, DIM_HEAD = 4, 16
    NUM_QUERIES, DEPTH, FF_MULT = 8, 2, 4

    key = jax.random.PRNGKey(0)
    k_x, k_p = jax.random.split(key)

    x = jax.random.normal(k_x, (B, N1, EMB), jnp.float32)
    raw = init_params(k_p, dim=DIM, depth=DEPTH, dim_head=DIM_HEAD,
                      heads=HEADS, num_queries=NUM_QUERIES,
                      embedding_dim=EMB, output_dim=OUT, ff_mult=FF_MULT)
    params = prepare_params(raw, dim_head=DIM_HEAD)

    fwd = jax.jit(functools.partial(resampler_forward,
                                    heads=HEADS, dim_head=DIM_HEAD))
    out = fwd(x, params)
    out = jax.block_until_ready(out)

    assert out.shape == (B, NUM_QUERIES, OUT), out.shape
    assert jnp.all(jnp.isfinite(out))

    # Loose correctness check vs. a pure-f32 JAX reference (kernel uses bf16
    # weights on the MXU, so allow a generous tolerance on the LN-normalised
    # output).
    ref = resampler_reference(x, raw, heads=HEADS, dim_head=DIM_HEAD)
    max_err = float(jnp.max(jnp.abs(out - ref)))
    assert max_err < 0.1, f"max abs error vs reference: {max_err}"

    print("KERNEL_OK")
</pallas_src>

<mosaic_0001>
module attributes {stable_mosaic.version = 11 : i64} {
  func.func @_linear_bias_kernel(%arg0: i32, %arg1: memref<8x48xf32, #tpu.memory_space<vmem>>, %arg2: memref<48x64xbf16, #tpu.memory_space<vmem>>, %arg3: memref<1x64xf32, #tpu.memory_space<vmem>>, %arg4: memref<8x64xf32, #tpu.memory_space<vmem>>) attributes {dimension_semantics = [#tpu.dimension_semantics<parallel>], iteration_bounds = array<i64: 2>, scalar_prefetch = 0 : i64, scratch_operands = 0 : i64, tpu.core_type = #tpu.core_type<tc>, window_params = [{transform_indices = @transform_0, window_bounds = array<i64: 8, 48>}, {pipeline_mode = #tpu.pipeline_mode<synchronous>, transform_indices = @transform_1, window_bounds = array<i64: 48, 64>}, {pipeline_mode = #tpu.pipeline_mode<synchronous>, transform_indices = @transform_2, window_bounds = array<i64: 1, 64>}, {transform_indices = @transform_3, window_bounds = array<i64: 8, 64>}]} {
    %c0 = arith.constant 0 : index
    %c0_0 = arith.constant 0 : index
    %0 = vector.load %arg1[%c0, %c0_0] : memref<8x48xf32, #tpu.memory_space<vmem>>, vector<8x48xf32>
    %1 = arith.truncf %0 : vector<8x48xf32> to vector<8x48xbf16>
    %c0_1 = arith.constant 0 : index
    %c0_2 = arith.constant 0 : index
    %2 = vector.load %arg2[%c0_1, %c0_2] : memref<48x64xbf16, #tpu.memory_space<vmem>>, vector<48x64xbf16>
    %cst = arith.constant dense<0.000000e+00> : vector<8x64xf32>
    %3 = tpu.matmul %1, %2, %cst {dimension_numbers = #tpu.dot_dimension_numbers<[1], [0], [0], [1], [0, 0, 1, 1], [], []>} : vector<8x48xbf16>, vector<48x64xbf16>, vector<8x64xf32> -> vector<8x64xf32>
    %c0_3 = arith.constant 0 : index
    %c0_4 = arith.constant 0 : index
    %4 = vector.load %arg3[%c0_3, %c0_4] : memref<1x64xf32, #tpu.memory_space<vmem>>, vector<1x64xf32>
    %5 = vector.broadcast %4 : vector<1x64xf32> to vector<8x64xf32>
    %6 = arith.addf %3, %5 : vector<8x64xf32>
    %c0_5 = arith.constant 0 : index
    %c0_6 = arith.constant 0 : index
    %7 = vector.load %arg4[%c0_5, %c0_6] : memref<8x64xf32, #tpu.memory_space<vmem>>, vector<8x64xf32>
    tpu.vector_store %arg4[%c0_5, %c0_6], %6 {strides = array<i32>} : memref<8x64xf32, #tpu.memory_space<vmem>>, vector<8x64xf32>,
    return
  }
  func.func @transform_0(%arg0: i32) -> (i32, i32) {
    %c0_i32 = arith.constant 0 : i32
    %c0_i32_0 = arith.constant 0 : i32
    return %arg0, %c0_i32 : i32, i32
  }
  func.func @transform_1(%arg0: i32) -> (i32, i32) {
    %c0_i32 = arith.constant 0 : i32
    %c0_i32_0 = arith.constant 0 : i32
    %c0_i32_1 = arith.constant 0 : i32
    return %c0_i32, %c0_i32_0 : i32, i32
  }
  func.func @transform_2(%arg0: i32) -> (i32, i32) {
    %c0_i32 = arith.constant 0 : i32
    %c0_i32_0 = arith.constant 0 : i32
    %c0_i32_1 = arith.constant 0 : i32
    return %c0_i32, %c0_i32_0 : i32, i32
  }
  func.func @transform_3(%arg0: i32) -> (i32, i32) {
    %c0_i32 = arith.constant 0 : i32
    %c0_i32_0 = arith.constant 0 : i32
    return %arg0, %c0_i32 : i32, i32
  }
}

module attributes {stable_mosaic.version = 11 : i64} {
  func.func @_layer_kernel(%arg0: i32, %arg1: memref<1x8x64xf32, #tpu.memory_space<vmem>>, %arg2: memref<1x8x64xf32, #tpu.memory_space<vmem>>, %arg3: memref<1x64xf32, #tpu.memory_space<vmem>>, %arg4: memref<1x64xf32, #tpu.memory_space<vmem>>, %arg5: memref<1x64xf32, #tpu.memory_space<vmem>>, %arg6: memref<1x64xf32, #tpu.memory_space<vmem>>, %arg7: memref<64x64xbf16, #tpu.memory_space<vmem>>, %arg8: memref<64x128xbf16, #tpu.memory_space<vmem>>, %arg9: memref<64x64xbf16, #tpu.memory_space<vmem>>, %arg10: memref<1x64xf32, #tpu.memory_space<vmem>>, %arg11: memref<1x64xf32, #tpu.memory_space<vmem>>, %arg12: memref<64x256xbf16, #tpu.memory_space<vmem>>, %arg13: memref<256x64xbf16, #tpu.memory_space<vmem>>, %arg14: memref<1x8x64xf32, #tpu.memory_space<vmem>>) attributes {dimension_semantics = [#tpu.dimension_semantics<parallel>], iteration_bounds = array<i64: 2>, scalar_prefetch = 0 : i64, scratch_operands = 0 : i64, tpu.core_type = #tpu.core_type<tc>, window_params = [{transform_indices = @transform_0, window_bounds = array<i64: 1, 8, 64>}, {transform_indices = @transform_1, window_bounds = array<i64: 1, 8, 64>}, {pipeline_mode = #tpu.pipeline_mode<synchronous>, transform_indices = @transform_2, window_bounds = array<i64: 1, 64>}, {pipeline_mode = #tpu.pipeline_mode<synchronous>, transform_indices = @transform_3, window_bounds = array<i64: 1, 64>}, {pipeline_mode = #tpu.pipeline_mode<synchronous>, transform_indices = @transform_4, window_bounds = array<i64: 1, 64>}, {pipeline_mode = #tpu.pipeline_mode<synchronous>, transform_indices = @transform_5, window_bounds = array<i64: 1, 64>}, {pipeline_mode = #tpu.pipeline_mode<synchronous>, transform_indices = @transform_6, window_bounds = array<i64: 64, 64>}, {pipeline_mode = #tpu.pipeline_mode<synchronous>, transform_indices = @transform_7, window_bounds = array<i64: 64, 128>}, {pipeline_mode = #tpu.pipeline_mode<synchronous>, transform_indices = @transform_8, window_bounds = array<i64: 64, 64>}, {pipeline_mode = #tpu.pipeline_mode<synchronous>, transform_indices = @transform_9, window_bounds = array<i64: 1, 64>}, {pipeline_mode = #tpu.pipeline_mode<synchronous>, transform_indices = @transform_10, window_bounds = array<i64: 1, 64>}, {pipeline_mode = #tpu.pipeline_mode<synchronous>, transform_indices = @transform_11, window_bounds = array<i64: 64, 256>}, {pipeline_mode = #tpu.pipeline_mode<synchronous>, transform_indices = @transform_12, window_bounds = array<i64: 256, 64>}, {transform_indices = @transform_13, window_bounds = array<i64: 1, 8, 64>}]} {
    %c0 = arith.constant 0 : index
    %c0_0 = arith.constant 0 : index
    %c0_1 = arith.constant 0 : index
    %0 = vector.load %arg1[%c0, %c0_0, %c0_1] : memref<1x8x64xf32, #tpu.memory_space<vmem>>, vector<1x8x64xf32>
    %1 = vector.shape_cast %0 : vector<1x8x64xf32> to vector<8x64xf32>
    %c0_2 = arith.constant 0 : index
    %c0_3 = arith.constant 0 : index
    %c0_4 = arith.constant 0 : index
    %2 = vector.load %arg2[%c0_2, %c0_3, %c0_4] : memref<1x8x64xf32, #tpu.memory_space<vmem>>, vector<1x8x64xf32>
    %3 = vector.shape_cast %2 : vector<1x8x64xf32> to vector<8x64xf32>
    %c0_5 = arith.constant 0 : index
    %c0_6 = arith.constant 0 : index
    %4 = vector.load %arg3[%c0_5, %c0_6] : memref<1x64xf32, #tpu.memory_space<vmem>>, vector<1x64xf32>
    %c0_7 = arith.constant 0 : index
    %c0_8 = arith.constant 0 : index
    %5 = vector.load %arg4[%c0_7, %c0_8] : memref<1x64xf32, #tpu.memory_space<vmem>>, vector<1x64xf32>
    %cst = arith.constant dense<0.000000e+00> : vector<8xf32>
    %6 = vector.multi_reduction <add>, %1, %cst [1] : vector<8x64xf32> to vector<8xf32>
    %7 = vector.shape_cast %6 : vector<8xf32> to vector<8x1xf32>
    %cst_9 = arith.constant 6.400000e+01 : f32
    %8 = vector.broadcast %cst_9 : f32 to vector<8x1xf32>
    %9 = arith.divf %7, %8 : vector<8x1xf32>
    %10 = vector.broadcast %9 : vector<8x1xf32> to vector<8x64xf32>
    %11 = arith.subf %1, %10 : vector<8x64xf32>
    %12 = vector.broadcast %9 : vector<8x1xf32> to vector<8x64xf32>
    %13 = arith.subf %1, %12 : vector<8x64xf32>
    %14 = arith.mulf %11, %13 : vector<8x64xf32>
    %cst_10 = arith.constant dense<0.000000e+00> : vector<8xf32>
    %15 = vector.multi_reduction <add>, %14, %cst_10 [1] : vector<8x64xf32> to vector<8xf32>
    %16 = vector.shape_cast %15 : vector<8xf32> to vector<8x1xf32>
    %cst_11 = arith.constant 6.400000e+01 : f32
    %17 = vector.broadcast %cst_11 : f32 to vector<8x1xf32>
    %18 = arith.divf %16, %17 : vector<8x1xf32>
    %19 = vector.broadcast %9 : vector<8x1xf32> to vector<8x64xf32>
    %20 = arith.subf %1, %19 : vector<8x64xf32>
    %cst_12 = arith.constant 9.99999974E-6 : f32
    %21 = vector.broadcast %cst_12 : f32 to vector<8x1xf32>
    %22 = arith.addf %18, %21 : vector<8x1xf32>
    %23 = math.rsqrt %22 : vector<8x1xf32>
    %24 = vector.broadcast %23 : vector<8x1xf32> to vector<8x64xf32>
    %25 = arith.mulf %20, %24 : vector<8x64xf32>
    %26 = vector.broadcast %4 : vector<1x64xf32> to vector<8x64xf32>
    %27 = arith.mulf %25, %26 : vector<8x64xf32>
    %28 = vector.broadcast %5 : vector<1x64xf32> to vector<8x64xf32>
    %29 = arith.addf %27, %28 : vector<8x64xf32>
    %c0_13 = arith.constant 0 : index
    %c0_14 = arith.constant 0 : index
    %30 = vector.load %arg5[%c0_13, %c0_14] : memref<1x64xf32, #tpu.memory_space<vmem>>, vector<1x64xf32>
    %c0_15 = arith.constant 0 : index
    %c0_16 = arith.constant 0 : index
    %31 = vector.load %arg6[%c0_15, %c0_16] : memref<1x64xf32, #tpu.memory_space<vmem>>, vector<1x64xf32>
    %cst_17 = arith.constant dense<0.000000e+00> : vector<8xf32>
    %32 = vector.multi_reduction <add>, %3, %cst_17 [1] : vector<8x64xf32> to vector<8xf32>
    %33 = vector.shape_cast %32 : vector<8xf32> to vector<8x1xf32>
    %cst_18 = arith.constant 6.400000e+01 : f32
    %34 = vector.broadcast %cst_18 : f32 to vector<8x1xf32>
    %35 = arith.divf %33, %34 : vector<8x1xf32>
    %36 = vector.broadcast %35 : vector<8x1xf32> to vector<8x64xf32>
    %37 = arith.subf %3, %36 : vector<8x64xf32>
    %38 = vector.broadcast %35 : vector<8x1xf32> to vector<8x64xf32>
    %39 = arith.subf %3, %38 : vector<8x64xf32>
    %40 = arith.mulf %37, %39 : vector<8x64xf32>
    %cst_19 = arith.constant dense<0.000000e+00> : vector<8xf32>
    %41 = vector.multi_reduction <add>, %40, %cst_19 [1] : vector<8x64xf32> to vector<8xf32>
    %42 = vector.shape_cast %41 : vector<8xf32> to vector<8x1xf32>
    %cst_20 = arith.constant 6.400000e+01 : f32
    %43 = vector.broadcast %cst_20 : f32 to vector<8x1xf32>
    %44 = arith.divf %42, %43 : vector<8x1xf32>
    %45 = vector.broadcast %35 : vector<8x1xf32> to vector<8x64xf32>
    %46 = arith.subf %3, %45 : vector<8x64xf32>
    %cst_21 = arith.constant 9.99999974E-6 : f32
    %47 = vector.broadcast %cst_21 : f32 to vector<8x1xf32>
    %48 = arith.addf %44, %47 : vector<8x1xf32>
    %49 = math.rsqrt %48 : vector<8x1xf32>
    %50 = vector.broadcast %49 : vector<8x1xf32> to vector<8x64xf32>
    %51 = arith.mulf %46, %50 : vector<8x64xf32>
    %52 = vector.broadcast %30 : vector<1x64xf32> to vector<8x64xf32>
    %53 = arith.mulf %51, %52 : vector<8x64xf32>
    %54 = vector.broadcast %31 : vector<1x64xf32> to vector<8x64xf32>
    %55 = arith.addf %53, %54 : vector<8x64xf32>
    %56 = arith.truncf %55 : vector<8x64xf32> to vector<8x64xbf16>
    %c0_22 = arith.constant 0 : index
    %c0_23 = arith.constant 0 : index
    %57 = vector.load %arg7[%c0_22, %c0_23] : memref<64x64xbf16, #tpu.memory_space<vmem>>, vector<64x64xbf16>
    %cst_24 = arith.constant dense<0.000000e+00> : vector<8x64xf32>
    %58 = tpu.matmul %56, %57, %cst_24 {dimension_numbers = #tpu.dot_dimension_numbers<[1], [0], [0], [1], [0, 0, 1, 1], [], []>} : vector<8x64xbf16>, vector<64x64xbf16>, vector<8x64xf32> -> vector<8x64xf32>
    %59 = tpu.concatenate %29, %55 in 0 : vector<8x64xf32>, vector<8x64xf32> -> vector<16x64xf32>
    %60 = arith.truncf %59 : vector<16x64xf32> to vector<16x64xbf16>
    %c0_25 = arith.constant 0 : index
    %c0_26 = arith.constant 0 : index
    %61 = vector.load %arg8[%c0_25, %c0_26] : memref<64x128xbf16, #tpu.memory_space<vmem>>, vector<64x128xbf16>
    %cst_27 = arith.constant dense<0.000000e+00> : vector<16x128xf32>
    %62 = tpu.matmul %60, %61, %cst_27 {dimension_numbers = #tpu.dot_dimension_numbers<[1], [0], [0], [1], [0, 0, 1, 1], [], []>} : vector<16x64xbf16>, vector<64x128xbf16>, vector<16x128xf32> -> vector<16x128xf32>
    %63 = vector.extract_strided_slice %62 {offsets = [0, 0], sizes = [16, 64], strides = [1, 1]} : vector<16x128xf32> to vector<16x64xf32>
    %64 = vector.extract_strided_slice %62 {offsets = [0, 64], sizes = [16, 64], strides = [1, 1]} : vector<16x128xf32> to vector<16x64xf32>
    %65 = arith.truncf %58 : vector<8x64xf32> to vector<8x64xbf16>
    %66 = arith.truncf %63 : vector<16x64xf32> to vector<16x64xbf16>
    %67 = arith.truncf %64 : vector<16x64xf32> to vector<16x64xbf16>
    %68 = vector.extract_strided_slice %65 {offsets = [0, 0], sizes = [8, 16], strides = [1, 1]} : vector<8x64xbf16> to vector<8x16xbf16>
    %69 = vector.extract_strided_slice %66 {offsets = [0, 0], sizes = [16, 16], strides = [1, 1]} : vector<16x64xbf16> to vector<16x16xbf16>
    %70 = tpu.transpose %69, [1, 0] : vector<16x16xbf16> -> vector<16x16xbf16>
    %cst_28 = arith.constant dense<0.000000e+00> : vector<8x16xf32>
    %71 = tpu.matmul %68, %70, %cst_28 {dimension_numbers = #tpu.dot_dimension_numbers<[1], [0], [0], [1], [0, 0, 1, 1], [], []>} : vector<8x16xbf16>, vector<16x16xbf16>, vector<8x16xf32> -> vector<8x16xf32>
    %cst_29 = arith.constant dense<0xFF800000> : vector<8xf32>
    %72 = vector.multi_reduction <maximumf>, %71, %cst_29 [1] : vector<8x16xf32> to vector<8xf32>
    %73 = vector.shape_cast %72 : vector<8xf32> to vector<8x1xf32>
    %74 = vector.broadcast %73 : vector<8x1xf32> to vector<8x16xf32>
    %75 = arith.subf %71, %74 : vector<8x16xf32>
    %76 = math.exp %75 : vector<8x16xf32>
    %cst_30 = arith.constant dense<0.000000e+00> : vector<8xf32>
    %77 = vector.multi_reduction <add>, %76, %cst_30 [1] : vector<8x16xf32> to vector<8xf32>
    %78 = vector.shape_cast %77 : vector<8xf32> to vector<8x1xf32>
    %79 = tpu.reciprocal %78 {approx = true} : vector<8x1xf32> -> vector<8x1xf32>
    %80 = vector.broadcast %79 : vector<8x1xf32> to vector<8x16xf32>
    %81 = arith.mulf %76, %80 : vector<8x16xf32>
    %82 = arith.truncf %81 : vector<8x16xf32> to vector<8x16xbf16>
    %83 = vector.extract_strided_slice %67 {offsets = [0, 0], sizes = [16, 16], strides = [1, 1]} : vector<16x64xbf16> to vector<16x16xbf16>
    %cst_31 = arith.constant dense<0.000000e+00> : vector<8x16xf32>
    %84 = tpu.matmul %82, %83, %cst_31 {dimension_numbers = #tpu.dot_dimension_numbers<[1], [0], [0], [1], [0, 0, 1, 1], [], []>} : vector<8x16xbf16>, vector<16x16xbf16>, vector<8x16xf32> -> vector<8x16xf32>
    %85 = vector.extract_strided_slice %65 {offsets = [0, 16], sizes = [8, 16], strides = [1, 1]} : vector<8x64xbf16> to vector<8x16xbf16>
    %86 = vector.extract_strided_slice %66 {offsets = [0, 16], sizes = [16, 16], strides = [1, 1]} : vector<16x64xbf16> to vector<16x16xbf16>
    %87 = tpu.transpose %86, [1, 0] : vector<16x16xbf16> -> vector<16x16xbf16>
    %cst_32 = arith.constant dense<0.000000e+00> : vector<8x16xf32>
    %88 = tpu.matmul %85, %87, %cst_32 {dimension_numbers = #tpu.dot_dimension_numbers<[1], [0], [0], [1], [0, 0, 1, 1], [], []>} : vector<8x16xbf16>, vector<16x16xbf16>, vector<8x16xf32> -> vector<8x16xf32>
    %cst_33 = arith.constant dense<0xFF800000> : vector<8xf32>
    %89 = vector.multi_reduction <maximumf>, %88, %cst_33 [1] : vector<8x16xf32> to vector<8xf32>
    %90 = vector.shape_cast %89 : vector<8xf32> to vector<8x1xf32>
    %91 = vector.broadcast %90 : vector<8x1xf32> to vector<8x16xf32>
    %92 = arith.subf %88, %91 : vector<8x16xf32>
    %93 = math.exp %92 : vector<8x16xf32>
    %cst_34 = arith.constant dense<0.000000e+00> : vector<8xf32>
    %94 = vector.multi_reduction <add>, %93, %cst_34 [1] : vector<8x16xf32> to vector<8xf32>
    %95 = vector.shape_cast %94 : vector<8xf32> to vector<8x1xf32>
    %96 = tpu.reciprocal %95 {approx = true} : vector<8x1xf32> -> vector<8x1xf32>
    %97 = vector.broadcast %96 : vector<8x1xf32> to vector<8x16xf32>
    %98 = arith.mulf %93, %97 : vector<8x16xf32>
    %99 = arith.truncf %98 : vector<8x16xf32> to vector<8x16xbf16>
    %100 = vector.extract_strided_slice %67 {offsets = [0, 16], sizes = [16, 16], strides = [1, 1]} : vector<16x64xbf16> to vector<16x16xbf16>
    %cst_35 = arith.constant dense<0.000000e+00> : vector<8x16xf32>
    %101 = tpu.matmul %99, %100, %cst_35 {dimension_numbers = #tpu.dot_dimension_numbers<[1], [0], [0], [1], [0, 0, 1, 1], [], []>} : vector<8x16xbf16>, vector<16x16xbf16>, vector<8x16xf32> -> vector<8x16xf32>
    %102 = vector.extract_strided_slice %65 {offsets = [0, 32], sizes = [8, 16], strides = [1, 1]} : vector<8x64xbf16> to vector<8x16xbf16>
    %103 = vector.extract_strided_slice %66 {offsets = [0, 32], sizes = [16, 16], strides = [1, 1]} : vector<16x64xbf16> to vector<16x16xbf16>
    %104 = tpu.transpose %103, [1, 0] : vector<16x16xbf16> -> vector<16x16xbf16>
    %cst_36 = arith.constant dense<0.000000e+00> : vector<8x16xf32>
    %105 = tpu.matmul %102, %104, %cst_36 {dimension_numbers = #tpu.dot_dimension_numbers<[1], [0], [0], [1], [0, 0, 1, 1], [], []>} : vector<8x16xbf16>, vector<16x16xbf16>, vector<8x16xf32> -> vector<8x16xf32>
    %cst_37 = arith.constant dense<0xFF800000> : vector<8xf32>
    %106 = vector.multi_reduction <maximumf>, %105, %cst_37 [1] : vector<8x16xf32> to vector<8xf32>
    %107 = vector.shape_cast %106 : vector<8xf32> to vector<8x1xf32>
    %108 = vector.broadcast %107 : vector<8x1xf32> to vector<8x16xf32>
    %109 = arith.subf %105, %108 : vector<8x16xf32>
    %110 = math.exp %109 : vector<8x16xf32>
    %cst_38 = arith.constant dense<0.000000e+00> : vector<8xf32>
    %111 = vector.multi_reduction <add>, %110, %cst_38 [1] : vector<8x16xf32> to vector<8xf32>
    %112 = vector.shape_cast %111 : vector<8xf32> to vector<8x1xf32>
    %113 = tpu.reciprocal %112 {approx = true} : vector<8x1xf32> -> vector<8x1xf32>
    %114 = vector.broadcast %113 : vector<8x1xf32> to vector<8x16xf32>
    %115 = arith.mulf %110, %114 : vector<8x16xf32>
    %116 = arith.truncf %115 : vector<8x16xf32> to vector<8x16xbf16>
    %117 = vector.extract_strided_slice %67 {offsets = [0, 32], sizes = [16, 16], strides = [1, 1]} : vector<16x64xbf16> to vector<16x16xbf16>
    %cst_39 = arith.constant dense<0.000000e+00> : vector<8x16xf32>
    %118 = tpu.matmul %116, %117, %cst_39 {dimension_numbers = #tpu.dot_dimension_numbers<[1], [0], [0], [1], [0, 0, 1, 1], [], []>} : vector<8x16xbf16>, vector<16x16xbf16>, vector<8x16xf32> -> vector<8x16xf32>
    %119 = vector.extract_strided_slice %65 {offsets = [0, 48], sizes = [8, 16], strides = [1, 1]} : vector<8x64xbf16> to vector<8x16xbf16>
    %120 = vector.extract_strided_slice %66 {offsets = [0, 48], sizes = [16, 16], strides = [1, 1]} : vector<16x64xbf16> to vector<16x16xbf16>
    %121 = tpu.transpose %120, [1, 0] : vector<16x16xbf16> -> vector<16x16xbf16>
    %cst_40 = arith.constant dense<0.000000e+00> : vector<8x16xf32>
    %122 = tpu.matmul %119, %121, %cst_40 {dimension_numbers = #tpu.dot_dimension_numbers<[1], [0], [0], [1], [0, 0, 1, 1], [], []>} : vector<8x16xbf16>, vector<16x16xbf16>, vector<8x16xf32> -> vector<8x16xf32>
    %cst_41 = arith.constant dense<0xFF800000> : vector<8xf32>
    %123 = vector.multi_reduction <maximumf>, %122, %cst_41 [1] : vector<8x16xf32> to vector<8xf32>
    %124 = vector.shape_cast %123 : vector<8xf32> to vector<8x1xf32>
    %125 = vector.broadcast %124 : vector<8x1xf32> to vector<8x16xf32>
    %126 = arith.subf %122, %125 : vector<8x16xf32>
    %127 = math.exp %126 : vector<8x16xf32>
    %cst_42 = arith.constant dense<0.000000e+00> : vector<8xf32>
    %128 = vector.multi_reduction <add>, %127, %cst_42 [1] : vector<8x16xf32> to vector<8xf32>
    %129 = vector.shape_cast %128 : vector<8xf32> to vector<8x1xf32>
    %130 = tpu.reciprocal %129 {approx = true} : vector<8x1xf32> -> vector<8x1xf32>
    %131 = vector.broadcast %130 : vector<8x1xf32> to vector<8x16xf32>
    %132 = arith.mulf %127, %131 : vector<8x16xf32>
    %133 = arith.truncf %132 : vector<8x16xf32> to vector<8x16xbf16>
    %134 = vector.extract_strided_slice %67 {offsets = [0, 48], sizes = [16, 16], strides = [1, 1]} : vector<16x64xbf16> to vector<16x16xbf16>
    %cst_43 = arith.constant dense<0.000000e+00> : vector<8x16xf32>
    %135 = tpu.matmul %133, %134, %cst_43 {dimension_numbers = #tpu.dot_dimension_numbers<[1], [0], [0], [1], [0, 0, 1, 1], [], []>} : vector<8x16xbf16>, vector<16x16xbf16>, vector<8x16xf32> -> vector<8x16xf32>
    %136 = tpu.concatenate %84, %101, %118, %135 in 1 : vector<8x16xf32>, vector<8x16xf32>, vector<8x16xf32>, vector<8x16xf32> -> vector<8x64xf32>
    %137 = arith.truncf %136 : vector<8x64xf32> to vector<8x64xbf16>
    %c0_44 = arith.constant 0 : index
    %c0_45 = arith.constant 0 : index
    %138 = vector.load %arg9[%c0_44, %c0_45] : memref<64x64xbf16, #tpu.memory_space<vmem>>, vector<64x64xbf16>
    %cst_46 = arith.constant dense<0.000000e+00> : vector<8x64xf32>
    %139 = tpu.matmul %137, %138, %cst_46 {dimension_numbers = #tpu.dot_dimension_numbers<[1], [0], [0], [1], [0, 0, 1, 1], [], []>} : vector<8x64xbf16>, vector<64x64xbf16>, vector<8x64xf32> -> vector<8x64xf32>
    %140 = arith.addf %3, %139 : vector<8x64xf32>
    %c0_47 = arith.constant 0 : index
    %c0_48 = arith.constant 0 : index
    %141 = vector.load %arg10[%c0_47, %c0_48] : memref<1x64xf32, #tpu.memory_space<vmem>>, vector<1x64xf32>
    %c0_49 = arith.constant 0 : index
    %c0_50 = arith.constant 0 : index
    %142 = vector.load %arg11[%c0_49, %c0_50] : memref<1x64xf32, #tpu.memory_space<vmem>>, vector<1x64xf32>
    %cst_51 = arith.constant dense<0.000000e+00> : vector<8xf32>
    %143 = vector.multi_reduction <add>, %140, %cst_51 [1] : vector<8x64xf32> to vector<8xf32>
    %144 = vector.shape_cast %143 : vector<8xf32> to vector<8x1xf32>
    %cst_52 = arith.constant 6.400000e+01 : f32
    %145 = vector.broadcast %cst_52 : f32 to vector<8x1xf32>
    %146 = arith.divf %144, %145 : vector<8x1xf32>
    %147 = vector.broadcast %146 : vector<8x1xf32> to vector<8x64xf32>
    %148 = arith.subf %140, %147 : vector<8x64xf32>
    %149 = vector.broadcast %146 : vector<8x1xf32> to vector<8x64xf32>
    %150 = arith.subf %140, %149 : vector<8x64xf32>
    %151 = arith.mulf %148, %150 : vector<8x64xf32>
    %cst_53 = arith.constant dense<0.000000e+00> : vector<8xf32>
    %152 = vector.multi_reduction <add>, %151, %cst_53 [1] : vector<8x64xf32> to vector<8xf32>
    %153 = vector.shape_cast %152 : vector<8xf32> to vector<8x1xf32>
    %cst_54 = arith.constant 6.400000e+01 : f32
    %154 = vector.broadcast %cst_54 : f32 to vector<8x1xf32>
    %155 = arith.divf %153, %154 : vector<8x1xf32>
    %156 = vector.broadcast %146 : vector<8x1xf32> to vector<8x64xf32>
    %157 = arith.subf %140, %156 : vector<8x64xf32>
    %cst_55 = arith.constant 9.99999974E-6 : f32
    %158 = vector.broadcast %cst_55 : f32 to vector<8x1xf32>
    %159 = arith.addf %155, %158 : vector<8x1xf32>
    %160 = math.rsqrt %159 : vector<8x1xf32>
    %161 = vector.broadcast %160 : vector<8x1xf32> to vector<8x64xf32>
    %162 = arith.mulf %157, %161 : vector<8x64xf32>
    %163 = vector.broadcast %141 : vector<1x64xf32> to vector<8x64xf32>
    %164 = arith.mulf %162, %163 : vector<8x64xf32>
    %165 = vector.broadcast %142 : vector<1x64xf32> to vector<8x64xf32>
    %166 = arith.addf %164, %165 : vector<8x64xf32>
    %167 = arith.truncf %166 : vector<8x64xf32> to vector<8x64xbf16>
    %c0_56 = arith.constant 0 : index
    %c0_57 = arith.constant 0 : index
    %168 = vector.load %arg12[%c0_56, %c0_57] : memref<64x256xbf16, #tpu.memory_space<vmem>>, vector<64x256xbf16>
    %cst_58 = arith.constant dense<0.000000e+00> : vector<8x256xf32>
    %169 = tpu.matmul %167, %168, %cst_58 {dimension_numbers = #tpu.dot_dimension_numbers<[1], [0], [0], [1], [0, 0, 1, 1], [], []>} : vector<8x64xbf16>, vector<64x256xbf16>, vector<8x256xf32> -> vector<8x256xf32>
    %cst_59 = arith.constant 5.000000e-01 : f32
    %170 = vector.broadcast %cst_59 : f32 to vector<8x256xf32>
    %171 = arith.mulf %170, %169 : vector<8x256xf32>
    %cst_60 = arith.constant 0.707106769 : f32
    %172 = vector.broadcast %cst_60 : f32 to vector<8x256xf32>
    %173 = arith.mulf %169, %172 : vector<8x256xf32>
    %174 = math.erf %173 : vector<8x256xf32>
    %cst_61 = arith.constant 1.000000e+00 : f32
    %175 = vector.broadcast %cst_61 : f32 to vector<8x256xf32>
    %176 = arith.addf %175, %174 : vector<8x256xf32>
    %177 = arith.mulf %171, %176 : vector<8x256xf32>
    %178 = arith.truncf %177 : vector<8x256xf32> to vector<8x256xbf16>
    %c0_62 = arith.constant 0 : index
    %c0_63 = arith.constant 0 : index
    %179 = vector.load %arg13[%c0_62, %c0_63] : memref<256x64xbf16, #tpu.memory_space<vmem>>, vector<256x64xbf16>
    %cst_64 = arith.constant dense<0.000000e+00> : vector<8x64xf32>
    %180 = tpu.matmul %178, %179, %cst_64 {dimension_numbers = #tpu.dot_dimension_numbers<[1], [0], [0], [1], [0, 0, 1, 1], [], []>} : vector<8x256xbf16>, vector<256x64xbf16>, vector<8x64xf32> -> vector<8x64xf32>
    %181 = arith.addf %140, %180 : vector<8x64xf32>
    %c0_65 = arith.constant 0 : index
    %c0_66 = arith.constant 0 : index
    %c0_67 = arith.constant 0 : index
    %182 = vector.load %arg14[%c0_65, %c0_66, %c0_67] : memref<1x8x64xf32, #tpu.memory_space<vmem>>, vector<1x8x64xf32>
    %183 = vector.shape_cast %182 : vector<1x8x64xf32> to vector<8x64xf32>
    %184 = vector.shape_cast %181 : vector<8x64xf32> to vector<1x8x64xf32>
    tpu.vector_store %arg14[%c0_65, %c0_66, %c0_67], %184 {strides = array<i32>} : memref<1x8x64xf32, #tpu.memory_space<vmem>>, vector<1x8x64xf32>,
    return
  }
  func.func @transform_0(%arg0: i32) -> (i32, i32, i32) {
    %c0_i32 = arith.constant 0 : i32
    %c0_i32_0 = arith.constant 0 : i32
    %c0_i32_1 = arith.constant 0 : i32
    return %arg0, %c0_i32, %c0_i32_0 : i32, i32, i32
  }
  func.func @transform_1(%arg0: i32) -> (i32, i32, i32) {
    %c0_i32 = arith.constant 0 : i32
    %c0_i32_0 = arith.constant 0 : i32
    %c0_i32_1 = arith.constant 0 : i32
    return %arg0, %c0_i32, %c0_i32_0 : i32, i32, i32
  }
  func.func @transform_2(%arg0: i32) -> (i32, i32) {
    %c0_i32 = arith.constant 0 : i32
    %c0_i32_0 = arith.constant 0 : i32
    %c0_i32_1 = arith.constant 0 : i32
    return %c0_i32, %c0_i32_0 : i32, i32
  }
  func.func @transform_3(%arg0: i32) -> (i32, i32) {
    %c0_i32 = arith.constant 0 : i32
    %c0_i32_0 = arith.constant 0 : i32
    %c0_i32_1 = arith.constant 0 : i32
    return %c0_i32, %c0_i32_0 : i32, i32
  }
  func.func @transform_4(%arg0: i32) -> (i32, i32) {
    %c0_i32 = arith.constant 0 : i32
    %c0_i32_0 = arith.constant 0 : i32
    %c0_i32_1 = arith.constant 0 : i32
    return %c0_i32, %c0_i32_0 : i32, i32
  }
  func.func @transform_5(%arg0: i32) -> (i32, i32) {
    %c0_i32 = arith.constant 0 : i32
    %c0_i32_0 = arith.constant 0 : i32
    %c0_i32_1 = arith.constant 0 : i32
    return %c0_i32, %c0_i32_0 : i32, i32
  }
  func.func @transform_6(%arg0: i32) -> (i32, i32) {
    %c0_i32 = arith.constant 0 : i32
    %c0_i32_0 = arith.constant 0 : i32
    %c0_i32_1 = arith.constant 0 : i32
    return %c0_i32, %c0_i32_0 : i32, i32
  }
  func.func @transform_7(%arg0: i32) -> (i32, i32) {
    %c0_i32 = arith.constant 0 : i32
    %c0_i32_0 = arith.constant 0 : i32
    %c0_i32_1 = arith.constant 0 : i32
    return %c0_i32, %c0_i32_0 : i32, i32
  }
  func.func @transform_8(%arg0: i32) -> (i32, i32) {
    %c0_i32 = arith.constant 0 : i32
    %c0_i32_0 = arith.constant 0 : i32
    %c0_i32_1 = arith.constant 0 : i32
    return %c0_i32, %c0_i32_0 : i32, i32
  }
  func.func @transform_9(%arg0: i32) -> (i32, i32) {
    %c0_i32 = arith.constant 0 : i32
    %c0_i32_0 = arith.constant 0 : i32
    %c0_i32_1 = arith.constant 0 : i32
    return %c0_i32, %c0_i32_0 : i32, i32
  }
  func.func @transform_10(%arg0: i32) -> (i32, i32) {
    %c0_i32 = arith.constant 0 : i32
    %c0_i32_0 = arith.constant 0 : i32
    %c0_i32_1 = arith.constant 0 : i32
    return %c0_i32, %c0_i32_0 : i32, i32
  }
  func.func @transform_11(%arg0: i32) -> (i32, i32) {
    %c0_i32 = arith.constant 0 : i32
    %c0_i32_0 = arith.constant 0 : i32
    %c0_i32_1 = arith.constant 0 : i32
    return %c0_i32, %c0_i32_0 : i32, i32
  }
  func.func @transform_12(%arg0: i32) -> (i32, i32) {
    %c0_i32 = arith.constant 0 : i32
    %c0_i32_0 = arith.constant 0 : i32
    %c0_i32_1 = arith.constant 0 : i32
    return %c0_i32, %c0_i32_0 : i32, i32
  }
  func.func @transform_13(%arg0: i32) -> (i32, i32, i32) {
    %c0_i32 = arith.constant 0 : i32
    %c0_i32_0 = arith.constant 0 : i32
    %c0_i32_1 = arith.constant 0 : i32
    return %arg0, %c0_i32, %c0_i32_0 : i32, i32, i32
  }
}

module attributes {stable_mosaic.version = 11 : i64} {
  func.func @_layer_kernel(%arg0: i32, %arg1: memref<1x8x64xf32, #tpu.memory_space<vmem>>, %arg2: memref<1x8x64xf32, #tpu.memory_space<vmem>>, %arg3: memref<1x64xf32, #tpu.memory_space<vmem>>, %arg4: memref<1x64xf32, #tpu.memory_space<vmem>>, %arg5: memref<1x64xf32, #tpu.memory_space<vmem>>, %arg6: memref<1x64xf32, #tpu.memory_space<vmem>>, %arg7: memref<64x64xbf16, #tpu.memory_space<vmem>>, %arg8: memref<64x128xbf16, #tpu.memory_space<vmem>>, %arg9: memref<64x64xbf16, #tpu.memory_space<vmem>>, %arg10: memref<1x64xf32, #tpu.memory_space<vmem>>, %arg11: memref<1x64xf32, #tpu.memory_space<vmem>>, %arg12: memref<64x256xbf16, #tpu.memory_space<vmem>>, %arg13: memref<256x64xbf16, #tpu.memory_space<vmem>>, %arg14: memref<1x8x64xf32, #tpu.memory_space<vmem>>) attributes {dimension_semantics = [#tpu.dimension_semantics<parallel>], iteration_bounds = array<i64: 2>, scalar_prefetch = 0 : i64, scratch_operands = 0 : i64, tpu.core_type = #tpu.core_type<tc>, window_params = [{transform_indices = @transform_0, window_bounds = array<i64: 1, 8, 64>}, {transform_indices = @transform_1, window_bounds = array<i64: 1, 8, 64>}, {pipeline_mode = #tpu.pipeline_mode<synchronous>, transform_indices = @transform_2, window_bounds = array<i64: 1, 64>}, {pipeline_mode = #tpu.pipeline_mode<synchronous>, transform_indices = @transform_3, window_bounds = array<i64: 1, 64>}, {pipeline_mode = #tpu.pipeline_mode<synchronous>, transform_indices = @transform_4, window_bounds = array<i64: 1, 64>}, {pipeline_mode = #tpu.pipeline_mode<synchronous>, transform_indices = @transform_5, window_bounds = array<i64: 1, 64>}, {pipeline_mode = #tpu.pipeline_mode<synchronous>, transform_indices = @transform_6, window_bounds = array<i64: 64, 64>}, {pipeline_mode = #tpu.pipeline_mode<synchronous>, transform_indices = @transform_7, window_bounds = array<i64: 64, 128>}, {pipeline_mode = #tpu.pipeline_mode<synchronous>, transform_indices = @transform_8, window_bounds = array<i64: 64, 64>}, {pipeline_mode = #tpu.pipeline_mode<synchronous>, transform_indices = @transform_9, window_bounds = array<i64: 1, 64>}, {pipeline_mode = #tpu.pipeline_mode<synchronous>, transform_indices = @transform_10, window_bounds = array<i64: 1, 64>}, {pipeline_mode = #tpu.pipeline_mode<synchronous>, transform_indices = @transform_11, window_bounds = array<i64: 64, 256>}, {pipeline_mode = #tpu.pipeline_mode<synchronous>, transform_indices = @transform_12, window_bounds = array<i64: 256, 64>}, {transform_indices = @transform_13, window_bounds = array<i64: 1, 8, 64>}]} {
    %c0 = arith.constant 0 : index
    %c0_0 = arith.constant 0 : index
    %c0_1 = arith.constant 0 : index
    %0 = vector.load %arg1[%c0, %c0_0, %c0_1] : memref<1x8x64xf32, #tpu.memory_space<vmem>>, vector<1x8x64xf32>
    %1 = vector.shape_cast %0 : vector<1x8x64xf32> to vector<8x64xf32>
    %c0_2 = arith.constant 0 : index
    %c0_3 = arith.constant 0 : index
    %c0_4 = arith.constant 0 : index
    %2 = vector.load %arg2[%c0_2, %c0_3, %c0_4] : memref<1x8x64xf32, #tpu.memory_space<vmem>>, vector<1x8x64xf32>
    %3 = vector.shape_cast %2 : vector<1x8x64xf32> to vector<8x64xf32>
    %c0_5 = arith.constant 0 : index
    %c0_6 = arith.constant 0 : index
    %4 = vector.load %arg3[%c0_5, %c0_6] : memref<1x64xf32, #tpu.memory_space<vmem>>, vector<1x64xf32>
    %c0_7 = arith.constant 0 : index
    %c0_8 = arith.constant 0 : index
    %5 = vector.load %arg4[%c0_7, %c0_8] : memref<1x64xf32, #tpu.memory_space<vmem>>, vector<1x64xf32>
    %cst = arith.constant dense<0.000000e+00> : vector<8xf32>
    %6 = vector.multi_reduction <add>, %1, %cst [1] : vector<8x64xf32> to vector<8xf32>
    %7 = vector.shape_cast %6 : vector<8xf32> to vector<8x1xf32>
    %cst_9 = arith.constant 6.400000e+01 : f32
    %8 = vector.broadcast %cst_9 : f32 to vector<8x1xf32>
    %9 = arith.divf %7, %8 : vector<8x1xf32>
    %10 = vector.broadcast %9 : vector<8x1xf32> to vector<8x64xf32>
    %11 = arith.subf %1, %10 : vector<8x64xf32>
    %12 = vector.broadcast %9 : vector<8x1xf32> to vector<8x64xf32>
    %13 = arith.subf %1, %12 : vector<8x64xf32>
    %14 = arith.mulf %11, %13 : vector<8x64xf32>
    %cst_10 = arith.constant dense<0.000000e+00> : vector<8xf32>
    %15 = vector.multi_reduction <add>, %14, %cst_10 [1] : vector<8x64xf32> to vector<8xf32>
    %16 = vector.shape_cast %15 : vector<8xf32> to vector<8x1xf32>
    %cst_11 = arith.constant 6.400000e+01 : f32
    %17 = vector.broadcast %cst_11 : f32 to vector<8x1xf32>
    %18 = arith.divf %16, %17 : vector<8x1xf32>
    %19 = vector.broadcast %9 : vector<8x1xf32> to vector<8x64xf32>
    %20 = arith.subf %1, %19 : vector<8x64xf32>
    %cst_12 = arith.constant 9.99999974E-6 : f32
    %21 = vector.broadcast %cst_12 : f32 to vector<8x1xf32>
    %22 = arith.addf %18, %21 : vector<8x1xf32>
    %23 = math.rsqrt %22 : vector<8x1xf32>
    %24 = vector.broadcast %23 : vector<8x1xf32> to vector<8x64xf32>
    %25 = arith.mulf %20, %24 : vector<8x64xf32>
    %26 = vector.broadcast %4 : vector<1x64xf32> to vector<8x64xf32>
    %27 = arith.mulf %25, %26 : vector<8x64xf32>
    %28 = vector.broadcast %5 : vector<1x64xf32> to vector<8x64xf32>
    %29 = arith.addf %27, %28 : vector<8x64xf32>
    %c0_13 = arith.constant 0 : index
    %c0_14 = arith.constant 0 : index
    %30 = vector.load %arg5[%c0_13, %c0_14] : memref<1x64xf32, #tpu.memory_space<vmem>>, vector<1x64xf32>
    %c0_15 = arith.constant 0 : index
    %c0_16 = arith.constant 0 : index
    %31 = vector.load %arg6[%c0_15, %c0_16] : memref<1x64xf32, #tpu.memory_space<vmem>>, vector<1x64xf32>
    %cst_17 = arith.constant dense<0.000000e+00> : vector<8xf32>
    %32 = vector.multi_reduction <add>, %3, %cst_17 [1] : vector<8x64xf32> to vector<8xf32>
    %33 = vector.shape_cast %32 : vector<8xf32> to vector<8x1xf32>
    %cst_18 = arith.constant 6.400000e+01 : f32
    %34 = vector.broadcast %cst_18 : f32 to vector<8x1xf32>
    %35 = arith.divf %33, %34 : vector<8x1xf32>
    %36 = vector.broadcast %35 : vector<8x1xf32> to vector<8x64xf32>
    %37 = arith.subf %3, %36 : vector<8x64xf32>
    %38 = vector.broadcast %35 : vector<8x1xf32> to vector<8x64xf32>
    %39 = arith.subf %3, %38 : vector<8x64xf32>
    %40 = arith.mulf %37, %39 : vector<8x64xf32>
    %cst_19 = arith.constant dense<0.000000e+00> : vector<8xf32>
    %41 = vector.multi_reduction <add>, %40, %cst_19 [1] : vector<8x64xf32> to vector<8xf32>
    %42 = vector.shape_cast %41 : vector<8xf32> to vector<8x1xf32>
    %cst_20 = arith.constant 6.400000e+01 : f32
    %43 = vector.broadcast %cst_20 : f32 to vector<8x1xf32>
    %44 = arith.divf %42, %43 : vector<8x1xf32>
    %45 = vector.broadcast %35 : vector<8x1xf32> to vector<8x64xf32>
    %46 = arith.subf %3, %45 : vector<8x64xf32>
    %cst_21 = arith.constant 9.99999974E-6 : f32
    %47 = vector.broadcast %cst_21 : f32 to vector<8x1xf32>
    %48 = arith.addf %44, %47 : vector<8x1xf32>
    %49 = math.rsqrt %48 : vector<8x1xf32>
    %50 = vector.broadcast %49 : vector<8x1xf32> to vector<8x64xf32>
    %51 = arith.mulf %46, %50 : vector<8x64xf32>
    %52 = vector.broadcast %30 : vector<1x64xf32> to vector<8x64xf32>
    %53 = arith.mulf %51, %52 : vector<8x64xf32>
    %54 = vector.broadcast %31 : vector<1x64xf32> to vector<8x64xf32>
    %55 = arith.addf %53, %54 : vector<8x64xf32>
    %56 = arith.truncf %55 : vector<8x64xf32> to vector<8x64xbf16>
    %c0_22 = arith.constant 0 : index
    %c0_23 = arith.constant 0 : index
    %57 = vector.load %arg7[%c0_22, %c0_23] : memref<64x64xbf16, #tpu.memory_space<vmem>>, vector<64x64xbf16>
    %cst_24 = arith.constant dense<0.000000e+00> : vector<8x64xf32>
    %58 = tpu.matmul %56, %57, %cst_24 {dimension_numbers = #tpu.dot_dimension_numbers<[1], [0], [0], [1], [0, 0, 1, 1], [], []>} : vector<8x64xbf16>, vector<64x64xbf16>, vector<8x64xf32> -> vector<8x64xf32>
    %59 = tpu.concatenate %29, %55 in 0 : vector<8x64xf32>, vector<8x64xf32> -> vector<16x64xf32>
    %60 = arith.truncf %59 : vector<16x64xf32> to vector<16x64xbf16>
    %c0_25 = arith.constant 0 : index
    %c0_26 = arith.constant 0 : index
    %61 = vector.load %arg8[%c0_25, %c0_26] : memref<64x128xbf16, #tpu.memory_space<vmem>>, vector<64x128xbf16>
    %cst_27 = arith.constant dense<0.000000e+00> : vector<16x128xf32>
    %62 = tpu.matmul %60, %61, %cst_27 {dimension_numbers = #tpu.dot_dimension_numbers<[1], [0], [0], [1], [0, 0, 1, 1], [], []>} : vector<16x64xbf16>, vector<64x128xbf16>, vector<16x128xf32> -> vector<16x128xf32>
    %63 = vector.extract_strided_slice %62 {offsets = [0, 0], sizes = [16, 64], strides = [1, 1]} : vector<16x128xf32> to vector<16x64xf32>
    %64 = vector.extract_strided_slice %62 {offsets = [0, 64], sizes = [16, 64], strides = [1, 1]} : vector<16x128xf32> to vector<16x64xf32>
    %65 = arith.truncf %58 : vector<8x64xf32> to vector<8x64xbf16>
    %66 = arith.truncf %63 : vector<16x64xf32> to vector<16x64xbf16>
    %67 = arith.truncf %64 : vector<16x64xf32> to vector<16x64xbf16>
    %68 = vector.extract_strided_slice %65 {offsets = [0, 0], sizes = [8, 16], strides = [1, 1]} : vector<8x64xbf16> to vector<8x16xbf16>
    %69 = vector.extract_strided_slice %66 {offsets = [0, 0], sizes = [16, 16], strides = [1, 1]} : vector<16x64xbf16> to vector<16x16xbf16>
    %70 = tpu.transpose %69, [1, 0] : vector<16x16xbf16> -> vector<16x16xbf16>
    %cst_28 = arith.constant dense<0.000000e+00> : vector<8x16xf32>
    %71 = tpu.matmul %68, %70, %cst_28 {dimension_numbers = #tpu.dot_dimension_numbers<[1], [0], [0], [1], [0, 0, 1, 1], [], []>} : vector<8x16xbf16>, vector<16x16xbf16>, vector<8x16xf32> -> vector<8x16xf32>
    %cst_29 = arith.constant dense<0xFF800000> : vector<8xf32>
    %72 = vector.multi_reduction <maximumf>, %71, %cst_29 [1] : vector<8x16xf32> to vector<8xf32>
    %73 = vector.shape_cast %72 : vector<8xf32> to vector<8x1xf32>
    %74 = vector.broadcast %73 : vector<8x1xf32> to vector<8x16xf32>
    %75 = arith.subf %71, %74 : vector<8x16xf32>
    %76 = math.exp %75 : vector<8x16xf32>
    %cst_30 = arith.constant dense<0.000000e+00> : vector<8xf32>
    %77 = vector.multi_reduction <add>, %76, %cst_30 [1] : vector<8x16xf32> to vector<8xf32>
    %78 = vector.shape_cast %77 : vector<8xf32> to vector<8x1xf32>
    %79 = tpu.reciprocal %78 {approx = true} : vector<8x1xf32> -> vector<8x1xf32>
    %80 = vector.broadcast %79 : vector<8x1xf32> to vector<8x16xf32>
    %81 = arith.mulf %76, %80 : vector<8x16xf32>
    %82 = arith.truncf %81 : vector<8x16xf32> to vector<8x16xbf16>
    %83 = vector.extract_strided_slice %67 {offsets = [0, 0], sizes = [16, 16], strides = [1, 1]} : vector<16x64xbf16> to vector<16x16xbf16>
    %cst_31 = arith.constant dense<0.000000e+00> : vector<8x16xf32>
    %84 = tpu.matmul %82, %83, %cst_31 {dimension_numbers = #tpu.dot_dimension_numbers<[1], [0], [0], [1], [0, 0, 1, 1], [], []>} : vector<8x16xbf16>, vector<16x16xbf16>, vector<8x16xf32> -> vector<8x16xf32>
    %85 = vector.extract_strided_slice %65 {offsets = [0, 16], sizes = [8, 16], strides = [1, 1]} : vector<8x64xbf16> to vector<8x16xbf16>
    %86 = vector.extract_strided_slice %66 {offsets = [0, 16], sizes = [16, 16], strides = [1, 1]} : vector<16x64xbf16> to vector<16x16xbf16>
    %87 = tpu.transpose %86, [1, 0] : vector<16x16xbf16> -> vector<16x16xbf16>
    %cst_32 = arith.constant dense<0.000000e+00> : vector<8x16xf32>
    %88 = tpu.matmul %85, %87, %cst_32 {dimension_numbers = #tpu.dot_dimension_numbers<[1], [0], [0], [1], [0, 0, 1, 1], [], []>} : vector<8x16xbf16>, vector<16x16xbf16>, vector<8x16xf32> -> vector<8x16xf32>
    %cst_33 = arith.constant dense<0xFF800000> : vector<8xf32>
    %89 = vector.multi_reduction <maximumf>, %88, %cst_33 [1] : vector<8x16xf32> to vector<8xf32>
    %90 = vector.shape_cast %89 : vector<8xf32> to vector<8x1xf32>
    %91 = vector.broadcast %90 : vector<8x1xf32> to vector<8x16xf32>
    %92 = arith.subf %88, %91 : vector<8x16xf32>
    %93 = math.exp %92 : vector<8x16xf32>
    %cst_34 = arith.constant dense<0.000000e+00> : vector<8xf32>
    %94 = vector.multi_reduction <add>, %93, %cst_34 [1] : vector<8x16xf32> to vector<8xf32>
    %95 = vector.shape_cast %94 : vector<8xf32> to vector<8x1xf32>
    %96 = tpu.reciprocal %95 {approx = true} : vector<8x1xf32> -> vector<8x1xf32>
    %97 = vector.broadcast %96 : vector<8x1xf32> to vector<8x16xf32>
    %98 = arith.mulf %93, %97 : vector<8x16xf32>
    %99 = arith.truncf %98 : vector<8x16xf32> to vector<8x16xbf16>
    %100 = vector.extract_strided_slice %67 {offsets = [0, 16], sizes = [16, 16], strides = [1, 1]} : vector<16x64xbf16> to vector<16x16xbf16>
    %cst_35 = arith.constant dense<0.000000e+00> : vector<8x16xf32>
    %101 = tpu.matmul %99, %100, %cst_35 {dimension_numbers = #tpu.dot_dimension_numbers<[1], [0], [0], [1], [0, 0, 1, 1], [], []>} : vector<8x16xbf16>, vector<16x16xbf16>, vector<8x16xf32> -> vector<8x16xf32>
    %102 = vector.extract_strided_slice %65 {offsets = [0, 32], sizes = [8, 16], strides = [1, 1]} : vector<8x64xbf16> to vector<8x16xbf16>
    %103 = vector.extract_strided_slice %66 {offsets = [0, 32], sizes = [16, 16], strides = [1, 1]} : vector<16x64xbf16> to vector<16x16xbf16>
    %104 = tpu.transpose %103, [1, 0] : vector<16x16xbf16> -> vector<16x16xbf16>
    %cst_36 = arith.constant dense<0.000000e+00> : vector<8x16xf32>
    %105 = tpu.matmul %102, %104, %cst_36 {dimension_numbers = #tpu.dot_dimension_numbers<[1], [0], [0], [1], [0, 0, 1, 1], [], []>} : vector<8x16xbf16>, vector<16x16xbf16>, vector<8x16xf32> -> vector<8x16xf32>
    %cst_37 = arith.constant dense<0xFF800000> : vector<8xf32>
    %106 = vector.multi_reduction <maximumf>, %105, %cst_37 [1] : vector<8x16xf32> to vector<8xf32>
    %107 = vector.shape_cast %106 : vector<8xf32> to vector<8x1xf32>
    %108 = vector.broadcast %107 : vector<8x1xf32> to vector<8x16xf32>
    %109 = arith.subf %105, %108 : vector<8x16xf32>
    %110 = math.exp %109 : vector<8x16xf32>
    %cst_38 = arith.constant dense<0.000000e+00> : vector<8xf32>
    %111 = vector.multi_reduction <add>, %110, %cst_38 [1] : vector<8x16xf32> to vector<8xf32>
    %112 = vector.shape_cast %111 : vector<8xf32> to vector<8x1xf32>
    %113 = tpu.reciprocal %112 {approx = true} : vector<8x1xf32> -> vector<8x1xf32>
    %114 = vector.broadcast %113 : vector<8x1xf32> to vector<8x16xf32>
    %115 = arith.mulf %110, %114 : vector<8x16xf32>
    %116 = arith.truncf %115 : vector<8x16xf32> to vector<8x16xbf16>
    %117 = vector.extract_strided_slice %67 {offsets = [0, 32], sizes = [16, 16], strides = [1, 1]} : vector<16x64xbf16> to vector<16x16xbf16>
    %cst_39 = arith.constant dense<0.000000e+00> : vector<8x16xf32>
    %118 = tpu.matmul %116, %117, %cst_39 {dimension_numbers = #tpu.dot_dimension_numbers<[1], [0], [0], [1], [0, 0, 1, 1], [], []>} : vector<8x16xbf16>, vector<16x16xbf16>, vector<8x16xf32> -> vector<8x16xf32>
    %119 = vector.extract_strided_slice %65 {offsets = [0, 48], sizes = [8, 16], strides = [1, 1]} : vector<8x64xbf16> to vector<8x16xbf16>
    %120 = vector.extract_strided_slice %66 {offsets = [0, 48], sizes = [16, 16], strides = [1, 1]} : vector<16x64xbf16> to vector<16x16xbf16>
    %121 = tpu.transpose %120, [1, 0] : vector<16x16xbf16> -> vector<16x16xbf16>
    %cst_40 = arith.constant dense<0.000000e+00> : vector<8x16xf32>
    %122 = tpu.matmul %119, %121, %cst_40 {dimension_numbers = #tpu.dot_dimension_numbers<[1], [0], [0], [1], [0, 0, 1, 1], [], []>} : vector<8x16xbf16>, vector<16x16xbf16>, vector<8x16xf32> -> vector<8x16xf32>
    %cst_41 = arith.constant dense<0xFF800000> : vector<8xf32>
    %123 = vector.multi_reduction <maximumf>, %122, %cst_41 [1] : vector<8x16xf32> to vector<8xf32>
    %124 = vector.shape_cast %123 : vector<8xf32> to vector<8x1xf32>
    %125 = vector.broadcast %124 : vector<8x1xf32> to vector<8x16xf32>
    %126 = arith.subf %122, %125 : vector<8x16xf32>
    %127 = math.exp %126 : vector<8x16xf32>
    %cst_42 = arith.constant dense<0.000000e+00> : vector<8xf32>
    %128 = vector.multi_reduction <add>, %127, %cst_42 [1] : vector<8x16xf32> to vector<8xf32>
    %129 = vector.shape_cast %128 : vector<8xf32> to vector<8x1xf32>
    %130 = tpu.reciprocal %129 {approx = true} : vector<8x1xf32> -> vector<8x1xf32>
    %131 = vector.broadcast %130 : vector<8x1xf32> to vector<8x16xf32>
    %132 = arith.mulf %127, %131 : vector<8x16xf32>
    %133 = arith.truncf %132 : vector<8x16xf32> to vector<8x16xbf16>
    %134 = vector.extract_strided_slice %67 {offsets = [0, 48], sizes = [16, 16], strides = [1, 1]} : vector<16x64xbf16> to vector<16x16xbf16>
    %cst_43 = arith.constant dense<0.000000e+00> : vector<8x16xf32>
    %135 = tpu.matmul %133, %134, %cst_43 {dimension_numbers = #tpu.dot_dimension_numbers<[1], [0], [0], [1], [0, 0, 1, 1], [], []>} : vector<8x16xbf16>, vector<16x16xbf16>, vector<8x16xf32> -> vector<8x16xf32>
    %136 = tpu.concatenate %84, %101, %118, %135 in 1 : vector<8x16xf32>, vector<8x16xf32>, vector<8x16xf32>, vector<8x16xf32> -> vector<8x64xf32>
    %137 = arith.truncf %136 : vector<8x64xf32> to vector<8x64xbf16>
    %c0_44 = arith.constant 0 : index
    %c0_45 = arith.constant 0 : index
    %138 = vector.load %arg9[%c0_44, %c0_45] : memref<64x64xbf16, #tpu.memory_space<vmem>>, vector<64x64xbf16>
    %cst_46 = arith.constant dense<0.000000e+00> : vector<8x64xf32>
    %139 = tpu.matmul %137, %138, %cst_46 {dimension_numbers = #tpu.dot_dimension_numbers<[1], [0], [0], [1], [0, 0, 1, 1], [], []>} : vector<8x64xbf16>, vector<64x64xbf16>, vector<8x64xf32> -> vector<8x64xf32>
    %140 = arith.addf %3, %139 : vector<8x64xf32>
    %c0_47 = arith.constant 0 : index
    %c0_48 = arith.constant 0 : index
    %141 = vector.load %arg10[%c0_47, %c0_48] : memref<1x64xf32, #tpu.memory_space<vmem>>, vector<1x64xf32>
    %c0_49 = arith.constant 0 : index
    %c0_50 = arith.constant 0 : index
    %142 = vector.load %arg11[%c0_49, %c0_50] : memref<1x64xf32, #tpu.memory_space<vmem>>, vector<1x64xf32>
    %cst_51 = arith.constant dense<0.000000e+00> : vector<8xf32>
    %143 = vector.multi_reduction <add>, %140, %cst_51 [1] : vector<8x64xf32> to vector<8xf32>
    %144 = vector.shape_cast %143 : vector<8xf32> to vector<8x1xf32>
    %cst_52 = arith.constant 6.400000e+01 : f32
    %145 = vector.broadcast %cst_52 : f32 to vector<8x1xf32>
    %146 = arith.divf %144, %145 : vector<8x1xf32>
    %147 = vector.broadcast %146 : vector<8x1xf32> to vector<8x64xf32>
    %148 = arith.subf %140, %147 : vector<8x64xf32>
    %149 = vector.broadcast %146 : vector<8x1xf32> to vector<8x64xf32>
    %150 = arith.subf %140, %149 : vector<8x64xf32>
    %151 = arith.mulf %148, %150 : vector<8x64xf32>
    %cst_53 = arith.constant dense<0.000000e+00> : vector<8xf32>
    %152 = vector.multi_reduction <add>, %151, %cst_53 [1] : vector<8x64xf32> to vector<8xf32>
    %153 = vector.shape_cast %152 : vector<8xf32> to vector<8x1xf32>
    %cst_54 = arith.constant 6.400000e+01 : f32
    %154 = vector.broadcast %cst_54 : f32 to vector<8x1xf32>
    %155 = arith.divf %153, %154 : vector<8x1xf32>
    %156 = vector.broadcast %146 : vector<8x1xf32> to vector<8x64xf32>
    %157 = arith.subf %140, %156 : vector<8x64xf32>
    %cst_55 = arith.constant 9.99999974E-6 : f32
    %158 = vector.broadcast %cst_55 : f32 to vector<8x1xf32>
    %159 = arith.addf %155, %158 : vector<8x1xf32>
    %160 = math.rsqrt %159 : vector<8x1xf32>
    %161 = vector.broadcast %160 : vector<8x1xf32> to vector<8x64xf32>
    %162 = arith.mulf %157, %161 : vector<8x64xf32>
    %163 = vector.broadcast %141 : vector<1x64xf32> to vector<8x64xf32>
    %164 = arith.mulf %162, %163 : vector<8x64xf32>
    %165 = vector.broadcast %142 : vector<1x64xf32> to vector<8x64xf32>
    %166 = arith.addf %164, %165 : vector<8x64xf32>
    %167 = arith.truncf %166 : vector<8x64xf32> to vector<8x64xbf16>
    %c0_56 = arith.constant 0 : index
    %c0_57 = arith.constant 0 : index
    %168 = vector.load %arg12[%c0_56, %c0_57] : memref<64x256xbf16, #tpu.memory_space<vmem>>, vector<64x256xbf16>
    %cst_58 = arith.constant dense<0.000000e+00> : vector<8x256xf32>
    %169 = tpu.matmul %167, %168, %cst_58 {dimension_numbers = #tpu.dot_dimension_numbers<[1], [0], [0], [1], [0, 0, 1, 1], [], []>} : vector<8x64xbf16>, vector<64x256xbf16>, vector<8x256xf32> -> vector<8x256xf32>
    %cst_59 = arith.constant 5.000000e-01 : f32
    %170 = vector.broadcast %cst_59 : f32 to vector<8x256xf32>
    %171 = arith.mulf %170, %169 : vector<8x256xf32>
    %cst_60 = arith.constant 0.707106769 : f32
    %172 = vector.broadcast %cst_60 : f32 to vector<8x256xf32>
    %173 = arith.mulf %169, %172 : vector<8x256xf32>
    %174 = math.erf %173 : vector<8x256xf32>
    %cst_61 = arith.constant 1.000000e+00 : f32
    %175 = vector.broadcast %cst_61 : f32 to vector<8x256xf32>
    %176 = arith.addf %175, %174 : vector<8x256xf32>
    %177 = arith.mulf %171, %176 : vector<8x256xf32>
    %178 = arith.truncf %177 : vector<8x256xf32> to vector<8x256xbf16>
    %c0_62 = arith.constant 0 : index
    %c0_63 = arith.constant 0 : index
    %179 = vector.load %arg13[%c0_62, %c0_63] : memref<256x64xbf16, #tpu.memory_space<vmem>>, vector<256x64xbf16>
    %cst_64 = arith.constant dense<0.000000e+00> : vector<8x64xf32>
    %180 = tpu.matmul %178, %179, %cst_64 {dimension_numbers = #tpu.dot_dimension_numbers<[1], [0], [0], [1], [0, 0, 1, 1], [], []>} : vector<8x256xbf16>, vector<256x64xbf16>, vector<8x64xf32> -> vector<8x64xf32>
    %181 = arith.addf %140, %180 : vector<8x64xf32>
    %c0_65 = arith.constant 0 : index
    %c0_66 = arith.constant 0 : index
    %c0_67 = arith.constant 0 : index
    %182 = vector.load %arg14[%c0_65, %c0_66, %c0_67] : memref<1x8x64xf32, #tpu.memory_space<vmem>>, vector<1x8x64xf32>
    %183 = vector.shape_cast %182 : vector<1x8x64xf32> to vector<8x64xf32>
    %184 = vector.shape_cast %181 : vector<8x64xf32> to vector<1x8x64xf32>
    tpu.vector_store %arg14[%c0_65, %c0_66, %c0_67], %184 {strides = array<i32>} : memref<1x8x64xf32, #tpu.memory_space<vmem>>, vector<1x8x64xf32>,
    return
  }
  func.func @transform_0(%arg0: i32) -> (i32, i32, i32) {
    %c0_i32 = arith.constant 0 : i32
    %c0_i32_0 = arith.constant 0 : i32
    %c0_i32_1 = arith.constant 0 : i32
    return %arg0, %c0_i32, %c0_i32_0 : i32, i32, i32
  }
  func.func @transform_1(%arg0: i32) -> (i32, i32, i32) {
    %c0_i32 = arith.constant 0 : i32
    %c0_i32_0 = arith.constant 0 : i32
    %c0_i32_1 = arith.constant 0 : i32
    return %arg0, %c0_i32, %c0_i32_0 : i32, i32, i32
  }
  func.func @transform_2(%arg0: i32) -> (i32, i32) {
    %c0_i32 = arith.constant 0 : i32
    %c0_i32_0 = arith.constant 0 : i32
    %c0_i32_1 = arith.constant 0 : i32
    return %c0_i32, %c0_i32_0 : i32, i32
  }
  func.func @transform_3(%arg0: i32) -> (i32, i32) {
    %c0_i32 = arith.constant 0 : i32
    %c0_i32_0 = arith.constant 0 : i32
    %c0_i32_1 = arith.constant 0 : i32
    return %c0_i32, %c0_i32_0 : i32, i32
  }
  func.func @transform_4(%arg0: i32) -> (i32, i32) {
    %c0_i32 = arith.constant 0 : i32
    %c0_i32_0 = arith.constant 0 : i32
    %c0_i32_1 = arith.constant 0 : i32
    return %c0_i32, %c0_i32_0 : i32, i32
  }
  func.func @transform_5(%arg0: i32) -> (i32, i32) {
    %c0_i32 = arith.constant 0 : i32
    %c0_i32_0 = arith.constant 0 : i32
    %c0_i32_1 = arith.constant 0 : i32
    return %c0_i32, %c0_i32_0 : i32, i32
  }
  func.func @transform_6(%arg0: i32) -> (i32, i32) {
    %c0_i32 = arith.constant 0 : i32
    %c0_i32_0 = arith.constant 0 : i32
    %c0_i32_1 = arith.constant 0 : i32
    return %c0_i32, %c0_i32_0 : i32, i32
  }
  func.func @transform_7(%arg0: i32) -> (i32, i32) {
    %c0_i32 = arith.constant 0 : i32
    %c0_i32_0 = arith.constant 0 : i32
    %c0_i32_1 = arith.constant 0 : i32
    return %c0_i32, %c0_i32_0 : i32, i32
  }
  func.func @transform_8(%arg0: i32) -> (i32, i32) {
    %c0_i32 = arith.constant 0 : i32
    %c0_i32_0 = arith.constant 0 : i32
    %c0_i32_1 = arith.constant 0 : i32
    return %c0_i32, %c0_i32_0 : i32, i32
  }
  func.func @transform_9(%arg0: i32) -> (i32, i32) {
    %c0_i32 = arith.constant 0 : i32
    %c0_i32_0 = arith.constant 0 : i32
    %c0_i32_1 = arith.constant 0 : i32
    return %c0_i32, %c0_i32_0 : i32, i32
  }
  func.func @transform_10(%arg0: i32) -> (i32, i32) {
    %c0_i32 = arith.constant 0 : i32
    %c0_i32_0 = arith.constant 0 : i32
    %c0_i32_1 = arith.constant 0 : i32
    return %c0_i32, %c0_i32_0 : i32, i32
  }
  func.func @transform_11(%arg0: i32) -> (i32, i32) {
    %c0_i32 = arith.constant 0 : i32
    %c0_i32_0 = arith.constant 0 : i32
    %c0_i32_1 = arith.constant 0 : i32
    return %c0_i32, %c0_i32_0 : i32, i32
  }
  func.func @transform_12(%arg0: i32) -> (i32, i32) {
    %c0_i32 = arith.constant 0 : i32
    %c0_i32_0 = arith.constant 0 : i32
    %c0_i32_1 = arith.constant 0 : i32
    return %c0_i32, %c0_i32_0 : i32, i32
  }
  func.func @transform_13(%arg0: i32) -> (i32, i32, i32) {
    %c0_i32 = arith.constant 0 : i32
    %c0_i32_0 = arith.constant 0 : i32
    %c0_i32_1 = arith.constant 0 : i32
    return %arg0, %c0_i32, %c0_i32_0 : i32, i32, i32
  }
}

module attributes {stable_mosaic.version = 11 : i64} {
  func.func @_proj_out_norm_kernel(%arg0: i32, %arg1: memref<8x64xf32, #tpu.memory_space<vmem>>, %arg2: memref<64x64xbf16, #tpu.memory_space<vmem>>, %arg3: memref<1x64xf32, #tpu.memory_space<vmem>>, %arg4: memref<1x64xf32, #tpu.memory_space<vmem>>, %arg5: memref<1x64xf32, #tpu.memory_space<vmem>>, %arg6: memref<8x64xf32, #tpu.memory_space<vmem>>) attributes {dimension_semantics = [#tpu.dimension_semantics<parallel>], iteration_bounds = array<i64: 2>, scalar_prefetch = 0 : i64, scratch_operands = 0 : i64, tpu.core_type = #tpu.core_type<tc>, window_params = [{transform_indices = @transform_0, window_bounds = array<i64: 8, 64>}, {pipeline_mode = #tpu.pipeline_mode<synchronous>, transform_indices = @transform_1, window_bounds = array<i64: 64, 64>}, {pipeline_mode = #tpu.pipeline_mode<synchronous>, transform_indices = @transform_2, window_bounds = array<i64: 1, 64>}, {pipeline_mode = #tpu.pipeline_mode<synchronous>, transform_indices = @transform_3, window_bounds = array<i64: 1, 64>}, {pipeline_mode = #tpu.pipeline_mode<synchronous>, transform_indices = @transform_4, window_bounds = array<i64: 1, 64>}, {transform_indices = @transform_5, window_bounds = array<i64: 8, 64>}]} {
    %c0 = arith.constant 0 : index
    %c0_0 = arith.constant 0 : index
    %0 = vector.load %arg1[%c0, %c0_0] : memref<8x64xf32, #tpu.memory_space<vmem>>, vector<8x64xf32>
    %1 = arith.truncf %0 : vector<8x64xf32> to vector<8x64xbf16>
    %c0_1 = arith.constant 0 : index
    %c0_2 = arith.constant 0 : index
    %2 = vector.load %arg2[%c0_1, %c0_2] : memref<64x64xbf16, #tpu.memory_space<vmem>>, vector<64x64xbf16>
    %cst = arith.constant dense<0.000000e+00> : vector<8x64xf32>
    %3 = tpu.matmul %1, %2, %cst {dimension_numbers = #tpu.dot_dimension_numbers<[1], [0], [0], [1], [0, 0, 1, 1], [], []>} : vector<8x64xbf16>, vector<64x64xbf16>, vector<8x64xf32> -> vector<8x64xf32>
    %c0_3 = arith.constant 0 : index
    %c0_4 = arith.constant 0 : index
    %4 = vector.load %arg3[%c0_3, %c0_4] : memref<1x64xf32, #tpu.memory_space<vmem>>, vector<1x64xf32>
    %5 = vector.broadcast %4 : vector<1x64xf32> to vector<8x64xf32>
    %6 = arith.addf %3, %5 : vector<8x64xf32>
    %c0_5 = arith.constant 0 : index
    %c0_6 = arith.constant 0 : index
    %7 = vector.load %arg4[%c0_5, %c0_6] : memref<1x64xf32, #tpu.memory_space<vmem>>, vector<1x64xf32>
    %c0_7 = arith.constant 0 : index
    %c0_8 = arith.constant 0 : index
    %8 = vector.load %arg5[%c0_7, %c0_8] : memref<1x64xf32, #tpu.memory_space<vmem>>, vector<1x64xf32>
    %cst_9 = arith.constant dense<0.000000e+00> : vector<8xf32>
    %9 = vector.multi_reduction <add>, %6, %cst_9 [1] : vector<8x64xf32> to vector<8xf32>
    %10 = vector.shape_cast %9 : vector<8xf32> to vector<8x1xf32>
    %cst_10 = arith.constant 6.400000e+01 : f32
    %11 = vector.broadcast %cst_10 : f32 to vector<8x1xf32>
    %12 = arith.divf %10, %11 : vector<8x1xf32>
    %13 = vector.broadcast %12 : vector<8x1xf32> to vector<8x64xf32>
    %14 = arith.subf %6, %13 : vector<8x64xf32>
    %15 = vector.broadcast %12 : vector<8x1xf32> to vector<8x64xf32>
    %16 = arith.subf %6, %15 : vector<8x64xf32>
    %17 = arith.mulf %14, %16 : vector<8x64xf32>
    %cst_11 = arith.constant dense<0.000000e+00> : vector<8xf32>
    %18 = vector.multi_reduction <add>, %17, %cst_11 [1] : vector<8x64xf32> to vector<8xf32>
    %19 = vector.shape_cast %18 : vector<8xf32> to vector<8x1xf32>
    %cst_12 = arith.constant 6.400000e+01 : f32
    %20 = vector.broadcast %cst_12 : f32 to vector<8x1xf32>
    %21 = arith.divf %19, %20 : vector<8x1xf32>
    %22 = vector.broadcast %12 : vector<8x1xf32> to vector<8x64xf32>
    %23 = arith.subf %6, %22 : vector<8x64xf32>
    %cst_13 = arith.constant 9.99999974E-6 : f32
    %24 = vector.broadcast %cst_13 : f32 to vector<8x1xf32>
    %25 = arith.addf %21, %24 : vector<8x1xf32>
    %26 = math.rsqrt %25 : vector<8x1xf32>
    %27 = vector.broadcast %26 : vector<8x1xf32> to vector<8x64xf32>
    %28 = arith.mulf %23, %27 : vector<8x64xf32>
    %29 = vector.broadcast %7 : vector<1x64xf32> to vector<8x64xf32>
    %30 = arith.mulf %28, %29 : vector<8x64xf32>
    %31 = vector.broadcast %8 : vector<1x64xf32> to vector<8x64xf32>
    %32 = arith.addf %30, %31 : vector<8x64xf32>
    %c0_14 = arith.constant 0 : index
    %c0_15 = arith.constant 0 : index
    %33 = vector.load %arg6[%c0_14, %c0_15] : memref<8x64xf32, #tpu.memory_space<vmem>>, vector<8x64xf32>
    tpu.vector_store %arg6[%c0_14, %c0_15], %32 {strides = array<i32>} : memref<8x64xf32, #tpu.memory_space<vmem>>, vector<8x64xf32>,
    return
  }
  func.func @transform_0(%arg0: i32) -> (i32, i32) {
    %c0_i32 = arith.constant 0 : i32
    %c0_i32_0 = arith.constant 0 : i32
    return %arg0, %c0_i32 : i32, i32
  }
  func.func @transform_1(%arg0: i32) -> (i32, i32) {
    %c0_i32 = arith.constant 0 : i32
    %c0_i32_0 = arith.constant 0 : i32
    %c0_i32_1 = arith.constant 0 : i32
    return %c0_i32, %c0_i32_0 : i32, i32
  }
  func.func @transform_2(%arg0: i32) -> (i32, i32) {
    %c0_i32 = arith.constant 0 : i32
    %c0_i32_0 = arith.constant 0 : i32
    %c0_i32_1 = arith.constant 0 : i32
    return %c0_i32, %c0_i32_0 : i32, i32
  }
  func.func @transform_3(%arg0: i32) -> (i32, i32) {
    %c0_i32 = arith.constant 0 : i32
    %c0_i32_0 = arith.constant 0 : i32
    %c0_i32_1 = arith.constant 0 : i32
    return %c0_i32, %c0_i32_0 : i32, i32
  }
  func.func @transform_4(%arg0: i32) -> (i32, i32) {
    %c0_i32 = arith.constant 0 : i32
    %c0_i32_0 = arith.constant 0 : i32
    %c0_i32_1 = arith.constant 0 : i32
    return %c0_i32, %c0_i32_0 : i32, i32
  }
  func.func @transform_5(%arg0: i32) -> (i32, i32) {
    %c0_i32 = arith.constant 0 : i32
    %c0_i32_0 = arith.constant 0 : i32
    return %arg0, %c0_i32 : i32, i32
  }
}

</mosaic_0001>

<bundles_post_ra>
// kernel: resampler_forward.4
= control target key start
LH: loop header
LB: loop body
LE: loop exit
PB: predicated region body
PF: predicated region fallthrough
CT: control target
= control target key end

     0   :  { %8 = vsyncpa [#allocation3], 0  ;;  %s640_s0 = inlined_call_operand.hbm [shape: f32[16,48], index: 0, kind: input, shape index: {}]   ;;  %s641_s1 = inlined_call_operand.hbm [shape: bf16[48,64], index: 1, kind: input, shape index: {}]   ;;  %s642_s2 = inlined_call_operand.vmem [shape: f32[1,64], index: 2, kind: input, shape index: {}]   ;;  %s643_s3 = inlined_call_operand.vmem [shape: f32[16,64], index: 3, kind: output, shape index: {}]  }
   0x1   :  { %10 = vsyncpa [#allocation3 + $0x1], 0 }
   0x2   :  { %11 = vsyncpa [#allocation5], 0  ;;  %s534_s12 = smov 0   ;;  %s536_s13 = smov 0  }
   0x3   :  { %s538_s14 = smov 0   ;;  %s540_s15 = smov 0  }
   0x4 LB: > { %s127_s18 = sshll.u32 %s641_s1, 4  ;;  %s556_s19 = sadd.s32 4294967295, %s509_s15   ;;  %s509_s15 = sphi %s540_s15, %s650_s15   ;;  %s505_s14 = sphi %s538_s14, %s649_s14   ;;  %s501_s13 = sphi %s536_s13, %s648_s13   ;;  %s497_s12 = sphi %s534_s12, %s647_s12   ;;  %s128_s18 = int_to_ptr.hbm [resolvable:$true] %s127_s18 }
   0x5   : > { %p331_p0 = scmp.ge.s32.totalorder %s509_s15, 1  ;;  %p38_p1 = scmp.eq.s32.totalorder %s556_s19, 0 }
   0x6   : > { %p116_p2 = scmp.lt.s32.totalorder %s509_s15, 3  ;;  %s511_s21 = smov [#allocation4]  }
   0x7   : > { %s129_s22 = sshll.u32 %s511_s21, 4  ;;  %s512_s23 = smov 64   ;;  %s130_s22 = int_to_ptr.vmem [resolvable:$true] %s129_s22 }
   0x8   : > { %p561_p3 = pnand %p331_p0, %p116_p2  ;;  %s513_s24 = smov 4  }
   0x9   : > { %s570_s25 = sadd.s32 1, %s509_s15   ;;  %s24_s27 = sadd.s32 1, %s505_s14 }
   0xa   : > { %p364_p4 = pneg %p561_p3  ;;  %s21_s26 = ssub.s32 %s509_s15, %s570_s25 }
   0xb   : > { %p22_p6 = scmp.eq.s32.totalorder %s21_s26, 0  ;;  %p31_p7 = scmp.ne.s32.totalorder %s505_s14, %s501_s13 }
   0xc   : > { %p365_p5 = pnand %p364_p4, %p38_p1  ;;  %p32_p8 = scmp.eq.s32.totalorder %s509_s15, 0 }
   0xd   : > { %p37_p9 = scmp.ne.s32.totalorder %s501_s13, %s497_s12  ;;  %p373_p12 = scmp.lt.s32.totalorder %s509_s15, 2 }
   0xe   : > { %367 = dma.hbm_to_vmem [thread:$0]  (!%p365_p5), %s128_s18, 384, %s130_s22, [#allocation5], %s512_s23, %s512_s23, %s513_s24  }
   0xf   : > { %s580_s28 = scalar_select %p22_p6, %s505_s14, %s24_s27  }
  0x10   : > { %p33_p10 = por %p32_p8, %p31_p7  ;;  %p584_p11 = por %p38_p1, %p37_p9 }
  0x11   : > { %s146_s30 = sand.u32 1, %s505_s14   ;;  %s335_s5 = sshll.u32 %s509_s15, 3 }
  0x12   : > { %s334_s4 = sshll.u32 %s146_s30, 3  ;;  %s154_s8 = scalar_lea.hbm %s640_s0, %s335_s5 }
  0x13   : > { %s150_s9 = scalar_lea.vmem [#allocation2], %s334_s4  ;;  %s156_s11 = sshll.u32 %s154_s8, 4  ;;  %s157_s11 = int_to_ptr.hbm [resolvable:$true] %s156_s11 }
  0x14   : > { %s158_s10 = sshll.u32 %s150_s9, 4  ;;  %p594_p13 = pnand %p373_p12, %p33_p10  ;;  %s159_s10 = int_to_ptr.vmem [resolvable:$true] %s158_s10 }
  0x15   : > { %s147_s16 = scalar_lea.sflag [#allocation3], %s146_s30  ;;  %s441_s17 = sshra.s32 %s157_s11, 4  ;;  %s442_s17 = int_to_ptr.hbm [resolvable:$true] %s441_s17 }
  0x16   : > { %s443_s18 = scalar_lea.hbm %s442_s17, 8  ;;  %p445_p2 = pneg %p594_p13 }
  0x17   : > { %p444_p0 = scmp.ne.s32.totalorder %s442_s17, %s443_s18  ;;  %s448_s22 = scalar_lea.hbm %s640_s0, 16 }
  0x18   : > { %p449_p6 = scmp.lt.s32.totalorder %s442_s17, %s640_s0  ;;  %p450_p7 = scmp.lt.s32.totalorder %s448_s22, %s443_s18 }
  0x19   : > { %p446_p4 = pnand %p445_p2, %p444_p0 }
  0x1a   : > { %p451_p8 = por %p450_p7, %p449_p6 }
  0x1b   : > { %p447_p5 = pneg %p446_p4 }
  0x1d   : > { %p452_p9 = pnand %p451_p8, %p447_p5 }
  0x1f   : > { %455 = shalt.err (!%p452_p9)
}
  0x20   : > { %371 = dma.hbm_to_vmem [thread:$0]  (!%p594_p13), %s157_s11, 128, %s159_s10, %s147_s16  }
  0x21   : > { %167 = sbr.rel (%p561_p3) target bundleno = 187 (0xbb), region = 32  ;;  %s169_s26 = sand.u32 (!%p561_p3), 1, %s501_s13  }
  0x22   : > { %s337_s27 = sshll.u32 (!%p561_p3), %s169_s26, 3  ;;  %s170_s30 = scalar_lea.sflag (!%p561_p3), [#allocation3], %s169_s26 }
  0x23   : > { %s173_s4 = scalar_lea.vmem (!%p561_p3), [#allocation2], %s337_s27 }
  0x26   : > { %488 = dma.done.wait (%p584_p11), %s170_s30, 128  }
  0x27   : > { %490 = vsyncadd (%p584_p11), %s170_s30, 4294967168 }
  0x28   : > { %492 = dma.done.wait (%p38_p1), [#allocation5], 384  }
  0x29   : > { %494 = vsyncadd (%p38_p1), [#allocation5], 4294966912  ;;  %v357_v0 = vld [vmem:[#allocation4 + $0x10] sm:$0xff]  ;;  %v356_v1 = vld [vmem:[#allocation4 + $0x8] sm:$0xff]  ;;  %vm236_vm0 = vcmask 392192   ;;  %p201_p3 = scmp.lt.s32.totalorder %s556_s19, 1 }
  0x2a   : > { %245 = vmatpush.bf16.msra.mxu0 %v357_v0  ;;  %v355_v2 = vld [vmem:[#allocation4] sm:$0xff]  ;;  %v206_v3 = vld [vmem:[%s173_s4] sm:$0xff]  ;;  %vm253_vm1 = vcmask 523264  }
  0x2b   : > { %v207_v4 = vpack.c.bf16 %v206_v3, %v206_v3  ;;  %s652_s19 = smov (!%p201_p3, %s556_s19), 1  ;;  %v410_v5 = vld [vmem:[%s642_s2] ss:$0 sm:$0xff] }
  0x2c   : > { %s339_s20 = sshll.u32 %s652_s19, 3 }
  0x2d   : > { %s204_s8 = scalar_lea.vmem %s643_s3, %s339_s20 }
  0x2e   : > { %246 = vmatpush.bf16.msra.mxu0 %v356_v1 }
  0x32   : > { %247 = vmatpush.bf16.msra.mxu0 %v355_v2 }
  0x35   : > { %352 = vmatmul.msk.bf16.vlgmr.msra.gmra.mxu0 %vm236_vm0, %v207_v4 }
  0xb2   : > { %v249_v6 = vpop.f32.mrf.mxu0 }
  0xb3   : > { %v250_v7 = vadd.f32 %v410_v5, %v249_v6 }
  0xb5   : > { %254 = vst.msk [vmem:[%s204_s8] sm:$0xff] %vm253_vm1, %v250_v7 }
  0xba   : > { %v251_v8 = vpop.f32.mrf.mxu0 }
  0xbb PF: > { %p14_p1 = scmp.ge.s32.totalorder %s570_s25, 4   ;;  %s647_s12 = smov %s501_s13 }
  0xbc   : > { %s648_s13 = smov %s505_s14  ;;  %s649_s14 = smov %s580_s28 }
  0xbd   : > { %s650_s15 = smov %s570_s25  ;;  %16 = sbr.rel (!%p14_p1) target bundleno = 4 (0x4), region = 76 }
  0xc2   :  { %274 = vsyncpa [#allocation3], 1 }
  0xc3   :  { %276 = vsyncpa [#allocation3 + $0x1], 1 }
  0xc4   :  { %277 = vsyncpa [#allocation5], 1 }

// kernel: resampler_forward.5
= control target key start
LH: loop header
LB: loop body
LE: loop exit
PB: predicated region body
PF: predicated region fallthrough
CT: control target
= control target key end

     0   :  { %s2423_s0 = inlined_call_operand.vmem [shape: f32[2,8,64], index: 0, kind: input, shape index: {}]   ;;  %s2424_s1 = inlined_call_operand.vmem [shape: f32[2,8,64], index: 1, kind: input, shape index: {}]   ;;  %s2425_s2 = inlined_call_operand.hbm [shape: f32[1,64], index: 2, kind: input, shape index: {}]   ;;  %s2426_s3 = inlined_call_operand.hbm [shape: f32[1,64], index: 3, kind: input, shape index: {}]   ;;  %s2427_s4 = inlined_call_operand.hbm [shape: f32[1,64], index: 4, kind: input, shape index: {}]   ;;  %s2428_s5 = inlined_call_operand.hbm [shape: f32[1,64], index: 5, kind: input, shape index: {}]   ;;  %s2429_s6 = inlined_call_operand.vmem [shape: bf16[64,64], index: 6, kind: input, shape index: {}]   ;;  %s2430_s7 = inlined_call_operand.vmem [shape: bf16[64,128], index: 7, kind: input, shape index: {}]   ;;  %s2431_s8 = inlined_call_operand.vmem [shape: bf16[64,64], index: 8, kind: input, shape index: {}]   ;;  %s2432_s9 = inlined_call_operand.hbm [shape: f32[1,64], index: 9, kind: input, shape index: {}]   ;;  %s2433_s10 = inlined_call_operand.hbm [shape: f32[1,64], index: 10, kind: input, shape index: {}]   ;;  %s2434_s11 = inlined_call_operand.vmem [shape: bf16[64,256], index: 11, kind: input, shape index: {}]   ;;  %s2435_s12 = inlined_call_operand.vmem [shape: bf16[256,64], index: 12, kind: input, shape index: {}]   ;;  %s2436_s13 = inlined_call_operand.vmem [shape: f32[2,8,64], index: 13, kind: output, shape index: {}]  }
   0x1   :  { %2437 = sst [smem:[#allocation16_spill]] %s2425_s2 }
   0x2   :  { %18 = vsyncpa [#allocation3], 0 }
   0x3   :  { %19 = vsyncpa [#allocation5], 0 }
   0x4   :  { %20 = vsyncpa [#allocation8], 0 }
   0x5   :  { %21 = vsyncpa [#allocation11], 0  ;;  %s2103_s25 = smov 0  }
   0x6 LB: > { %s365_s28 = sshll.u32 %s2426_s3, 4  ;;  %s2112_s29 = sadd.s32 4294967295, %s2017_s25   ;;  %s2017_s25 = sphi %s2103_s25, %s27_s25   ;;  %s366_s28 = int_to_ptr.hbm [resolvable:$true] %s365_s28 }
   0x7   : > { %p1489_p0 = scmp.ge.s32.totalorder %s2017_s25, 1  ;;  %p341_p1 = scmp.lt.s32.totalorder %s2017_s25, 3 }
   0x8   : > { %p1747_p2 = scmp.eq.s32.totalorder %s2112_s29, 0  ;;  %s2019_s14 = smov [#allocation4]  }
   0x9   : > { %p2117_p3 = pnand %p1489_p0, %p341_p1  ;;  %s367_s15 = sshll.u32 %s2019_s14, 4  ;;  %s368_s15 = int_to_ptr.vmem [resolvable:$true] %s367_s15 }
   0xa   : > { %s389_s18 = sshll.u32 %s2428_s5, 4  ;;  %s2439_s2 = sld [smem:[#allocation16_spill]]  ;;  %s390_s18 = int_to_ptr.hbm [resolvable:$true] %s389_s18 }
   0xb   : > { %p1728_p4 = pneg %p2117_p3  ;;  %s2020_s23 = smov [#allocation7]  }
   0xc   : > { %s391_s24 = sshll.u32 %s2020_s23, 4  ;;  %s2021_s26 = smov [#allocation2]   ;;  %s392_s24 = int_to_ptr.vmem [resolvable:$true] %s391_s24 }
   0xd   : > { %p2131_p5 = pnand %p1747_p2, %p1728_p4  ;;  %s355_s27 = sshll.u32 %s2021_s26, 4  ;;  %s356_s27 = int_to_ptr.vmem [resolvable:$true] %s355_s27 }
   0xe   : > { %s377_s17 = sshll.u32 %s2427_s4, 4  ;;  %s410_s23 = sshll.u32 %s2432_s9, 4  ;;  %s378_s17 = int_to_ptr.hbm [resolvable:$true] %s377_s17  ;;  %s411_s23 = int_to_ptr.hbm [resolvable:$true] %s410_s23 }
   0xf   : > { %1734 = dma.hbm_to_vmem [thread:$0]  (!%p2131_p5), %s366_s28, 16, %s368_s15, [#allocation5]  }
  0x10   : > { %s353_s21 = sshll.u32 %s2439_s2, 4  ;;  %s2022_s2 = smov [#allocation6]   ;;  %s354_s21 = int_to_ptr.hbm [resolvable:$true] %s353_s21 }
  0x11   : > { %1740 = dma.hbm_to_vmem [thread:$0]  (!%p2131_p5), %s390_s18, 16, %s392_s24, [#allocation8]  }
  0x12   : > { %1731 = dma.hbm_to_vmem [thread:$0]  (!%p2131_p5), %s354_s21, 16, %s356_s27, [#allocation3]  }
  0x13   : > { %s379_s28 = sshll.u32 %s2022_s2, 4  ;;  %s2023_s15 = smov [#allocation9]   ;;  %s380_s28 = int_to_ptr.vmem [resolvable:$true] %s379_s28 }
  0x14   : > { %1737 = dma.hbm_to_vmem [thread:$0]  (!%p2131_p5), %s378_s17, 16, %s380_s28, [#allocation5]  }
  0x15   : > { %s412_s18 = sshll.u32 %s2023_s15, 4  ;;  %s422_s14 = sshll.u32 %s2433_s10, 4  ;;  %s413_s18 = int_to_ptr.vmem [resolvable:$true] %s412_s18  ;;  %s423_s14 = int_to_ptr.hbm [resolvable:$true] %s422_s14 }
  0x16   : > { %1743 = dma.hbm_to_vmem [thread:$0]  (!%p2131_p5), %s411_s23, 16, %s413_s18, [#allocation8]  }
  0x17   : > { %s2024_s21 = smov [#allocation10]   ;;  %457 = sbr.rel (%p2117_p3) target bundleno = 2615 (0xa37), region = 72 }
  0x18   : > { %s424_s27 = sshll.u32 %s2024_s21, 4  ;;  %s425_s27 = int_to_ptr.vmem [resolvable:$true] %s424_s27 }
  0x19   : > { %1746 = dma.hbm_to_vmem [thread:$0]  (!%p2131_p5), %s423_s14, 16, %s425_s27, [#allocation11]  }
  0x1c   : > { %2000 = dma.done.wait (%p1747_p2), [#allocation3], 16  }
  0x1d   : > { %2002 = vsyncadd (%p1747_p2), [#allocation3], 4294967280 }
  0x1e   : > { %2004 = dma.done.wait (%p1747_p2), [#allocation5], 32  }
  0x1f   : > { %2006 = vsyncadd (%p1747_p2), [#allocation5], 4294967264 }
  0x20   : > { %2008 = dma.done.wait (%p1747_p2), [#allocation8], 32  }
  0x21   : > { %2010 = vsyncadd (%p1747_p2), [#allocation8], 4294967264 }
  0x22   : > { %2012 = dma.done.wait (%p1747_p2), [#allocation11], 16  }
  0x23   : > { %2014 = vsyncadd (%p1747_p2), [#allocation11], 4294967280  ;;  %p529_p6 = scmp.lt.s32.totalorder %s2112_s29, 1  ;;  %vm546_vm0 = vcmask 523264   ;;  %v2025_v4 = vmov 64.0   ;;  %v1671_v21 = vld [vmem:[%s2429_s6 + $0x18] sm:$0xff] }
  0x24   : > { %1787 = vrcp.f32 %v2025_v4  ;;  %656 = vmatpush.bf16.msra.mxu1 %v1671_v21  ;;  %v1670_v22 = vld [vmem:[%s2429_s6 + $0x10] sm:$0xff]  ;;  %v1669_v23 = vld [vmem:[%s2429_s6 + $0x8] sm:$0xff]  ;;  %v1668_v24 = vld [vmem:[%s2429_s6] sm:$0xff]  ;;  %vm723_vm8 = vcmask 130048   ;;  %s2027_s23 = smov 64   ;;  %s2028_s28 = smov 48  }
  0x25   : > { %s2442_s29 = smov (!%p529_p6, %s2112_s29), 1  ;;  %v1675_v25 = vld [vmem:[%s2430_s7 + $0x18] sm:$0xff]  ;;  %v1674_v27 = vld [vmem:[%s2430_s7 + $0x10] sm:$0xff]  ;;  %v1673_v30 = vld [vmem:[%s2430_s7 + $0x8] sm:$0xff]  ;;  %s2029_s15 = smov 80   ;;  %vm952_vm9 = vcmask 261120  }
  0x26   : > { %s2176_s2 = sshll.u32 %s2442_s29, 3  ;;  %v1672_v32 = vld [vmem:[%s2430_s7] sm:$0xff]  ;;  %s2026_s29 = smov 112   ;;  %vm954_vm10 = vcmask 392192  }
  0x27   : > { %s536_s16 = scalar_lea.vmem %s2424_s1, %s2176_s2  ;;  %s532_s20 = scalar_lea.vmem %s2423_s0, %s2176_s2  ;;  %v1781_v43 = vld [vmem:[#allocation6] ss:$0 sm:$0xff]  ;;  %v1782_v47 = vld [vmem:[#allocation7] ss:$0 sm:$0xff]  ;;  %v1783_v56 = vld [vmem:[#allocation2] ss:$0 sm:$0xff] }
  0x28   : > { %v2182_v0 = vld [vmem:[%s536_s16] sm:$0xff]  ;;  %657 = vmatpush.bf16.msra.mxu1 %v1670_v22  ;;  %s2030_s18 = smov 96   ;;  %s2031_s24 = smov 32  }
  0x29   : > { %v586_v1 = vsel %vm546_vm0, %v2182_v0, 0.0  ;;  %v542_v2 = vld [vmem:[%s532_s20] sm:$0xff]  ;;  %s2032_s26 = smov 16  }
  0x2a   : > { %587 = vadd.xlane.f32.xlu0 %v586_v1  ;;  %v547_v3 = vsel %vm546_vm0, %v542_v2, 0.0  ;;  %v1788_v5 = vpop.eup %1787  ;;  %v1784_v58 = vld [vmem:[#allocation4] ss:$0 sm:$0xff] }
  0x2b   : > { %v551_v6 = vmul.f32 64.0, %v1788_v5  ;;  %vm555_vm1 = vweird.f32 %v1788_v5 }
  0x2c   : > { %658 = vmatpush.bf16.msra.mxu1 %v1669_v23 }
  0x2d   : > { %v552_v7 = vsub.f32 1.0, %v551_v6 }
  0x2f   : > { %v553_v8 = vmul.f32 %v1788_v5, %v552_v7 }
  0x30   : > { %659 = vmatpush.bf16.msra.mxu1 %v1668_v24 }
  0x31   : > { %v554_v9 = vadd.f32 %v1788_v5, %v553_v8 }
  0x32   : > { %548 = vadd.xlane.f32.xlu0 %v547_v3 }
  0x33   : > { %v2191_v10 = vsel %vm555_vm1, %v1788_v5, %v554_v9 }
  0x34   : > { %705 = vmatpush.bf16.msrb.mxu1 %v1675_v25 }
  0x38   : > { %706 = vmatpush.bf16.msrb.mxu1 %v1674_v27 }
  0x3c   : > { %707 = vmatpush.bf16.msrb.mxu1 %v1673_v30 }
  0x40   : > { %708 = vmatpush.bf16.msrb.mxu1 %v1672_v32 }
  0x9d   : > { %v588_v11 = vpop.xlane.xlu0 %587 }
  0x9e   : > { %v589_v12 = vmul.f32 %v588_v11, %v2191_v10 }
  0xa0   : > { %v590_v13 = vsub.f32 %v2182_v0, %v589_v12 }
  0xa2   : > { %v591_v14 = vmul.f32 %v590_v13, %v590_v13 }
  0xa4   : > { %v592_v15 = vsel %vm546_vm0, %v591_v14, 0.0 }
  0xa5   : > { %593 = vadd.xlane.f32.xlu1 %v592_v15  ;;  %v549_v16 = vpop.xlane.xlu0 %548 }
  0xa6   : > { %v557_v17 = vmul.f32 %v2191_v10, %v549_v16 }
  0xa8   : > { %v558_v18 = vsub.f32 %v542_v2, %v557_v17 }
  0xaa   : > { %v559_v19 = vmul.f32 %v558_v18, %v558_v18 }
  0xac   : > { %v560_v20 = vsel %vm546_vm0, %v559_v19, 0.0 }
  0xad   : > { %561 = vadd.xlane.f32.xlu1 %v560_v20 }
 0x118   : > { %v594_v26 = vpop.xlane.xlu1 %593 }
 0x119   : > { %v595_v28 = vmul.f32 %v594_v26, %v2191_v10 }
 0x11b   : > { %v596_v29 = vadd.f32 1e-05, %v595_v28 }
 0x11d   : > { %1789 = vrsqrt.f32 %v596_v29  ;;  %vm603_vm3 = vweird.f32 %v596_v29 }
 0x120   : > { %v562_v31 = vpop.xlane.xlu1 %561 }
 0x121   : > { %v563_v33 = vmul.f32 %v562_v31, %v2191_v10 }
 0x123   : > { %v1790_v34 = vpop.eup %1789  ;;  %v564_v35 = vadd.f32 1e-05, %v563_v33 }
 0x124   : > { %v598_v36 = vmul.f32 %v1790_v34, %v596_v29  ;;  %vm604_vm2 = vweird.f32 %v1790_v34 }
 0x125   : > { %1791 = vrsqrt.f32 %v564_v35  ;;  %vm605_vm4 = vmor %vm603_vm3, %vm604_vm2  ;;  %vm571_vm5 = vweird.f32 %v564_v35 }
 0x126   : > { %v599_v37 = vmul.f32 %v1790_v34, %v598_v36 }
 0x128   : > { %v600_v38 = vmul.f32 0.5, %v599_v37 }
 0x12a   : > { %v601_v39 = vsub.f32 1.5, %v600_v38 }
 0x12b   : > { %v1792_v40 = vpop.eup %1791 }
 0x12c   : > { %v602_v41 = vmul.f32 %v1790_v34, %v601_v39  ;;  %v566_v42 = vmul.f32 %v1792_v40, %v564_v35  ;;  %vm572_vm6 = vweird.f32 %v1792_v40 }
 0x12d   : > { %vm573_vm7 = vmor %vm571_vm5, %vm572_vm6 }
 0x12e   : > { %v606_v44 = vsel %vm605_vm4, %v1790_v34, %v602_v41  ;;  %v567_v45 = vmul.f32 %v1792_v40, %v566_v42 }
 0x12f   : > { %v607_v46 = vmul.f32 %v606_v44, %v590_v13 }
 0x130   : > { %v568_v48 = vmul.f32 0.5, %v567_v45 }
 0x131   : > { %v611_v49 = vmul.f32 %v1781_v43, %v607_v46 }
 0x132   : > { %v569_v50 = vsub.f32 1.5, %v568_v48 }
 0x133   : > { %v615_v51 = vadd.f32 %v1782_v47, %v611_v49 }
 0x134   : > { %v570_v52 = vmul.f32 %v1792_v40, %v569_v50 }
 0x135   : > { %v616_v53 = vpack.c.bf16 %v615_v51, %v615_v51 }
 0x136   : > { %v574_v54 = vsel %vm573_vm7, %v1792_v40, %v570_v52 }
 0x137   : > { %1523 = vmatmul.msk.bf16.vlgmr.msra.gmra.mxu1 %vm546_vm0, %v616_v53  ;;  %v575_v55 = vmul.f32 %v574_v54, %v558_v18 }
 0x139   : > { %v579_v57 = vmul.f32 %v1783_v56, %v575_v55 }
 0x13b   : > { %v583_v59 = vadd.f32 %v1784_v58, %v579_v57 }
 0x13d   : > { %v665_v60 = vpack.c.bf16 %v615_v51, %v583_v59 }
 0x147   : > { %1540 = vmatmul.msk.bf16.vlgmr.msrb.gmra.mxu1 %vm546_vm0, %v665_v60 }
 0x1b4   : > { %v661_v61 = vpop.f32.mrf.mxu1 }
 0x1b5   : > { %v715_v8 = vpack.c.bf16 %v661_v61, %v661_v61 }
 0x1b7   : > { %v775_v9 = vunpack.c.l.b16 %v715_v8 }
 0x1b9   : > { %v776_v11 = vpack.c.b16 %v775_v9, %v775_v9 }
 0x1bc   : > { %v663_v62 = vpop.f32.mrf.mxu1 }
 0x1c4   : > { %v710_v63 = vpop.f32.mrf.mxu1 }
 0x1c5   : > { %v716_v1 = vpack.c.bf16 %v710_v63, %v710_v63 }
 0x1c7   : > { %v720_v4 = vunpack.c.l.b16 %v716_v1 }
 0x1cc   : > { %v712_v2 = vpop.f32.mrf.mxu1 }
 0x1cd   : > { %v717_v3 = vpack.c.bf16 %v712_v2, %v712_v2 }
 0x1cf   : > { %v721_v5 = vunpack.c.l.b16 %v717_v3 }
 0x1d1   : > { %v2226_v6 = vpack.c.b16 %v721_v5, %v720_v4 }
 0x1d3   : > { %779 = vrot.lane.b32.xlu1 %v2226_v6, %s2026_s29  ;;  %755 = vrot.lane.b32.xlu0 %v2226_v6, %s2027_s23  ;;  %v728_v7 = vsel %vm723_vm8, %v2226_v6, 0  ;;  %s540_s23 = scalar_lea.vmem %s2436_s13, %s2176_s2 }
 0x1d4   : > { %737 = vmatpush.bf16.xpose.msra.mxu2 %v728_v7 }
 0x1db   : > { %812 = vrot.lane.b32.xlu1 %v2226_v6, %s2028_s28  ;;  %1541 = vmatmul.msk.bf16.vlgmr.msra.gmra.mxu2 %vm723_vm8, %v715_v8 }
 0x1e3   : > { %887 = vrot.lane.b32.xlu1 %v2226_v6, %s2029_s15 }
 0x1eb   : > { %885 = vrot.lane.b32.xlu1 %v776_v11, %s2029_s15 }
 0x1f3   : > { %833 = vrot.lane.b32.xlu1 %v2226_v6, %s2030_s18 }
 0x1fb   : > { %831 = vrot.lane.b32.xlu1 %v776_v11, %s2030_s18 }
 0x245   : > { %v780_v12 = vpop.permute.xlu1 %779  ;;  %v756_v13 = vpop.permute.xlu0 %755 }
 0x246   : > { %768 = vmatpush.bf16.msra.mxu3 %v756_v13  ;;  %v785_v14 = vsel %vm723_vm8, %v780_v12, 0 }
 0x24a   : > { %794 = vmatpush.bf16.xpose.msrb.mxu3 %v785_v14 }
 0x24d   : > { %v813_v15 = vpop.permute.xlu1 %812 }
 0x255   : > { %v888_v16 = vpop.permute.xlu1 %887 }
 0x256   : > { %v893_v37 = vsel %vm723_vm8, %v888_v16, 0 }
 0x25d   : > { %v886_v17 = vpop.permute.xlu1 %885 }
 0x25e   : > { %v739_v18 = vpop.f32.mrf.mxu2 }
 0x25f   : > { %v743_v19 = vsel %vm723_vm8, %v739_v18, -inf }
 0x260   : > { %744 = vmax.xlane.f32.xlu2 %v743_v19  ;;  %v1677_v19 = vld [vmem:[%s2431_s8 + $0x8] sm:$0xff] }
 0x265   : > { %v834_v20 = vpop.permute.xlu1 %833 }
 0x266   : > { %v741_v21 = vpop.f32.mrf.mxu2  ;;  %v839_v22 = vsel %vm723_vm8, %v834_v20, 0 }
 0x267   : > { %848 = vmatpush.bf16.xpose.msra.mxu0 %v839_v22  ;;  %v1676_v22 = vld [vmem:[%s2431_s8] sm:$0xff] }
 0x26d   : > { %v832_v23 = vpop.permute.xlu1 %831 }
 0x26e   : > { %1545 = vmatmul.msk.bf16.vlgmr.msra.gmra.mxu0 %vm723_vm8, %v832_v23 }
 0x2d3   : > { %v745_v24 = vpop.xlane.xlu2 %744 }
 0x2d4   : > { %v746_v25 = vsub.f32 %v739_v18, %v745_v24  ;;  %v1679_v18 = vld [vmem:[%s2431_s8 + $0x18] sm:$0xff] }
 0x2d5   : > { %996 = vmatpush.bf16.msrb.mxu0 %v1679_v18  ;;  %v1703_v18 = vld [vmem:[%s2435_s12 + $0x78] sm:$0xff] }
 0x2d6   : > { %v747_v26 = vmul.f32 1.442695, %v746_v25 }
 0x2d8   : > { %1793 = vpow2.f32 %v747_v26 }
 0x2de   : > { %v1794_v27 = vpop.eup %1793 }
 0x2df   : > { %v749_v28 = vsel %vm723_vm8, %v1794_v27, 0.0 }
 0x2e0   : > { %750 = vadd.xlane.f32.xlu2 %v749_v28 }
 0x2eb   : > { %v850_v29 = vpop.f32.mrf.mxu0 }
 0x2ec   : > { %v854_v30 = vsel %vm723_vm8, %v850_v29, -inf }
 0x2ed   : > { %855 = vmax.xlane.f32.xlu1 %v854_v30 }
 0x2f3   : > { %v852_v31 = vpop.f32.mrf.mxu0 }
 0x2f8   : > { %777 = vrot.lane.b32.xlu2 %v776_v11, %s2026_s29 }
 0x353   : > { %v751_v32 = vpop.xlane.xlu2 %750 }
 0x354   : > { %1795 = vrcp.f32 %v751_v32 }
 0x35a   : > { %v1796_v33 = vpop.eup %1795 }
 0x35b   : > { %v753_v34 = vmul.f32 %v1796_v33, %v1794_v27  ;;  %v778_v36 = vpop.permute.xlu2 %777 }
 0x35d   : > { %v754_v35 = vpack.c.bf16 %v753_v34, %v753_v34 }
 0x35f   : > { %1542 = vmatmul.msk.bf16.vlgmr.msra.gmra.mxu3 %vm723_vm8, %v754_v35 }
 0x360   : > { %825 = vmatpush.bf16.msra.mxu3 %v813_v15  ;;  %v856_v53 = vpop.xlane.xlu1 %855 }
 0x361   : > { %v857_v54 = vsub.f32 %v850_v29, %v856_v53 }
 0x363   : > { %v858_v56 = vmul.f32 1.442695, %v857_v54  ;;  %v1578_v54 = vld [vmem:[%s2434_s11 + $0x18] sm:$0xf0] }
 0x36f   : > { %1543 = vmatmul.msk.bf16.vlgmr.msrb.gmra.mxu3 %vm723_vm8, %v778_v36 }
 0x370   : > { %902 = vmatpush.bf16.xpose.msrb.mxu3 %v893_v37 }
 0x3e2   : > { %v2248_v38 = vpop.f32.mrf.mxu3 }
 0x3ea   : > { %v772_v39 = vpop.f32.mrf.mxu3 }
 0x3eb   : > { %v1592_v39 = vld [vmem:[%s2434_s11 + $0x30] sm:$0xf] }
 0x3f2   : > { %v796_v40 = vpop.f32.mrf.mxu3 }
 0x3f3   : > { %v800_v41 = vsel %vm723_vm8, %v796_v40, -inf }
 0x3f4   : > { %801 = vmax.xlane.f32.xlu0 %v800_v41 }
 0x3fa   : > { %v798_v42 = vpop.f32.mrf.mxu3 }
 0x3fb   : > { %v1594_v42 = vld [vmem:[%s2434_s11 + $0x38] sm:$0xf0] }
 0x467   : > { %v802_v43 = vpop.xlane.xlu0 %801 }
 0x468   : > { %v803_v44 = vsub.f32 %v796_v40, %v802_v43  ;;  %v1686_v40 = vld [vmem:[%s2434_s11 + $0x34] sm:$0xf] }
 0x469   : > { %v1597_v43 = vor.u32 %v1686_v40, %v1594_v42 }
 0x46a   : > { %v804_v45 = vmul.f32 1.442695, %v803_v44  ;;  %v1584_v44 = vld [vmem:[%s2434_s11 + $0x20] sm:$0xf] }
 0x46c   : > { %1797 = vpow2.f32 %v804_v45  ;;  %v1685_v45 = vld [vmem:[%s2434_s11 + $0x24] sm:$0xf0] }
 0x472   : > { %v1798_v46 = vpop.eup %1797 }
 0x473   : > { %v806_v47 = vsel %vm723_vm8, %v1798_v46, 0.0 }
 0x474   : > { %807 = vadd.xlane.f32.xlu2 %v806_v47  ;;  %v1585_v47 = vor.u32 %v1685_v45, %v1584_v44 }
 0x4e7   : > { %v808_v48 = vpop.xlane.xlu2 %807 }
 0x4e8   : > { %1799 = vrcp.f32 %v808_v48  ;;  %v1586_v48 = vld [vmem:[%s2434_s11 + $0x28] sm:$0xf0] }
 0x4e9   : > { %1801 = vpow2.f32 %v858_v56  ;;  %v1568_v56 = vld [vmem:[%s2434_s11] sm:$0xf] }
 0x4ee   : > { %v1800_v49 = vpop.eup %1799 }
 0x4ef   : > { %v810_v50 = vmul.f32 %v1800_v49, %v1798_v46  ;;  %v1802_v59 = vpop.eup %1801  ;;  %v1684_v46 = vld [vmem:[%s2434_s11 + $0x24] sm:$0xf] }
 0x4f0   : > { %v860_v61 = vsel %vm723_vm8, %v1802_v59, 0.0  ;;  %v1589_v49 = vor.u32 %v1684_v46, %v1586_v48 }
 0x4f1   : > { %v811_v51 = vpack.c.bf16 %v810_v50, %v810_v50  ;;  %v1576_v50 = vld [vmem:[%s2434_s11 + $0x10] sm:$0xf] }
 0x4f3   : > { %1544 = vmatmul.msk.bf16.vlgmr.msra.gmra.mxu3 %vm723_vm8, %v811_v51  ;;  %v1683_v51 = vld [vmem:[%s2434_s11 + $0x14] sm:$0xf0] }
 0x4f4   : > { %1107 = vmatpush.bf16.msra.mxu3 %v1597_v43  ;;  %v1577_v53 = vor.u32 %v1683_v51, %v1576_v50  ;;  %v1698_v51 = vld [vmem:[%s2435_s12 + $0x50] sm:$0xff] }
 0x4f8   : > { %1108 = vmatpush.bf16.msra.mxu3 %v1589_v49 }
 0x503   : > { %1547 = vmatmul.msk.bf16.vlgmr.msrb.gmra.mxu3 %vm723_vm8, %v886_v17 }
 0x576   : > { %v827_v52 = vpop.f32.mrf.mxu3 }
 0x57e   : > { %v829_v55 = vpop.f32.mrf.mxu3 }
 0x586   : > { %v904_v57 = vpop.f32.mrf.mxu3 }
 0x587   : > { %v908_v58 = vsel %vm723_vm8, %v904_v57, -inf }
 0x588   : > { %909 = vmax.xlane.f32.xlu0 %v908_v58  ;;  %v1680_v58 = vld [vmem:[%s2434_s11 + $0x4] sm:$0xf] }
 0x58e   : > { %v906_v60 = vpop.f32.mrf.mxu3 }
 0x58f   : > { %v1570_v60 = vld [vmem:[%s2434_s11 + $0x8] sm:$0xf0] }
 0x590   : > { %861 = vadd.xlane.f32.xlu0 %v860_v61  ;;  %v1573_v61 = vor.u32 %v1680_v58, %v1570_v60  ;;  %v1697_v60 = vld [vmem:[%s2435_s12 + $0x48] sm:$0xff] }
 0x5a4   : > { %866 = vrot.lane.b32.xlu0 %v2226_v6, %s2031_s24 }
 0x5fb   : > { %v910_v62 = vpop.xlane.xlu0 %909 }
 0x5fc   : > { %v911_v63 = vsub.f32 %v904_v57, %v910_v62  ;;  %v1681_v57 = vld [vmem:[%s2434_s11 + $0x4] sm:$0xf0] }
 0x5fe   : > { %v912_v1 = vmul.f32 1.442695, %v911_v63 }
 0x600   : > { %1803 = vpow2.f32 %v912_v1 }
 0x603   : > { %v862_v4 = vpop.xlane.xlu0 %861 }
 0x604   : > { %1805 = vrcp.f32 %v862_v4 }
 0x606   : > { %v1804_v2 = vpop.eup %1803 }
 0x607   : > { %v914_v3 = vsel %vm723_vm8, %v1804_v2, 0.0 }
 0x608   : > { %915 = vadd.xlane.f32.xlu2 %v914_v3 }
 0x60a   : > { %v1806_v5 = vpop.eup %1805 }
 0x60b   : > { %v864_v7 = vmul.f32 %v1806_v5, %v1802_v59  ;;  %v1569_v59 = vor.u32 %v1681_v57, %v1568_v56  ;;  %v1688_v56 = vld [vmem:[%s2435_s12] sm:$0xff] }
 0x60d   : > { %v865_v9 = vpack.c.bf16 %v864_v7, %v864_v7 }
 0x616   : > { %v867_v8 = vpop.permute.xlu0 %866 }
 0x617   : > { %879 = vmatpush.bf16.msra.mxu1 %v867_v8 }
 0x61a   : > { %1546 = vmatmul.msk.bf16.vlgmr.msra.gmra.mxu1 %vm723_vm8, %v865_v9  ;;  %v1785_v9 = vld [vmem:[#allocation9] ss:$0 sm:$0xff] }
 0x620   : > { %920 = vrot.lane.b32.xlu2 %v2226_v6, %s2032_s26  ;;  %v1678_v6 = vld [vmem:[%s2431_s8 + $0x10] sm:$0xff] }
 0x621   : > { %997 = vmatpush.bf16.msrb.mxu0 %v1678_v6  ;;  %v1693_v6 = vld [vmem:[%s2435_s12 + $0x28] sm:$0xff] }
 0x625   : > { %998 = vmatpush.bf16.msrb.mxu0 %v1677_v19 }
 0x628   : > { %940 = vrot.lane.b32.xlu2 %v827_v52, %s2032_s26  ;;  %v1682_v52 = vld [vmem:[%s2434_s11 + $0x14] sm:$0xf] }
 0x629   : > { %999 = vmatpush.bf16.msrb.mxu0 %v1676_v22  ;;  %v1581_v55 = vor.u32 %v1682_v52, %v1578_v54 }
 0x62b   : > { %1109 = vmatpush.bf16.msra.mxu3 %v1581_v55 }
 0x62d   : > { %1347 = vmatpush.bf16.msra.mxu0 %v1703_v18 }
 0x62f   : > { %1110 = vmatpush.bf16.msra.mxu3 %v1573_v61 }
 0x67b   : > { %v916_v11 = vpop.xlane.xlu2 %915 }
 0x67c   : > { %1807 = vrcp.f32 %v916_v11 }
 0x682   : > { %v1808_v12 = vpop.eup %1807 }
 0x683   : > { %v918_v13 = vmul.f32 %v1808_v12, %v1804_v2  ;;  %v921_v14 = vpop.permute.xlu2 %920 }
 0x684   : > { %933 = vmatpush.bf16.msrb.mxu2 %v921_v14 }
 0x685   : > { %v919_v15 = vpack.c.bf16 %v918_v13, %v918_v13  ;;  %v1786_v13 = vld [vmem:[#allocation10] ss:$0 sm:$0xff] }
 0x687   : > { %1548 = vmatmul.msk.bf16.vlgmr.msrb.gmra.mxu2 %vm723_vm8, %v919_v15 }
 0x68b   : > { %v941_v23 = vpop.permute.xlu2 %940 }
 0x68c   : > { %v951_v25 = vsel %vm723_vm8, %v2248_v38, %v941_v23  ;;  %v1692_v23 = vld [vmem:[%s2435_s12 + $0x20] sm:$0xff] }
 0x697   : > { %v881_v16 = vpop.f32.mrf.mxu1 }
 0x698   : > { %944 = vrot.lane.b32.xlu0 %v881_v16, %s2031_s24 }
 0x69f   : > { %v883_v17 = vpop.f32.mrf.mxu1 }
 0x6a0   : > { %v1694_v17 = vld [vmem:[%s2435_s12 + $0x30] sm:$0xff] }
 0x70a   : > { %v935_v20 = vpop.f32.mrf.mxu2  ;;  %v945_v24 = vpop.permute.xlu0 %944 }
 0x70b   : > { %948 = vrot.lane.b32.xlu2 %v935_v20, %s2028_s28  ;;  %v953_v26 = vsel %vm952_vm9, %v951_v25, %v945_v24  ;;  %v1701_v25 = vld [vmem:[%s2435_s12 + $0x68] sm:$0xff] }
 0x712   : > { %v937_v21 = vpop.f32.mrf.mxu2 }
 0x713   : > { %v1702_v21 = vld [vmem:[%s2435_s12 + $0x70] sm:$0xff] }
 0x714   : > { %1348 = vmatpush.bf16.msra.mxu0 %v1702_v21 }
 0x718   : > { %1349 = vmatpush.bf16.msra.mxu0 %v1701_v25 }
 0x765   : > { %v949_v27 = vpop.permute.xlu2 %948 }
 0x766   : > { %v955_v28 = vsel %vm954_vm10, %v953_v26, %v949_v27 }
 0x767   : > { %v956_v29 = vpack.c.bf16 %v955_v28, %v955_v28 }
 0x769   : > { %1565 = vmatmul.msk.bf16.vlgmr.msrb.gmra.mxu0 %vm546_vm0, %v956_v29  ;;  %v1691_v29 = vld [vmem:[%s2435_s12 + $0x18] sm:$0xff] }
 0x7e6   : > { %v1001_v30 = vpop.f32.mrf.mxu0 }
 0x7e7   : > { %v2278_v31 = vadd.f32 %v1001_v30, %v2182_v0  ;;  %v1687_v0 = vld [vmem:[%s2434_s11 + $0x34] sm:$0xf0] }
 0x7e8   : > { %v1593_v41 = vor.u32 %v1687_v0, %v1592_v39  ;;  %v1690_v39 = vld [vmem:[%s2435_s12 + $0x10] sm:$0xff] }
 0x7e9   : > { %v1008_v32 = vsel %vm546_vm0, %v2278_v31, 0.0 }
 0x7ea   : > { %1009 = vadd.xlane.f32.xlu0 %v1008_v32  ;;  %1094 = vmatpush.bf16.msrb.mxu1 %v1593_v41  ;;  %v1699_v41 = vld [vmem:[%s2435_s12 + $0x58] sm:$0xff] }
 0x7ee   : > { %v1003_v33 = vpop.f32.mrf.mxu0  ;;  %1095 = vmatpush.bf16.msrb.mxu1 %v1585_v47  ;;  %v1689_v47 = vld [vmem:[%s2435_s12 + $0x8] sm:$0xff] }
 0x7f2   : > { %1096 = vmatpush.bf16.msrb.mxu1 %v1577_v53 }
 0x7f6   : > { %1097 = vmatpush.bf16.msrb.mxu1 %v1569_v59 }
 0x85d   : > { %v1010_v34 = vpop.xlane.xlu0 %1009 }
 0x85e   : > { %v1011_v35 = vmul.f32 %v1010_v34, %v2191_v10 }
 0x860   : > { %v1012_v36 = vsub.f32 %v2278_v31, %v1011_v35  ;;  %v1700_v35 = vld [vmem:[%s2435_s12 + $0x60] sm:$0xff] }
 0x861   : > { %1350 = vmatpush.bf16.msra.mxu0 %v1700_v35 }
 0x862   : > { %v1013_v37 = vmul.f32 %v1012_v36, %v1012_v36 }
 0x864   : > { %v1014_v38 = vsel %vm546_vm0, %v1013_v37, 0.0 }
 0x865   : > { %1015 = vadd.xlane.f32.xlu1 %v1014_v38  ;;  %1351 = vmatpush.bf16.msra.mxu0 %v1699_v41 }
 0x869   : > { %1352 = vmatpush.bf16.msra.mxu0 %v1698_v51 }
 0x86d   : > { %1353 = vmatpush.bf16.msra.mxu0 %v1697_v60 }
 0x8d8   : > { %v1016_v62 = vpop.xlane.xlu1 %1015 }
 0x8d9   : > { %v1017_v63 = vmul.f32 %v1016_v62, %v2191_v10  ;;  %v1695_v10 = vld [vmem:[%s2435_s12 + $0x38] sm:$0xff] }
 0x8da   : > { %1334 = vmatpush.bf16.msra.mxu2 %v1695_v10 }
 0x8db   : > { %v1018_v1 = vadd.f32 1e-05, %v1017_v63 }
 0x8dd   : > { %1809 = vrsqrt.f32 %v1018_v1  ;;  %vm1025_vm12 = vweird.f32 %v1018_v1 }
 0x8de   : > { %1335 = vmatpush.bf16.msra.mxu2 %v1694_v17 }
 0x8e2   : > { %1336 = vmatpush.bf16.msra.mxu2 %v1693_v6 }
 0x8e3   : > { %v1810_v2 = vpop.eup %1809 }
 0x8e4   : > { %v1020_v3 = vmul.f32 %v1810_v2, %v1018_v1  ;;  %vm1026_vm11 = vweird.f32 %v1810_v2 }
 0x8e5   : > { %vm1027_vm13 = vmor %vm1025_vm12, %vm1026_vm11 }
 0x8e6   : > { %v1021_v4 = vmul.f32 %v1810_v2, %v1020_v3  ;;  %1337 = vmatpush.bf16.msra.mxu2 %v1692_v23 }
 0x8e8   : > { %v1022_v5 = vmul.f32 0.5, %v1021_v4  ;;  %v1696_v4 = vld [vmem:[%s2435_s12 + $0x40] sm:$0xff] }
 0x8e9   : > { %1354 = vmatpush.bf16.msra.mxu0 %v1696_v4 }
 0x8ea   : > { %v1023_v7 = vsub.f32 1.5, %v1022_v5  ;;  %1338 = vmatpush.bf16.msra.mxu2 %v1691_v29 }
 0x8ec   : > { %v1024_v8 = vmul.f32 %v1810_v2, %v1023_v7 }
 0x8ee   : > { %v1028_v11 = vsel %vm1027_vm13, %v1810_v2, %v1024_v8  ;;  %1339 = vmatpush.bf16.msra.mxu2 %v1690_v39 }
 0x8ef   : > { %v1029_v12 = vmul.f32 %v1028_v11, %v1012_v36 }
 0x8f1   : > { %v1033_v14 = vmul.f32 %v1785_v9, %v1029_v12 }
 0x8f2   : > { %1340 = vmatpush.bf16.msra.mxu2 %v1689_v47 }
 0x8f3   : > { %v1037_v15 = vadd.f32 %v1786_v13, %v1033_v14 }
 0x8f5   : > { %v1038_v16 = vpack.c.bf16 %v1037_v15, %v1037_v15 }
 0x8f6   : > { %1341 = vmatpush.bf16.msra.mxu2 %v1688_v56 }
 0x8f7   : > { %1598 = vmatmul.msk.bf16.vlgmr.msrb.gmra.mxu1 %vm546_vm0, %v1038_v16  ;;  %1599 = vmatmul.msk.bf16.vlgmr.msra.gmra.mxu3 %vm546_vm0, %v1038_v16 }
 0x974   : > { %v2348_v19 = vpop.f32.mrf.mxu1 }
 0x975   : > { %v2351_v20 = vmul.f32 0.70710677, %v2348_v19 }
 0x977   : > { %v1120_v22 = vmul.f32 %v2351_v20, %v2351_v20 }
 0x979   : > { %v2361_v24 = vmin.f32 %v1120_v22, 16.0 }
 0x97a   : > { %v2366_v26 = vpop.f32.mrf.mxu3 }
 0x97b   : > { %v1122_v27 = vmul.f32 2.1237322e-06, %v2361_v24  ;;  %v1133_v28 = vmul.f32 3.8918573e-05, %v2361_v24  ;;  %v2374_v30 = vmul.f32 0.70710677, %v2366_v26 }
 0x97c   : > { %v1101_v32 = vpop.f32.mrf.mxu1  ;;  %v1117_v51 = vmul.f32 0.5, %v2366_v26 }
 0x97d   : > { %v1123_v33 = vadd.f32 0.00028619796, %v1122_v27  ;;  %v1134_v34 = vadd.f32 0.001143296, %v1133_v28  ;;  %v1160_v36 = vmul.f32 %v2374_v30, %v2374_v30 }
 0x97f   : > { %v1124_v37 = vmul.f32 %v1123_v33, %v2361_v24  ;;  %v1135_v38 = vmul.f32 %v1134_v34, %v2361_v24  ;;  %v1161_v0 = vmin.f32 %v1160_v36, 16.0 }
 0x981   : > { %v1136_v40 = vadd.f32 0.014752088, %v1135_v38  ;;  %v1125_v42 = vadd.f32 0.0036580483, %v1124_v37  ;;  %v1162_v43 = vmul.f32 2.1237322e-06, %v1161_v0 }
 0x982   : > { %v1173_v44 = vmul.f32 3.8918573e-05, %v1161_v0  ;;  %v1114_v45 = vpop.f32.mrf.mxu3 }
 0x983   : > { %v1137_v46 = vmul.f32 %v1136_v40, %v2361_v24  ;;  %v1163_v48 = vadd.f32 0.00028619796, %v1162_v43  ;;  %v1126_v52 = vmul.f32 %v1125_v42, %v2361_v24  ;;  %v1116_v43 = vmul.f32 0.5, %v2348_v19 }
 0x984   : > { %v1174_v49 = vadd.f32 0.001143296, %v1173_v44 }
 0x985   : > { %v1138_v50 = vadd.f32 0.112945676, %v1137_v46  ;;  %v1164_v53 = vmul.f32 %v1163_v48, %v1161_v0  ;;  %v1127_v61 = vadd.f32 0.05243302, %v1126_v52 }
 0x986   : > { %v1175_v54 = vmul.f32 %v1174_v49, %v1161_v0 }
 0x987   : > { %v1139_v55 = vmul.f32 %v1138_v50, %v2361_v24  ;;  %v1165_v59 = vadd.f32 0.0036580483, %v1164_v53  ;;  %v1128_v5 = vmul.f32 %v1127_v61, %v2361_v24 }
 0x988   : > { %v1176_v57 = vadd.f32 0.014752088, %v1175_v54 }
 0x989   : > { %v1140_v58 = vadd.f32 0.4994258, %v1139_v55  ;;  %v1166_v3 = vmul.f32 %v1165_v59, %v1161_v0  ;;  %v1129_v11 = vadd.f32 0.18741608, %v1128_v5 }
 0x98a   : > { %v1177_v62 = vmul.f32 %v1176_v57, %v1161_v0 }
 0x98b   : > { %v1141_v63 = vmul.f32 %v1140_v58, %v2361_v24  ;;  %v1167_v9 = vadd.f32 0.05243302, %v1166_v3  ;;  %v1130_v16 = vmul.f32 %v1129_v11, %v2361_v24 }
 0x98c   : > { %v1178_v1 = vadd.f32 0.112945676, %v1177_v62 }
 0x98d   : > { %v1142_v2 = vadd.f32 1.0, %v1141_v63  ;;  %v1168_v15 = vmul.f32 %v1167_v9, %v1161_v0  ;;  %v1131_v21 = vadd.f32 1.1283791, %v1130_v16 }
 0x98e   : > { %v1179_v7 = vmul.f32 %v1178_v1, %v1161_v0 }
 0x98f   : > { %1811 = vrcp.f32 %v1142_v2  ;;  %v1154_v18 = vand.u32 2147483648, %v1142_v2  ;;  %v1169_v6 = vadd.f32 0.18741608, %v1168_v15  ;;  %v1152_v23 = vand.u32 2147483647, %v1142_v2 }
 0x990   : > { %v1180_v8 = vadd.f32 0.4994258, %v1179_v7  ;;  %vm1148_vm15 = vweird.f32 %v1142_v2  ;;  %v1132_v33 = vmul.f32 %v1131_v21, %v2351_v20 }
 0x991   : > { %v1155_v28 = vor.u32 1.1754944e-38, %v1154_v18  ;;  %v1170_v29 = vmul.f32 %v1169_v6, %v1161_v0  ;;  %vm1153_vm2 = vcmp.eq.f32.partialorder %v1152_v23, 8.507059e+37 }
 0x992   : > { %v1181_v12 = vmul.f32 %v1180_v8, %v1161_v0 }
 0x993   : > { %v1171_v38 = vadd.f32 1.1283791, %v1170_v29 }
 0x994   : > { %v1182_v13 = vadd.f32 1.0, %v1181_v12 }
 0x995   : > { %v1812_v14 = vpop.eup %1811  ;;  %v1172_v20 = vmul.f32 %v1171_v38, %v2374_v30 }
 0x996   : > { %v1144_v10 = vmul.f32 %v1812_v14, %v1142_v2  ;;  %1813 = vrcp.f32 %v1182_v13  ;;  %vm1149_vm14 = vweird.f32 %v1812_v14  ;;  %v1194_v37 = vand.u32 2147483648, %v1182_v13 }
 0x997   : > { %vm1150_vm1 = vmor %vm1148_vm15, %vm1149_vm14  ;;  %v1192_v40 = vand.u32 2147483647, %v1182_v13  ;;  %vm1188_vm4 = vweird.f32 %v1182_v13 }
 0x998   : > { %v1145_v17 = vsub.f32 1.0, %v1144_v10  ;;  %v1195_v0 = vor.u32 1.1754944e-38, %v1194_v37 }
 0x999   : > { %vm1193_vm6 = vcmp.eq.f32.partialorder %v1192_v40, 8.507059e+37 }
 0x99a   : > { %v1146_v22 = vmul.f32 %v1812_v14, %v1145_v17 }
 0x99c   : > { %v1814_v25 = vpop.eup %1813  ;;  %v1147_v27 = vadd.f32 %v1812_v14, %v1146_v22 }
 0x99d   : > { %v1184_v32 = vmul.f32 %v1814_v25, %v1182_v13  ;;  %vm1189_vm3 = vweird.f32 %v1814_v25 }
 0x99e   : > { %v1151_v34 = vsel %vm1150_vm1, %v1812_v14, %v1147_v27  ;;  %vm1190_vm5 = vmor %vm1188_vm4, %vm1189_vm3 }
 0x99f   : > { %v1156_v24 = vsel %vm1153_vm2, %v1155_v28, %v1151_v34  ;;  %v1185_v35 = vsub.f32 1.0, %v1184_v32 }
 0x9a0   : > { %v1157_v36 = vmul.f32 %v1156_v24, %v1132_v33 }
 0x9a1   : > { %v1186_v39 = vmul.f32 %v1814_v25, %v1185_v35 }
 0x9a2   : > { %v1600_v41 = vclamps-f32 %v1157_v36, 1.0 }
 0x9a3   : > { %v1187_v42 = vadd.f32 %v1814_v25, %v1186_v39 }
 0x9a4   : > { %v1200_v44 = vadd.f32 1.0, %v1600_v41 }
 0x9a5   : > { %v1191_v45 = vsel %vm1190_vm5, %v1814_v25, %v1187_v42 }
 0x9a6   : > { %v1202_v46 = vmul.f32 %v1200_v44, %v1116_v43  ;;  %v1196_v47 = vsel %vm1193_vm6, %v1195_v0, %v1191_v45 }
 0x9a7   : > { %v1197_v48 = vmul.f32 %v1196_v47, %v1172_v20 }
 0x9a8   : > { %v1204_v49 = vpack.c.bf16 %v1202_v46, %v1202_v46 }
 0x9a9   : > { %v1601_v50 = vclamps-f32 %v1197_v48, 1.0 }
 0x9aa   : > { %1342 = vmatmul.bf16.vlgmr.msra.gmra.mxu2 %v1204_v49 }
 0x9ab   : > { %v1201_v52 = vadd.f32 1.0, %v1601_v50 }
 0x9ad   : > { %v1203_v53 = vmul.f32 %v1201_v52, %v1117_v51 }
 0x9af   : > { %v1205_v54 = vpack.c.bf16 %v1203_v53, %v1203_v53 }
 0x9b1   : > { %1355 = vmatmul.bf16.vlgmr.msra.gmra.mxu0 %v1205_v54 }
 0xa2d   : > { %v1343_v19 = vpop.f32.mrf.mxu2 }
 0xa2e   : > { %v1356_v55 = vpop.f32.mrf.mxu0 }
 0xa2f   : > { %v1357_v56 = vadd.f32 %v1356_v55, %v1343_v19 }
 0xa31   : > { %v1360_v30 = vadd.f32 %v1357_v56, %v2278_v31 }
 0xa33   : > { %1361 = vst.msk [vmem:[%s540_s23] sm:$0xff] %vm546_vm0, %v1360_v30 }
 0xa35   : > { %v1345_v57 = vpop.f32.mrf.mxu2 }
 0xa36   : > { %v1358_v58 = vpop.f32.mrf.mxu0 }
 0xa37 PF: > { %s27_s25 = sadd.s32 1, %s2017_s25  }
 0xa38   : > { %p24_p7 = scmp.ge.s32.totalorder %s27_s25, 4  }
 0xa3a   :  { %26 = sbr.rel (!%p24_p7) target bundleno = 6 (0x6), region = 130 }
 0xa3f   :  { %1381 = vsyncpa [#allocation3], 1 }
 0xa40   :  { %1383 = vsyncpa [#allocation3 + $0x1], 1 }
 0xa41   :  { %1384 = vsyncpa [#allocation5], 1 }
 0xa42   :  { %1385 = vsyncpa [#allocation8], 1 }
 0xa43   :  { %1386 = vsyncpa [#allocation11], 1 }

// kernel: resampler_forward.7
= control target key start
LH: loop header
LB: loop body
LE: loop exit
PB: predicated region body
PF: predicated region fallthrough
CT: control target
= control target key end

     0   :  { %10 = vsyncpa [#allocation3], 0  ;;  %s674_s0 = inlined_call_operand.vmem [shape: f32[16,64], index: 0, kind: input, shape index: {}]   ;;  %s675_s1 = inlined_call_operand.vmem [shape: bf16[64,64], index: 1, kind: input, shape index: {}]   ;;  %s676_s2 = inlined_call_operand.vmem [shape: f32[1,64], index: 2, kind: input, shape index: {}]   ;;  %s677_s3 = inlined_call_operand.vmem [shape: f32[1,64], index: 3, kind: input, shape index: {}]   ;;  %s678_s4 = inlined_call_operand.vmem [shape: f32[1,64], index: 4, kind: input, shape index: {}]   ;;  %s679_s5 = inlined_call_operand.hbm [shape: f32[16,64], index: 5, kind: output, shape index: {}]  }
   0x1   :  { %12 = vsyncpa [#allocation3 + $0x1], 0  ;;  %s564_s18 = smov 0   ;;  %s566_s19 = smov 0  }
   0x2   :  { %s568_s20 = smov 0   ;;  %s570_s21 = smov 0  }
   0x3 LB: > { %s585_s22 = sadd.s32 4294967295, %s531_s21   ;;  %s391_s23 = sadd.s32 4294967294, %s531_s21   ;;  %s531_s21 = sphi %s570_s21, %s685_s21   ;;  %s527_s20 = sphi %s568_s20, %s684_s20   ;;  %s523_s19 = sphi %s566_s19, %s683_s19   ;;  %s519_s18 = sphi %s564_s18, %s682_s18  }
   0x4   : > { %s589_s24 = sadd.s32 1, %s531_s21   ;;  %s135_s25 = sadd.s32 1, %s527_s20 }
   0x5   : > { %s132_s26 = ssub.s32 %s531_s21, %s589_s24  ;;  %p145_p0 = scmp.ne.s32.totalorder %s527_s20, %s523_s19 }
   0x6   : > { %p133_p1 = scmp.eq.s32.totalorder %s132_s26, 0  ;;  %p146_p2 = scmp.eq.s32.totalorder %s585_s22, 1 }
   0x7   : > { %p151_p3 = scmp.ne.s32.totalorder %s523_s19, %s519_s18  ;;  %p152_p4 = scmp.eq.s32.totalorder %s391_s23, 1 }
   0x8   : > { %s600_s27 = scalar_select %p133_p1, %s527_s20, %s135_s25  }
   0x9   : > { %p602_p5 = por %p146_p2, %p145_p0  ;;  %p606_p6 = por %p152_p4, %p151_p3 }
   0xa   : > { %p394_p7 = scmp.ge.s32.totalorder %s531_s21, 1  ;;  %p189_p8 = scmp.lt.s32.totalorder %s531_s21, 3 }
   0xc   : > { %p190_p9 = pnand %p394_p7, %p189_p8 }
   0xd   : > { %p216_p10 = scmp.lt.s32.totalorder (!%p190_p9), %s585_s22, 1  ;;  %s213_s26 = sand.u32 (!%p190_p9), 1, %s523_s19  }
   0xe   : > { %193 = sbr.rel (%p190_p9) target bundleno = 434 (0x1b2), region = 40  ;;  %s395_s30 = sshll.u32 (!%p190_p9), %s213_s26, 3 }
   0xf   : > { %s415_s6 = sshll.u32 (!%p190_p9), %s585_s22, 3  ;;  %s215_s14 = scalar_lea.vmem (!%p190_p9), [#allocation2], %s395_s30 }
  0x10   : > { %s327_s11 = scalar_lea.hbm (!%p190_p9), %s679_s5, %s415_s6  ;;  %s317_s16 = scalar_lea.sflag (!%p190_p9), [#allocation3], %s213_s26 }
  0x11   : > { %s489_s30 = scalar_lea.hbm (!%p190_p9), %s679_s5, 16 }
  0x13   : > { %v421_v0 = vld [vmem:[%s675_s1 + $0x18] sm:$0xff]  ;;  %v420_v1 = vld [vmem:[%s675_s1 + $0x10] sm:$0xff]  ;;  %s217_s9 = scalar_select %p216_p10, %s585_s22, 1  ;;  %v419_v2 = vld [vmem:[%s675_s1 + $0x8] sm:$0xff]  ;;  %vm259_vm0 = vcmask 523264   ;;  %v533_v11 = vmov 64.0  }
  0x14   : > { %267 = vmatpush.bf16.msra.mxu0 %v421_v0  ;;  %v418_v3 = vld [vmem:[%s675_s1] sm:$0xff]  ;;  %465 = vrcp.f32 %v533_v11  ;;  %s329_s22 = sshll.u32 %s215_s14, 4  ;;  %s330_s22 = int_to_ptr.vmem [resolvable:$true] %s329_s22 }
  0x15   : > { %s396_s10 = sshll.u32 %s217_s9, 3  ;;  %v462_v6 = vld [vmem:[%s676_s2] ss:$0 sm:$0xff] }
  0x16   : > { %s219_s15 = scalar_lea.vmem %s674_s0, %s396_s10  ;;  %v463_v32 = vld [vmem:[%s677_s3] ss:$0 sm:$0xff] }
  0x17   : > { %v221_v4 = vld [vmem:[%s219_s15] sm:$0xff]  ;;  %s331_s15 = sshll.u32 %s327_s11, 4  ;;  %s332_s15 = int_to_ptr.hbm [resolvable:$true] %s331_s15 }
  0x18   : > { %268 = vmatpush.bf16.msra.mxu0 %v420_v1  ;;  %v222_v5 = vpack.c.bf16 %v221_v4, %v221_v4  ;;  %v464_v35 = vld [vmem:[%s678_s4] ss:$0 sm:$0xff]  ;;  %s483_s17 = sshra.s32 %s332_s15, 4  ;;  %s484_s17 = int_to_ptr.hbm [resolvable:$true] %s483_s17 }
  0x19   : > { %s485_s23 = scalar_lea.hbm %s484_s17, 8  ;;  %p490_p0 = scmp.lt.s32.totalorder %s484_s17, %s679_s5 }
  0x1a   : > { %v466_v12 = vpop.eup %465  ;;  %p486_p11 = scmp.ne.s32.totalorder %s484_s17, %s485_s23  ;;  %p491_p1 = scmp.lt.s32.totalorder %s489_s30, %s485_s23 }
  0x1b   : > { %v282_v13 = vmul.f32 64.0, %v466_v12  ;;  %vm286_vm1 = vweird.f32 %v466_v12 }
  0x1c   : > { %269 = vmatpush.bf16.msra.mxu0 %v419_v2  ;;  %p487_p12 = pnand %p486_p11, %p602_p5  ;;  %p492_p2 = por %p491_p1, %p490_p0 }
  0x1d   : > { %v283_v14 = vsub.f32 1.0, %v282_v13 }
  0x1e   : > { %p488_p13 = pneg %p487_p12 }
  0x1f   : > { %v284_v15 = vmul.f32 %v466_v12, %v283_v14 }
  0x20   : > { %270 = vmatpush.bf16.msra.mxu0 %v418_v3  ;;  %p493_p3 = pnand %p492_p2, %p488_p13 }
  0x21   : > { %v285_v16 = vadd.f32 %v466_v12, %v284_v15 }
  0x23   : > { %413 = vmatmul.msk.bf16.vlgmr.msra.gmra.mxu0 %vm259_vm0, %v222_v5  ;;  %v287_v17 = vsel %vm286_vm1, %v466_v12, %v285_v16 }
  0xa0   : > { %v272_v7 = vpop.f32.mrf.mxu0 }
  0xa1   : > { %v273_v8 = vadd.f32 %v462_v6, %v272_v7 }
  0xa3   : > { %v278_v9 = vsel %vm259_vm0, %v273_v8, 0.0 }
  0xa4   : > { %279 = vadd.xlane.f32.xlu0 %v278_v9 }
  0xa8   : > { %v274_v10 = vpop.f32.mrf.mxu0 }
 0x117   : > { %v280_v18 = vpop.xlane.xlu0 %279 }
 0x118   : > { %v288_v19 = vmul.f32 %v287_v17, %v280_v18 }
 0x11a   : > { %v289_v20 = vsub.f32 %v273_v8, %v288_v19 }
 0x11c   : > { %v290_v21 = vmul.f32 %v289_v20, %v289_v20 }
 0x11e   : > { %v291_v22 = vsel %vm259_vm0, %v290_v21, 0.0 }
 0x11f   : > { %292 = vadd.xlane.f32.xlu0 %v291_v22 }
 0x192   : > { %v293_v23 = vpop.xlane.xlu0 %292 }
 0x193   : > { %v294_v24 = vmul.f32 %v293_v23, %v287_v17 }
 0x195   : > { %v295_v25 = vadd.f32 1e-05, %v294_v24 }
 0x197   : > { %467 = vrsqrt.f32 %v295_v25  ;;  %vm302_vm3 = vweird.f32 %v295_v25 }
 0x19d   : > { %v468_v26 = vpop.eup %467 }
 0x19e   : > { %v297_v27 = vmul.f32 %v468_v26, %v295_v25  ;;  %vm303_vm2 = vweird.f32 %v468_v26 }
 0x19f   : > { %vm304_vm4 = vmor %vm302_vm3, %vm303_vm2 }
 0x1a0   : > { %v298_v28 = vmul.f32 %v468_v26, %v297_v27 }
 0x1a2   : > { %v299_v29 = vmul.f32 0.5, %v298_v28 }
 0x1a4   : > { %v300_v30 = vsub.f32 1.5, %v299_v29 }
 0x1a6   : > { %v301_v31 = vmul.f32 %v468_v26, %v300_v30 }
 0x1a8   : > { %v305_v33 = vsel %vm304_vm4, %v468_v26, %v301_v31 }
 0x1a9   : > { %v306_v34 = vmul.f32 %v305_v33, %v289_v20 }
 0x1ab   : > { %v310_v36 = vmul.f32 %v463_v32, %v306_v34 }
 0x1ad   : > { %v314_v37 = vadd.f32 %v464_v35, %v310_v36 }
 0x1af   : > { %315 = vst.msk [vmem:[%s215_s14] sm:$0xff] %vm259_vm0, %v314_v37 }
 0x1b0   : > { %496 = shalt.err (!%p493_p3)
}
 0x1b1   : > { %422 = dma.vmem_to_hbm [thread:$0]  (%p602_p5), %s330_s22, 128, %s332_s15, %s317_s16  }
 0x1b2 PF: > { %p428_p4 = scmp.ge.s32.totalorder %s531_s21, 2  ;;  %s343_s26 = sand.u32 1, %s519_s18  }
 0x1b3   : > { %s344_s9 = scalar_lea.sflag [#allocation3], %s343_s26 }
 0x1b4   : > { %p425_p7 = pnand %p428_p4, %p606_p6 }
 0x1b6   : > { %p426_p8 = pneg %p425_p7 }
 0x1b8   : > { %514 = dma.done.wait (%p426_p8), %s344_s9, 128  }
 0x1b9   : > { %516 = vsyncadd (%p426_p8), %s344_s9, 4294967168  ;;  %p15_p9 = scmp.ge.s32.totalorder %s589_s24, 4   ;;  %s682_s18 = smov %s523_s19 }
 0x1ba   : > { %s683_s19 = smov %s527_s20  ;;  %s684_s20 = smov %s600_s27 }
 0x1bb   : > { %s685_s21 = smov %s589_s24  ;;  %17 = sbr.rel (!%p15_p9) target bundleno = 3 (0x3), region = 75 }
 0x1c0   :  { %350 = vsyncpa [#allocation3], 1 }
 0x1c1   :  { %352 = vsyncpa [#allocation3 + $0x1], 1 }

// kernel: resampler_forward.6
= control target key start
LH: loop header
LB: loop body
LE: loop exit
PB: predicated region body
PF: predicated region fallthrough
CT: control target
= control target key end

     0   :  { %s1680_s25 = smov 0   ;;  %s1953_s0 = inlined_call_operand.vmem [shape: f32[2,8,64], index: 0, kind: input, shape index: {}]   ;;  %s1954_s1 = inlined_call_operand.vmem [shape: f32[2,8,64], index: 1, kind: input, shape index: {}]   ;;  %s1955_s2 = inlined_call_operand.vmem [shape: f32[1,64], index: 2, kind: input, shape index: {}]   ;;  %s1956_s3 = inlined_call_operand.vmem [shape: f32[1,64], index: 3, kind: input, shape index: {}]   ;;  %s1957_s4 = inlined_call_operand.vmem [shape: f32[1,64], index: 4, kind: input, shape index: {}]   ;;  %s1958_s5 = inlined_call_operand.vmem [shape: f32[1,64], index: 5, kind: input, shape index: {}]   ;;  %s1959_s6 = inlined_call_operand.vmem [shape: bf16[64,64], index: 6, kind: input, shape index: {}]   ;;  %s1960_s7 = inlined_call_operand.vmem [shape: bf16[64,128], index: 7, kind: input, shape index: {}]   ;;  %s1961_s8 = inlined_call_operand.vmem [shape: bf16[64,64], index: 8, kind: input, shape index: {}]   ;;  %s1962_s9 = inlined_call_operand.vmem [shape: f32[1,64], index: 9, kind: input, shape index: {}]   ;;  %s1963_s10 = inlined_call_operand.vmem [shape: f32[1,64], index: 10, kind: input, shape index: {}]   ;;  %s1964_s11 = inlined_call_operand.vmem [shape: bf16[64,256], index: 11, kind: input, shape index: {}]   ;;  %s1965_s12 = inlined_call_operand.vmem [shape: bf16[256,64], index: 12, kind: input, shape index: {}]   ;;  %s1966_s13 = inlined_call_operand.vmem [shape: f32[2,8,64], index: 13, kind: output, shape index: {}]  }
   0x1 LB: > { %s1339_s26 = sadd.s32 4294967295, %s1600_s25   ;;  %p1343_p0 = scmp.ge.s32.totalorder %s1600_s25, 1  ;;  %s1600_s25 = sphi %s1680_s25, %s23_s25  }
   0x2   : > { %p395_p1 = scmp.lt.s32.totalorder %s1600_s25, 3 }
   0x4   : > { %p396_p2 = pnand %p1343_p0, %p395_p1 }
   0x5   : > { %p441_p3 = scmp.lt.s32.totalorder (!%p396_p2), %s1339_s26, 1  ;;  %s1603_s28 = smov (!%p396_p2), 112  }
   0x6   : > { %399 = sbr.rel (%p396_p2) target bundleno = 2589 (0xa1d), region = 72  ;;  %s1604_s29 = smov (!%p396_p2), 64  }
   0x7   : > { %s1606_s14 = smov (!%p396_p2), 80   ;;  %s1607_s15 = smov (!%p396_p2), 96  }
   0x8   : > { %s1609_s17 = smov (!%p396_p2), 16  }
   0xb   : > { %s1968_s26 = smov (!%p441_p3, %s1339_s26), 1  ;;  %vm458_vm0 = vcmask 523264   ;;  %v1602_v4 = vmov 64.0   ;;  %v1511_v21 = vld [vmem:[%s1959_s6 + $0x18] sm:$0xff]  ;;  %v1510_v22 = vld [vmem:[%s1959_s6 + $0x10] sm:$0xff]  ;;  %v1509_v23 = vld [vmem:[%s1959_s6 + $0x8] sm:$0xff] }
   0xc   : > { %s1688_s27 = sshll.u32 %s1968_s26, 3  ;;  %1566 = vrcp.f32 %v1602_v4  ;;  %568 = vmatpush.bf16.msra.mxu1 %v1511_v21  ;;  %v1508_v24 = vld [vmem:[%s1959_s6] sm:$0xff]  ;;  %v1515_v25 = vld [vmem:[%s1960_s7 + $0x18] sm:$0xff]  ;;  %v1514_v27 = vld [vmem:[%s1960_s7 + $0x10] sm:$0xff]  ;;  %vm635_vm8 = vcmask 130048   ;;  %vm864_vm9 = vcmask 261120  }
   0xd   : > { %s448_s30 = scalar_lea.vmem %s1954_s1, %s1688_s27  ;;  %s444_s16 = scalar_lea.vmem %s1953_s0, %s1688_s27  ;;  %v1513_v30 = vld [vmem:[%s1960_s7 + $0x8] sm:$0xff]  ;;  %v1512_v32 = vld [vmem:[%s1960_s7] sm:$0xff]  ;;  %vm866_vm10 = vcmask 392192  }
   0xe   : > { %v1694_v0 = vld [vmem:[%s448_s30] sm:$0xff]  ;;  %s1605_s30 = smov 48   ;;  %s452_s21 = scalar_lea.vmem %s1966_s13, %s1688_s27 }
   0xf   : > { %v498_v1 = vsel %vm458_vm0, %v1694_v0, 0.0  ;;  %v454_v2 = vld [vmem:[%s444_s16] sm:$0xff]  ;;  %s1608_s16 = smov 32  }
  0x10   : > { %499 = vadd.xlane.f32.xlu0 %v498_v1  ;;  %v459_v3 = vsel %vm458_vm0, %v454_v2, 0.0  ;;  %569 = vmatpush.bf16.msra.mxu1 %v1510_v22  ;;  %v1560_v43 = vld [vmem:[%s1957_s4] ss:$0 sm:$0xff] }
  0x11   : > { %v1561_v47 = vld [vmem:[%s1958_s5] ss:$0 sm:$0xff] }
  0x12   : > { %v1567_v5 = vpop.eup %1566  ;;  %v1562_v56 = vld [vmem:[%s1955_s2] ss:$0 sm:$0xff] }
  0x13   : > { %v463_v6 = vmul.f32 64.0, %v1567_v5  ;;  %vm467_vm1 = vweird.f32 %v1567_v5  ;;  %v1563_v58 = vld [vmem:[%s1956_s3] ss:$0 sm:$0xff] }
  0x14   : > { %570 = vmatpush.bf16.msra.mxu1 %v1509_v23 }
  0x15   : > { %v464_v7 = vsub.f32 1.0, %v463_v6 }
  0x17   : > { %v465_v8 = vmul.f32 %v1567_v5, %v464_v7 }
  0x18   : > { %460 = vadd.xlane.f32.xlu0 %v459_v3  ;;  %571 = vmatpush.bf16.msra.mxu1 %v1508_v24 }
  0x19   : > { %v466_v9 = vadd.f32 %v1567_v5, %v465_v8 }
  0x1b   : > { %v1703_v10 = vsel %vm467_vm1, %v1567_v5, %v466_v9 }
  0x1c   : > { %617 = vmatpush.bf16.msrb.mxu1 %v1515_v25 }
  0x20   : > { %618 = vmatpush.bf16.msrb.mxu1 %v1514_v27 }
  0x24   : > { %619 = vmatpush.bf16.msrb.mxu1 %v1513_v30 }
  0x28   : > { %620 = vmatpush.bf16.msrb.mxu1 %v1512_v32 }
  0x83   : > { %v500_v11 = vpop.xlane.xlu0 %499 }
  0x84   : > { %v501_v12 = vmul.f32 %v500_v11, %v1703_v10 }
  0x86   : > { %v502_v13 = vsub.f32 %v1694_v0, %v501_v12 }
  0x88   : > { %v503_v14 = vmul.f32 %v502_v13, %v502_v13 }
  0x8a   : > { %v504_v15 = vsel %vm458_vm0, %v503_v14, 0.0 }
  0x8b   : > { %505 = vadd.xlane.f32.xlu1 %v504_v15  ;;  %v461_v16 = vpop.xlane.xlu0 %460 }
  0x8c   : > { %v469_v17 = vmul.f32 %v1703_v10, %v461_v16 }
  0x8e   : > { %v470_v18 = vsub.f32 %v454_v2, %v469_v17 }
  0x90   : > { %v471_v19 = vmul.f32 %v470_v18, %v470_v18 }
  0x92   : > { %v472_v20 = vsel %vm458_vm0, %v471_v19, 0.0 }
  0x93   : > { %473 = vadd.xlane.f32.xlu1 %v472_v20 }
  0xfe   : > { %v506_v26 = vpop.xlane.xlu1 %505 }
  0xff   : > { %v507_v28 = vmul.f32 %v506_v26, %v1703_v10 }
 0x101   : > { %v508_v29 = vadd.f32 1e-05, %v507_v28 }
 0x103   : > { %1568 = vrsqrt.f32 %v508_v29  ;;  %vm515_vm3 = vweird.f32 %v508_v29 }
 0x106   : > { %v474_v31 = vpop.xlane.xlu1 %473 }
 0x107   : > { %v475_v33 = vmul.f32 %v474_v31, %v1703_v10 }
 0x109   : > { %v1569_v34 = vpop.eup %1568  ;;  %v476_v35 = vadd.f32 1e-05, %v475_v33 }
 0x10a   : > { %v510_v36 = vmul.f32 %v1569_v34, %v508_v29  ;;  %vm516_vm2 = vweird.f32 %v1569_v34 }
 0x10b   : > { %1570 = vrsqrt.f32 %v476_v35  ;;  %vm517_vm4 = vmor %vm515_vm3, %vm516_vm2  ;;  %vm483_vm5 = vweird.f32 %v476_v35 }
 0x10c   : > { %v511_v37 = vmul.f32 %v1569_v34, %v510_v36 }
 0x10e   : > { %v512_v38 = vmul.f32 0.5, %v511_v37 }
 0x110   : > { %v513_v39 = vsub.f32 1.5, %v512_v38 }
 0x111   : > { %v1571_v40 = vpop.eup %1570 }
 0x112   : > { %v514_v41 = vmul.f32 %v1569_v34, %v513_v39  ;;  %v478_v42 = vmul.f32 %v1571_v40, %v476_v35  ;;  %vm484_vm6 = vweird.f32 %v1571_v40 }
 0x113   : > { %vm485_vm7 = vmor %vm483_vm5, %vm484_vm6 }
 0x114   : > { %v518_v44 = vsel %vm517_vm4, %v1569_v34, %v514_v41  ;;  %v479_v45 = vmul.f32 %v1571_v40, %v478_v42 }
 0x115   : > { %v519_v46 = vmul.f32 %v518_v44, %v502_v13 }
 0x116   : > { %v480_v48 = vmul.f32 0.5, %v479_v45 }
 0x117   : > { %v523_v49 = vmul.f32 %v1560_v43, %v519_v46 }
 0x118   : > { %v481_v50 = vsub.f32 1.5, %v480_v48 }
 0x119   : > { %v527_v51 = vadd.f32 %v1561_v47, %v523_v49 }
 0x11a   : > { %v482_v52 = vmul.f32 %v1571_v40, %v481_v50 }
 0x11b   : > { %v528_v53 = vpack.c.bf16 %v527_v51, %v527_v51 }
 0x11c   : > { %v486_v54 = vsel %vm485_vm7, %v1571_v40, %v482_v52 }
 0x11d   : > { %1363 = vmatmul.msk.bf16.vlgmr.msra.gmra.mxu1 %vm458_vm0, %v528_v53  ;;  %v487_v55 = vmul.f32 %v486_v54, %v470_v18 }
 0x11f   : > { %v491_v57 = vmul.f32 %v1562_v56, %v487_v55 }
 0x121   : > { %v495_v59 = vadd.f32 %v1563_v58, %v491_v57 }
 0x123   : > { %v577_v60 = vpack.c.bf16 %v527_v51, %v495_v59 }
 0x12d   : > { %1380 = vmatmul.msk.bf16.vlgmr.msrb.gmra.mxu1 %vm458_vm0, %v577_v60 }
 0x19a   : > { %v573_v61 = vpop.f32.mrf.mxu1 }
 0x19b   : > { %v627_v8 = vpack.c.bf16 %v573_v61, %v573_v61 }
 0x19d   : > { %v687_v9 = vunpack.c.l.b16 %v627_v8 }
 0x19f   : > { %v688_v11 = vpack.c.b16 %v687_v9, %v687_v9 }
 0x1a2   : > { %v575_v62 = vpop.f32.mrf.mxu1 }
 0x1aa   : > { %v622_v63 = vpop.f32.mrf.mxu1 }
 0x1ab   : > { %v628_v1 = vpack.c.bf16 %v622_v63, %v622_v63 }
 0x1ad   : > { %v632_v4 = vunpack.c.l.b16 %v628_v1 }
 0x1b2   : > { %v624_v2 = vpop.f32.mrf.mxu1 }
 0x1b3   : > { %v629_v3 = vpack.c.bf16 %v624_v2, %v624_v2 }
 0x1b5   : > { %v633_v5 = vunpack.c.l.b16 %v629_v3 }
 0x1b7   : > { %v1750_v6 = vpack.c.b16 %v633_v5, %v632_v4 }
 0x1b9   : > { %691 = vrot.lane.b32.xlu1 %v1750_v6, %s1603_s28  ;;  %667 = vrot.lane.b32.xlu0 %v1750_v6, %s1604_s29  ;;  %v640_v7 = vsel %vm635_vm8, %v1750_v6, 0 }
 0x1ba   : > { %649 = vmatpush.bf16.xpose.msra.mxu2 %v640_v7 }
 0x1c1   : > { %724 = vrot.lane.b32.xlu1 %v1750_v6, %s1605_s30  ;;  %1381 = vmatmul.msk.bf16.vlgmr.msra.gmra.mxu2 %vm635_vm8, %v627_v8 }
 0x1c9   : > { %799 = vrot.lane.b32.xlu1 %v1750_v6, %s1606_s14 }
 0x1d1   : > { %797 = vrot.lane.b32.xlu1 %v688_v11, %s1606_s14 }
 0x1d9   : > { %745 = vrot.lane.b32.xlu1 %v1750_v6, %s1607_s15 }
 0x1e1   : > { %743 = vrot.lane.b32.xlu1 %v688_v11, %s1607_s15 }
 0x22b   : > { %v692_v12 = vpop.permute.xlu1 %691  ;;  %v668_v13 = vpop.permute.xlu0 %667 }
 0x22c   : > { %680 = vmatpush.bf16.msra.mxu3 %v668_v13  ;;  %v697_v14 = vsel %vm635_vm8, %v692_v12, 0 }
 0x230   : > { %706 = vmatpush.bf16.xpose.msrb.mxu3 %v697_v14 }
 0x233   : > { %v725_v15 = vpop.permute.xlu1 %724 }
 0x23b   : > { %v800_v16 = vpop.permute.xlu1 %799 }
 0x23c   : > { %v805_v37 = vsel %vm635_vm8, %v800_v16, 0 }
 0x243   : > { %v798_v17 = vpop.permute.xlu1 %797 }
 0x244   : > { %v651_v18 = vpop.f32.mrf.mxu2 }
 0x245   : > { %v655_v19 = vsel %vm635_vm8, %v651_v18, -inf }
 0x246   : > { %656 = vmax.xlane.f32.xlu2 %v655_v19  ;;  %v1517_v19 = vld [vmem:[%s1961_s8 + $0x8] sm:$0xff] }
 0x24b   : > { %v746_v20 = vpop.permute.xlu1 %745 }
 0x24c   : > { %v653_v21 = vpop.f32.mrf.mxu2  ;;  %v751_v22 = vsel %vm635_vm8, %v746_v20, 0 }
 0x24d   : > { %760 = vmatpush.bf16.xpose.msra.mxu0 %v751_v22  ;;  %v1516_v22 = vld [vmem:[%s1961_s8] sm:$0xff] }
 0x253   : > { %v744_v23 = vpop.permute.xlu1 %743 }
 0x254   : > { %1385 = vmatmul.msk.bf16.vlgmr.msra.gmra.mxu0 %vm635_vm8, %v744_v23 }
 0x2b9   : > { %v657_v24 = vpop.xlane.xlu2 %656 }
 0x2ba   : > { %v658_v25 = vsub.f32 %v651_v18, %v657_v24  ;;  %v1519_v18 = vld [vmem:[%s1961_s8 + $0x18] sm:$0xff] }
 0x2bb   : > { %908 = vmatpush.bf16.msrb.mxu0 %v1519_v18  ;;  %v1543_v18 = vld [vmem:[%s1965_s12 + $0x78] sm:$0xff] }
 0x2bc   : > { %v659_v26 = vmul.f32 1.442695, %v658_v25 }
 0x2be   : > { %1572 = vpow2.f32 %v659_v26 }
 0x2c4   : > { %v1573_v27 = vpop.eup %1572 }
 0x2c5   : > { %v661_v28 = vsel %vm635_vm8, %v1573_v27, 0.0 }
 0x2c6   : > { %662 = vadd.xlane.f32.xlu2 %v661_v28 }
 0x2d1   : > { %v762_v29 = vpop.f32.mrf.mxu0 }
 0x2d2   : > { %v766_v30 = vsel %vm635_vm8, %v762_v29, -inf }
 0x2d3   : > { %767 = vmax.xlane.f32.xlu1 %v766_v30 }
 0x2d9   : > { %v764_v31 = vpop.f32.mrf.mxu0 }
 0x2de   : > { %689 = vrot.lane.b32.xlu2 %v688_v11, %s1603_s28 }
 0x339   : > { %v663_v32 = vpop.xlane.xlu2 %662 }
 0x33a   : > { %1574 = vrcp.f32 %v663_v32 }
 0x340   : > { %v1575_v33 = vpop.eup %1574 }
 0x341   : > { %v665_v34 = vmul.f32 %v1575_v33, %v1573_v27  ;;  %v690_v36 = vpop.permute.xlu2 %689 }
 0x343   : > { %v666_v35 = vpack.c.bf16 %v665_v34, %v665_v34 }
 0x345   : > { %1382 = vmatmul.msk.bf16.vlgmr.msra.gmra.mxu3 %vm635_vm8, %v666_v35 }
 0x346   : > { %737 = vmatpush.bf16.msra.mxu3 %v725_v15  ;;  %v768_v53 = vpop.xlane.xlu1 %767 }
 0x347   : > { %v769_v54 = vsub.f32 %v762_v29, %v768_v53 }
 0x349   : > { %v770_v56 = vmul.f32 1.442695, %v769_v54  ;;  %v1418_v54 = vld [vmem:[%s1964_s11 + $0x18] sm:$0xf0] }
 0x355   : > { %1383 = vmatmul.msk.bf16.vlgmr.msrb.gmra.mxu3 %vm635_vm8, %v690_v36 }
 0x356   : > { %814 = vmatpush.bf16.xpose.msrb.mxu3 %v805_v37 }
 0x3c8   : > { %v1772_v38 = vpop.f32.mrf.mxu3 }
 0x3d0   : > { %v684_v39 = vpop.f32.mrf.mxu3 }
 0x3d1   : > { %v1432_v39 = vld [vmem:[%s1964_s11 + $0x30] sm:$0xf] }
 0x3d8   : > { %v708_v40 = vpop.f32.mrf.mxu3 }
 0x3d9   : > { %v712_v41 = vsel %vm635_vm8, %v708_v40, -inf }
 0x3da   : > { %713 = vmax.xlane.f32.xlu0 %v712_v41 }
 0x3e0   : > { %v710_v42 = vpop.f32.mrf.mxu3 }
 0x3e1   : > { %v1434_v42 = vld [vmem:[%s1964_s11 + $0x38] sm:$0xf0] }
 0x44d   : > { %v714_v43 = vpop.xlane.xlu0 %713 }
 0x44e   : > { %v715_v44 = vsub.f32 %v708_v40, %v714_v43  ;;  %v1526_v40 = vld [vmem:[%s1964_s11 + $0x34] sm:$0xf] }
 0x44f   : > { %v1437_v43 = vor.u32 %v1526_v40, %v1434_v42 }
 0x450   : > { %v716_v45 = vmul.f32 1.442695, %v715_v44  ;;  %v1424_v44 = vld [vmem:[%s1964_s11 + $0x20] sm:$0xf] }
 0x452   : > { %1576 = vpow2.f32 %v716_v45  ;;  %v1525_v45 = vld [vmem:[%s1964_s11 + $0x24] sm:$0xf0] }
 0x458   : > { %v1577_v46 = vpop.eup %1576 }
 0x459   : > { %v718_v47 = vsel %vm635_vm8, %v1577_v46, 0.0 }
 0x45a   : > { %719 = vadd.xlane.f32.xlu2 %v718_v47  ;;  %v1425_v47 = vor.u32 %v1525_v45, %v1424_v44 }
 0x4cd   : > { %v720_v48 = vpop.xlane.xlu2 %719 }
 0x4ce   : > { %1578 = vrcp.f32 %v720_v48  ;;  %v1426_v48 = vld [vmem:[%s1964_s11 + $0x28] sm:$0xf0] }
 0x4cf   : > { %1580 = vpow2.f32 %v770_v56  ;;  %v1408_v56 = vld [vmem:[%s1964_s11] sm:$0xf] }
 0x4d4   : > { %v1579_v49 = vpop.eup %1578 }
 0x4d5   : > { %v722_v50 = vmul.f32 %v1579_v49, %v1577_v46  ;;  %v1581_v59 = vpop.eup %1580  ;;  %v1524_v46 = vld [vmem:[%s1964_s11 + $0x24] sm:$0xf] }
 0x4d6   : > { %v772_v61 = vsel %vm635_vm8, %v1581_v59, 0.0  ;;  %v1429_v49 = vor.u32 %v1524_v46, %v1426_v48 }
 0x4d7   : > { %v723_v51 = vpack.c.bf16 %v722_v50, %v722_v50  ;;  %v1416_v50 = vld [vmem:[%s1964_s11 + $0x10] sm:$0xf] }
 0x4d9   : > { %1384 = vmatmul.msk.bf16.vlgmr.msra.gmra.mxu3 %vm635_vm8, %v723_v51  ;;  %v1523_v51 = vld [vmem:[%s1964_s11 + $0x14] sm:$0xf0] }
 0x4da   : > { %1019 = vmatpush.bf16.msra.mxu3 %v1437_v43  ;;  %v1417_v53 = vor.u32 %v1523_v51, %v1416_v50  ;;  %v1538_v51 = vld [vmem:[%s1965_s12 + $0x50] sm:$0xff] }
 0x4de   : > { %1020 = vmatpush.bf16.msra.mxu3 %v1429_v49 }
 0x4e9   : > { %1387 = vmatmul.msk.bf16.vlgmr.msrb.gmra.mxu3 %vm635_vm8, %v798_v17 }
 0x55c   : > { %v739_v52 = vpop.f32.mrf.mxu3 }
 0x564   : > { %v741_v55 = vpop.f32.mrf.mxu3 }
 0x56c   : > { %v816_v57 = vpop.f32.mrf.mxu3 }
 0x56d   : > { %v820_v58 = vsel %vm635_vm8, %v816_v57, -inf }
 0x56e   : > { %821 = vmax.xlane.f32.xlu0 %v820_v58  ;;  %v1520_v58 = vld [vmem:[%s1964_s11 + $0x4] sm:$0xf] }
 0x574   : > { %v818_v60 = vpop.f32.mrf.mxu3 }
 0x575   : > { %v1410_v60 = vld [vmem:[%s1964_s11 + $0x8] sm:$0xf0] }
 0x576   : > { %773 = vadd.xlane.f32.xlu0 %v772_v61  ;;  %v1413_v61 = vor.u32 %v1520_v58, %v1410_v60  ;;  %v1537_v60 = vld [vmem:[%s1965_s12 + $0x48] sm:$0xff] }
 0x58a   : > { %778 = vrot.lane.b32.xlu0 %v1750_v6, %s1608_s16 }
 0x5e1   : > { %v822_v62 = vpop.xlane.xlu0 %821 }
 0x5e2   : > { %v823_v63 = vsub.f32 %v816_v57, %v822_v62  ;;  %v1521_v57 = vld [vmem:[%s1964_s11 + $0x4] sm:$0xf0] }
 0x5e4   : > { %v824_v1 = vmul.f32 1.442695, %v823_v63 }
 0x5e6   : > { %1582 = vpow2.f32 %v824_v1 }
 0x5e9   : > { %v774_v4 = vpop.xlane.xlu0 %773 }
 0x5ea   : > { %1584 = vrcp.f32 %v774_v4 }
 0x5ec   : > { %v1583_v2 = vpop.eup %1582 }
 0x5ed   : > { %v826_v3 = vsel %vm635_vm8, %v1583_v2, 0.0 }
 0x5ee   : > { %827 = vadd.xlane.f32.xlu2 %v826_v3 }
 0x5f0   : > { %v1585_v5 = vpop.eup %1584 }
 0x5f1   : > { %v776_v7 = vmul.f32 %v1585_v5, %v1581_v59  ;;  %v1409_v59 = vor.u32 %v1521_v57, %v1408_v56  ;;  %v1528_v56 = vld [vmem:[%s1965_s12] sm:$0xff] }
 0x5f3   : > { %v777_v9 = vpack.c.bf16 %v776_v7, %v776_v7 }
 0x5fc   : > { %v779_v8 = vpop.permute.xlu0 %778 }
 0x5fd   : > { %791 = vmatpush.bf16.msra.mxu1 %v779_v8 }
 0x600   : > { %1386 = vmatmul.msk.bf16.vlgmr.msra.gmra.mxu1 %vm635_vm8, %v777_v9  ;;  %v1564_v9 = vld [vmem:[%s1962_s9] ss:$0 sm:$0xff] }
 0x606   : > { %832 = vrot.lane.b32.xlu2 %v1750_v6, %s1609_s17  ;;  %v1518_v6 = vld [vmem:[%s1961_s8 + $0x10] sm:$0xff] }
 0x607   : > { %909 = vmatpush.bf16.msrb.mxu0 %v1518_v6  ;;  %v1533_v6 = vld [vmem:[%s1965_s12 + $0x28] sm:$0xff] }
 0x60b   : > { %910 = vmatpush.bf16.msrb.mxu0 %v1517_v19 }
 0x60e   : > { %852 = vrot.lane.b32.xlu2 %v739_v52, %s1609_s17  ;;  %v1522_v52 = vld [vmem:[%s1964_s11 + $0x14] sm:$0xf] }
 0x60f   : > { %911 = vmatpush.bf16.msrb.mxu0 %v1516_v22  ;;  %v1421_v55 = vor.u32 %v1522_v52, %v1418_v54 }
 0x611   : > { %1021 = vmatpush.bf16.msra.mxu3 %v1421_v55 }
 0x613   : > { %1259 = vmatpush.bf16.msra.mxu0 %v1543_v18 }
 0x615   : > { %1022 = vmatpush.bf16.msra.mxu3 %v1413_v61 }
 0x661   : > { %v828_v11 = vpop.xlane.xlu2 %827 }
 0x662   : > { %1586 = vrcp.f32 %v828_v11 }
 0x668   : > { %v1587_v12 = vpop.eup %1586 }
 0x669   : > { %v830_v13 = vmul.f32 %v1587_v12, %v1583_v2  ;;  %v833_v14 = vpop.permute.xlu2 %832 }
 0x66a   : > { %845 = vmatpush.bf16.msrb.mxu2 %v833_v14 }
 0x66b   : > { %v831_v15 = vpack.c.bf16 %v830_v13, %v830_v13 }
 0x66d   : > { %1388 = vmatmul.msk.bf16.vlgmr.msrb.gmra.mxu2 %vm635_vm8, %v831_v15 }
 0x671   : > { %v853_v23 = vpop.permute.xlu2 %852 }
 0x672   : > { %v863_v25 = vsel %vm635_vm8, %v1772_v38, %v853_v23  ;;  %v1532_v23 = vld [vmem:[%s1965_s12 + $0x20] sm:$0xff] }
 0x67d   : > { %v793_v16 = vpop.f32.mrf.mxu1 }
 0x67e   : > { %856 = vrot.lane.b32.xlu0 %v793_v16, %s1608_s16  ;;  %v1535_v16 = vld [vmem:[%s1965_s12 + $0x38] sm:$0xff] }
 0x67f   : > { %1246 = vmatpush.bf16.msra.mxu2 %v1535_v16 }
 0x685   : > { %v795_v17 = vpop.f32.mrf.mxu1 }
 0x686   : > { %v1534_v17 = vld [vmem:[%s1965_s12 + $0x30] sm:$0xff] }
 0x687   : > { %1247 = vmatpush.bf16.msra.mxu2 %v1534_v17 }
 0x68b   : > { %1248 = vmatpush.bf16.msra.mxu2 %v1533_v6 }
 0x68f   : > { %1249 = vmatpush.bf16.msra.mxu2 %v1532_v23 }
 0x6f0   : > { %v847_v20 = vpop.f32.mrf.mxu2  ;;  %v857_v24 = vpop.permute.xlu0 %856 }
 0x6f1   : > { %860 = vrot.lane.b32.xlu2 %v847_v20, %s1605_s30  ;;  %v865_v26 = vsel %vm864_vm9, %v863_v25, %v857_v24  ;;  %v1541_v25 = vld [vmem:[%s1965_s12 + $0x68] sm:$0xff] }
 0x6f8   : > { %v849_v21 = vpop.f32.mrf.mxu2 }
 0x6f9   : > { %v1542_v21 = vld [vmem:[%s1965_s12 + $0x70] sm:$0xff] }
 0x6fa   : > { %1260 = vmatpush.bf16.msra.mxu0 %v1542_v21 }
 0x6fe   : > { %1261 = vmatpush.bf16.msra.mxu0 %v1541_v25 }
 0x74b   : > { %v861_v27 = vpop.permute.xlu2 %860 }
 0x74c   : > { %v867_v28 = vsel %vm866_vm10, %v865_v26, %v861_v27 }
 0x74d   : > { %v868_v29 = vpack.c.bf16 %v867_v28, %v867_v28 }
 0x74f   : > { %1405 = vmatmul.msk.bf16.vlgmr.msrb.gmra.mxu0 %vm458_vm0, %v868_v29  ;;  %v1531_v29 = vld [vmem:[%s1965_s12 + $0x18] sm:$0xff] }
 0x750   : > { %1250 = vmatpush.bf16.msra.mxu2 %v1531_v29 }
 0x7cc   : > { %v913_v30 = vpop.f32.mrf.mxu0 }
 0x7cd   : > { %v1802_v31 = vadd.f32 %v913_v30, %v1694_v0  ;;  %v1527_v0 = vld [vmem:[%s1964_s11 + $0x34] sm:$0xf0] }
 0x7ce   : > { %v1433_v41 = vor.u32 %v1527_v0, %v1432_v39  ;;  %v1530_v39 = vld [vmem:[%s1965_s12 + $0x10] sm:$0xff] }
 0x7cf   : > { %v920_v32 = vsel %vm458_vm0, %v1802_v31, 0.0  ;;  %1251 = vmatpush.bf16.msra.mxu2 %v1530_v39 }
 0x7d0   : > { %921 = vadd.xlane.f32.xlu0 %v920_v32  ;;  %1006 = vmatpush.bf16.msrb.mxu1 %v1433_v41  ;;  %v1539_v41 = vld [vmem:[%s1965_s12 + $0x58] sm:$0xff] }
 0x7d4   : > { %v915_v33 = vpop.f32.mrf.mxu0  ;;  %1007 = vmatpush.bf16.msrb.mxu1 %v1425_v47  ;;  %v1529_v47 = vld [vmem:[%s1965_s12 + $0x8] sm:$0xff] }
 0x7d5   : > { %1252 = vmatpush.bf16.msra.mxu2 %v1529_v47 }
 0x7d8   : > { %1008 = vmatpush.bf16.msrb.mxu1 %v1417_v53 }
 0x7d9   : > { %1253 = vmatpush.bf16.msra.mxu2 %v1528_v56 }
 0x7dc   : > { %1009 = vmatpush.bf16.msrb.mxu1 %v1409_v59 }
 0x843   : > { %v922_v34 = vpop.xlane.xlu0 %921 }
 0x844   : > { %v923_v35 = vmul.f32 %v922_v34, %v1703_v10 }
 0x846   : > { %v924_v36 = vsub.f32 %v1802_v31, %v923_v35  ;;  %v1540_v35 = vld [vmem:[%s1965_s12 + $0x60] sm:$0xff] }
 0x847   : > { %1262 = vmatpush.bf16.msra.mxu0 %v1540_v35 }
 0x848   : > { %v925_v37 = vmul.f32 %v924_v36, %v924_v36 }
 0x84a   : > { %v926_v38 = vsel %vm458_vm0, %v925_v37, 0.0 }
 0x84b   : > { %927 = vadd.xlane.f32.xlu1 %v926_v38  ;;  %1263 = vmatpush.bf16.msra.mxu0 %v1539_v41 }
 0x84f   : > { %1264 = vmatpush.bf16.msra.mxu0 %v1538_v51 }
 0x853   : > { %1265 = vmatpush.bf16.msra.mxu0 %v1537_v60 }
 0x8be   : > { %v928_v62 = vpop.xlane.xlu1 %927 }
 0x8bf   : > { %v929_v63 = vmul.f32 %v928_v62, %v1703_v10  ;;  %v1565_v10 = vld [vmem:[%s1963_s10] ss:$0 sm:$0xff] }
 0x8c1   : > { %v930_v1 = vadd.f32 1e-05, %v929_v63 }
 0x8c3   : > { %1588 = vrsqrt.f32 %v930_v1  ;;  %vm937_vm12 = vweird.f32 %v930_v1 }
 0x8c9   : > { %v1589_v2 = vpop.eup %1588 }
 0x8ca   : > { %v932_v3 = vmul.f32 %v1589_v2, %v930_v1  ;;  %vm938_vm11 = vweird.f32 %v1589_v2 }
 0x8cb   : > { %vm939_vm13 = vmor %vm937_vm12, %vm938_vm11 }
 0x8cc   : > { %v933_v4 = vmul.f32 %v1589_v2, %v932_v3 }
 0x8ce   : > { %v934_v5 = vmul.f32 0.5, %v933_v4  ;;  %v1536_v4 = vld [vmem:[%s1965_s12 + $0x40] sm:$0xff] }
 0x8cf   : > { %1266 = vmatpush.bf16.msra.mxu0 %v1536_v4 }
 0x8d0   : > { %v935_v7 = vsub.f32 1.5, %v934_v5 }
 0x8d2   : > { %v936_v8 = vmul.f32 %v1589_v2, %v935_v7 }
 0x8d4   : > { %v940_v11 = vsel %vm939_vm13, %v1589_v2, %v936_v8 }
 0x8d5   : > { %v941_v12 = vmul.f32 %v940_v11, %v924_v36 }
 0x8d7   : > { %v945_v13 = vmul.f32 %v1564_v9, %v941_v12 }
 0x8d9   : > { %v949_v14 = vadd.f32 %v1565_v10, %v945_v13 }
 0x8db   : > { %v950_v15 = vpack.c.bf16 %v949_v14, %v949_v14 }
 0x8dd   : > { %1438 = vmatmul.msk.bf16.vlgmr.msrb.gmra.mxu1 %vm458_vm0, %v950_v15  ;;  %1439 = vmatmul.msk.bf16.vlgmr.msra.gmra.mxu3 %vm458_vm0, %v950_v15 }
 0x95a   : > { %v1878_v19 = vpop.f32.mrf.mxu1 }
 0x95b   : > { %v1881_v20 = vmul.f32 0.70710677, %v1878_v19 }
 0x95d   : > { %v1032_v22 = vmul.f32 %v1881_v20, %v1881_v20 }
 0x95f   : > { %v1891_v24 = vmin.f32 %v1032_v22, 16.0 }
 0x960   : > { %v1896_v26 = vpop.f32.mrf.mxu3 }
 0x961   : > { %v1034_v27 = vmul.f32 2.1237322e-06, %v1891_v24  ;;  %v1045_v28 = vmul.f32 3.8918573e-05, %v1891_v24  ;;  %v1904_v30 = vmul.f32 0.70710677, %v1896_v26 }
 0x962   : > { %v1013_v32 = vpop.f32.mrf.mxu1  ;;  %v1029_v51 = vmul.f32 0.5, %v1896_v26 }
 0x963   : > { %v1035_v33 = vadd.f32 0.00028619796, %v1034_v27  ;;  %v1046_v34 = vadd.f32 0.001143296, %v1045_v28  ;;  %v1072_v36 = vmul.f32 %v1904_v30, %v1904_v30 }
 0x965   : > { %v1036_v37 = vmul.f32 %v1035_v33, %v1891_v24  ;;  %v1047_v38 = vmul.f32 %v1046_v34, %v1891_v24  ;;  %v1073_v0 = vmin.f32 %v1072_v36, 16.0 }
 0x967   : > { %v1048_v40 = vadd.f32 0.014752088, %v1047_v38  ;;  %v1037_v42 = vadd.f32 0.0036580483, %v1036_v37  ;;  %v1074_v43 = vmul.f32 2.1237322e-06, %v1073_v0 }
 0x968   : > { %v1085_v44 = vmul.f32 3.8918573e-05, %v1073_v0  ;;  %v1026_v45 = vpop.f32.mrf.mxu3 }
 0x969   : > { %v1049_v46 = vmul.f32 %v1048_v40, %v1891_v24  ;;  %v1075_v48 = vadd.f32 0.00028619796, %v1074_v43  ;;  %v1038_v52 = vmul.f32 %v1037_v42, %v1891_v24  ;;  %v1028_v43 = vmul.f32 0.5, %v1878_v19 }
 0x96a   : > { %v1086_v49 = vadd.f32 0.001143296, %v1085_v44 }
 0x96b   : > { %v1050_v50 = vadd.f32 0.112945676, %v1049_v46  ;;  %v1076_v53 = vmul.f32 %v1075_v48, %v1073_v0  ;;  %v1039_v61 = vadd.f32 0.05243302, %v1038_v52 }
 0x96c   : > { %v1087_v54 = vmul.f32 %v1086_v49, %v1073_v0 }
 0x96d   : > { %v1051_v55 = vmul.f32 %v1050_v50, %v1891_v24  ;;  %v1077_v59 = vadd.f32 0.0036580483, %v1076_v53  ;;  %v1040_v5 = vmul.f32 %v1039_v61, %v1891_v24 }
 0x96e   : > { %v1088_v57 = vadd.f32 0.014752088, %v1087_v54 }
 0x96f   : > { %v1052_v58 = vadd.f32 0.4994258, %v1051_v55  ;;  %v1078_v3 = vmul.f32 %v1077_v59, %v1073_v0  ;;  %v1041_v11 = vadd.f32 0.18741608, %v1040_v5 }
 0x970   : > { %v1089_v62 = vmul.f32 %v1088_v57, %v1073_v0 }
 0x971   : > { %v1053_v63 = vmul.f32 %v1052_v58, %v1891_v24  ;;  %v1079_v9 = vadd.f32 0.05243302, %v1078_v3  ;;  %v1042_v15 = vmul.f32 %v1041_v11, %v1891_v24 }
 0x972   : > { %v1090_v1 = vadd.f32 0.112945676, %v1089_v62 }
 0x973   : > { %v1054_v2 = vadd.f32 1.0, %v1053_v63  ;;  %v1080_v14 = vmul.f32 %v1079_v9, %v1073_v0  ;;  %v1043_v21 = vadd.f32 1.1283791, %v1042_v15 }
 0x974   : > { %v1091_v7 = vmul.f32 %v1090_v1, %v1073_v0 }
 0x975   : > { %1590 = vrcp.f32 %v1054_v2  ;;  %v1066_v18 = vand.u32 2147483648, %v1054_v2  ;;  %v1081_v6 = vadd.f32 0.18741608, %v1080_v14  ;;  %v1064_v23 = vand.u32 2147483647, %v1054_v2 }
 0x976   : > { %v1092_v8 = vadd.f32 0.4994258, %v1091_v7  ;;  %vm1060_vm15 = vweird.f32 %v1054_v2  ;;  %v1044_v33 = vmul.f32 %v1043_v21, %v1881_v20 }
 0x977   : > { %v1067_v28 = vor.u32 1.1754944e-38, %v1066_v18  ;;  %v1082_v29 = vmul.f32 %v1081_v6, %v1073_v0  ;;  %vm1065_vm2 = vcmp.eq.f32.partialorder %v1064_v23, 8.507059e+37 }
 0x978   : > { %v1093_v12 = vmul.f32 %v1092_v8, %v1073_v0 }
 0x979   : > { %v1083_v38 = vadd.f32 1.1283791, %v1082_v29 }
 0x97a   : > { %v1094_v10 = vadd.f32 1.0, %v1093_v12 }
 0x97b   : > { %v1591_v13 = vpop.eup %1590  ;;  %v1084_v20 = vmul.f32 %v1083_v38, %v1904_v30 }
 0x97c   : > { %v1056_v16 = vmul.f32 %v1591_v13, %v1054_v2  ;;  %1592 = vrcp.f32 %v1094_v10  ;;  %vm1061_vm14 = vweird.f32 %v1591_v13  ;;  %v1106_v37 = vand.u32 2147483648, %v1094_v10 }
 0x97d   : > { %vm1062_vm1 = vmor %vm1060_vm15, %vm1061_vm14  ;;  %v1104_v40 = vand.u32 2147483647, %v1094_v10  ;;  %vm1100_vm4 = vweird.f32 %v1094_v10 }
 0x97e   : > { %v1057_v17 = vsub.f32 1.0, %v1056_v16  ;;  %v1107_v0 = vor.u32 1.1754944e-38, %v1106_v37 }
 0x97f   : > { %vm1105_vm6 = vcmp.eq.f32.partialorder %v1104_v40, 8.507059e+37 }
 0x980   : > { %v1058_v22 = vmul.f32 %v1591_v13, %v1057_v17 }
 0x982   : > { %v1593_v25 = vpop.eup %1592  ;;  %v1059_v27 = vadd.f32 %v1591_v13, %v1058_v22 }
 0x983   : > { %v1096_v32 = vmul.f32 %v1593_v25, %v1094_v10  ;;  %vm1101_vm3 = vweird.f32 %v1593_v25 }
 0x984   : > { %v1063_v34 = vsel %vm1062_vm1, %v1591_v13, %v1059_v27  ;;  %vm1102_vm5 = vmor %vm1100_vm4, %vm1101_vm3 }
 0x985   : > { %v1068_v24 = vsel %vm1065_vm2, %v1067_v28, %v1063_v34  ;;  %v1097_v35 = vsub.f32 1.0, %v1096_v32 }
 0x986   : > { %v1069_v36 = vmul.f32 %v1068_v24, %v1044_v33 }
 0x987   : > { %v1098_v39 = vmul.f32 %v1593_v25, %v1097_v35 }
 0x988   : > { %v1440_v41 = vclamps-f32 %v1069_v36, 1.0 }
 0x989   : > { %v1099_v42 = vadd.f32 %v1593_v25, %v1098_v39 }
 0x98a   : > { %v1112_v44 = vadd.f32 1.0, %v1440_v41 }
 0x98b   : > { %v1103_v45 = vsel %vm1102_vm5, %v1593_v25, %v1099_v42 }
 0x98c   : > { %v1114_v46 = vmul.f32 %v1112_v44, %v1028_v43  ;;  %v1108_v47 = vsel %vm1105_vm6, %v1107_v0, %v1103_v45 }
 0x98d   : > { %v1109_v48 = vmul.f32 %v1108_v47, %v1084_v20 }
 0x98e   : > { %v1116_v49 = vpack.c.bf16 %v1114_v46, %v1114_v46 }
 0x98f   : > { %v1441_v50 = vclamps-f32 %v1109_v48, 1.0 }
 0x990   : > { %1254 = vmatmul.bf16.vlgmr.msra.gmra.mxu2 %v1116_v49 }
 0x991   : > { %v1113_v52 = vadd.f32 1.0, %v1441_v50 }
 0x993   : > { %v1115_v53 = vmul.f32 %v1113_v52, %v1029_v51 }
 0x995   : > { %v1117_v54 = vpack.c.bf16 %v1115_v53, %v1115_v53 }
 0x997   : > { %1267 = vmatmul.bf16.vlgmr.msra.gmra.mxu0 %v1117_v54 }
 0xa13   : > { %v1255_v19 = vpop.f32.mrf.mxu2 }
 0xa14   : > { %v1268_v55 = vpop.f32.mrf.mxu0 }
 0xa15   : > { %v1269_v56 = vadd.f32 %v1268_v55, %v1255_v19 }
 0xa17   : > { %v1272_v30 = vadd.f32 %v1269_v56, %v1802_v31 }
 0xa19   : > { %1273 = vst.msk [vmem:[%s452_s21] sm:$0xff] %vm458_vm0, %v1272_v30 }
 0xa1b   : > { %v1257_v57 = vpop.f32.mrf.mxu2 }
 0xa1c   : > { %v1270_v58 = vpop.f32.mrf.mxu0 }
 0xa1d PF: > { %s23_s25 = sadd.s32 1, %s1600_s25  }
 0xa1e   : > { %p20_p4 = scmp.ge.s32.totalorder %s23_s25, 4  }
 0xa20   :  { %22 = sbr.rel (!%p20_p4) target bundleno = 1 (0x1), region = 105 }

</bundles_post_ra>
